<compile_context>
chip_gen: v7x
topology: tpu7x:2x2x1
jax: 0.10.0
libtpu: 0.0.40
codegen_flags: <defaults>
</compile_context>

<pallas_src>
import functools
import math

import numpy as np
import jax
import jax.numpy as jnp
from jax.experimental import pallas as pl
from jax.experimental.pallas import tpu as pltpu

EPS = 1e-5
NB = 8  # internal batch padding -> sublane-aligned rows

CONV_CHANNELS = [16, 32, 32]
CONV_CONFIG = [(5, 2, 0), (5, 2, 0), (3, 2, 1)]  # (kernel, stride, pad)
LINEAR_UNITS = [256]


# ------------------------------ static geometry ---------------------------- #
def _round_up(v, m):
    return -(-v // m) * m


def _conv_geometry(state_space_dim):
    """Per-layer geometry; ow_s is the lane-aligned (stored) output width."""
    c_in, h, w = state_space_dim
    layers = []
    cin, cur_h, cur_w = c_in, h, w
    for cout, (k, s, p) in zip(CONV_CHANNELS, CONV_CONFIG):
        oh = (cur_h + 2 * p - k) // s + 1
        ow = (cur_w + 2 * p - k) // s + 1
        lane_step = 128 // math.gcd(128, cout)
        ow_s = _round_up(ow, lane_step)          # stored width -> lanes % 128 == 0
        layers.append(dict(k=k, s=s, p=p, oh=oh, ow=ow, ow_s=ow_s,
                           cin=cin, cout=cout, in_h=cur_h, in_w=cur_w))
        cin, cur_h, cur_w = cout, oh, ow
    return layers


# --------------------------------- kernel ---------------------------------- #
def _policy_kernel(x_ref,
                   w1, b1, g1, e1, f1,
                   w2, b2, g2, e2, f2,
                   w3, b3, g3, e3, f3,
                   wl0, bl0, wl1, bl1,
                   out_ref, *, geo, n_real):
    """Fused ConvBlock x3 + Flatten + LinearBlock + Linear; everything VMEM/vreg."""
    (k1, s1, _p1, oh1, ow1), (k2, s2, _p2, oh2, ow2), (k3, s3, p3, oh3, ow3) = geo

    def conv_rows(src, k, s, oh_out):
        # k contiguous row-windows of the phase-split source, one 128-aligned
        # lane block per kernel row -> ONE lane-dense matmul per conv layer.
        blocks = []
        for kh in range(k):
            blk = src[kh // s: kh // s + oh_out, kh % s]       # (oh_out, NB, L)
            blocks.append(blk.reshape(oh_out * NB, blk.shape[-1]))
        return jnp.concatenate(blocks, axis=-1).astype(jnp.bfloat16)

    def bn_tanh(y, fold_ref, gamma_ref, beta_ref, n_spatial):
        # Train-mode BatchNorm2d (biased var) + tanh on the lane-dense layout.
        # Width-pad lanes are exactly zero (zero weight cols + zero bias tile),
        # so only the padded batch rows need masking.
        rows = y.shape[0]
        if n_real < NB:
            ridx = jax.lax.broadcasted_iota(jnp.int32, (rows, 1), 0)
            ym = y * ((ridx % NB) < n_real).astype(jnp.float32)
        else:
            ym = y
        s1_ = jnp.sum(ym, axis=0, keepdims=True)           # (1, L)
        s2_ = jnp.sum(ym * y, axis=0, keepdims=True)        # (1, L)
        inv_cnt = 1.0 / float(n_real * n_spatial)
        fold = fold_ref[...]                                 # (L, L) 0/1 pattern
        mean = jnp.dot(s1_, fold, preferred_element_type=jnp.float32) * inv_cnt
        ex2 = jnp.dot(s2_, fold, preferred_element_type=jnp.float32) * inv_cnt
        var = jnp.maximum(ex2 - mean * mean, 0.0)
        scale = gamma_ref[...] * jax.lax.rsqrt(var + EPS)
        shift = beta_ref[...] - mean * scale
        return jnp.tanh(y * scale + shift)

    # ---- conv1: single matmul, K = k1 * W_in * C_in ----
    lhs = conv_rows(x_ref, k1, s1, oh1)                              # (oh1*NB, K1)
    y = jnp.dot(lhs, w1[...], preferred_element_type=jnp.float32) + b1[...]
    a1 = bn_tanh(y, f1, g1, e1, oh1 * ow1)                           # (oh1*NB, L1)

    # ---- conv2: single matmul ----
    L1 = a1.shape[1]
    a1p = a1.reshape(oh1 // s2, s2, NB, L1)                          # phase-split rows
    lhs = conv_rows(a1p, k2, s2, oh2)                                # (oh2*NB, K2)
    y = jnp.dot(lhs, w2[...], preferred_element_type=jnp.float32) + b2[...]
    a2 = bn_tanh(y, f2, g2, e2, oh2 * ow2)                           # (oh2*NB, L2)

    # ---- conv3 (pad=1): per-output-row accumulation; H padding = skipped matmuls,
    #      W padding folded into zero rows/cols of the Toeplitz weight ----
    L2 = a2.shape[1]
    a2r = a2.reshape(oh2, NB, L2)
    rows3 = []
    for i in range(oh3):
        acc = None
        for kh in range(k3):
            r = s3 * i + kh - p3
            if 0 <= r < oh2:
                t = jnp.dot(a2r[r].astype(jnp.bfloat16), w3[kh],
                            preferred_element_type=jnp.float32)      # (NB, L3)
                acc = t if acc is None else acc + t
        rows3.append(acc)
    y = jnp.concatenate(rows3, axis=0) + b3[...]                     # (oh3*NB, L3)
    a3 = bn_tanh(y, f3, g3, e3, oh3 * ow3)

    # ---- flatten + linear head: single matmul, lane-dense K = oh3 * L3 ----
    flat = jnp.concatenate([a3[i * NB:(i + 1) * NB, :] for i in range(oh3)],
                           axis=-1).astype(jnp.bfloat16)             # (NB, oh3*L3)
    h = jnp.tanh(jnp.dot(flat, wl0[...], preferred_element_type=jnp.float32)
                 + bl0[...])                                          # (NB, hidden)
    logits = jnp.dot(h.astype(jnp.bfloat16), wl1[...],
                     preferred_element_type=jnp.float32) + bl1[...]
    out_ref[...] = logits[:n_real, :]


# ------------------------------ parameters --------------------------------- #
def init_params(key, state_space_dim, action_space_dim):
    """Parameters in PyTorch layout (Conv2d (Cout,Cin,k,k); Linear (out,in))."""
    c_in, h, w = state_space_dim
    params = {"conv": [], "lin": []}
    cin, hw = c_in, (h, w)
    for cout, (k, s, p) in zip(CONV_CHANNELS, CONV_CONFIG):
        key, kw_, kb_ = jax.random.split(key, 3)
        params["conv"].append(dict(
            w=0.1 * jax.random.normal(kw_, (cout, cin, k, k), jnp.float32),
            b=0.1 * jax.random.normal(kb_, (cout,), jnp.float32),
            gamma=jnp.ones((cout,), jnp.float32),   # BatchNorm2d default affine
            beta=jnp.zeros((cout,), jnp.float32)))
        cin = cout
        hw = ((hw[0] + 2 * p - k) // s + 1, (hw[1] + 2 * p - k) // s + 1)
    in_units = CONV_CHANNELS[-1] * hw[0] * hw[1]
    for units in LINEAR_UNITS + [action_space_dim]:
        key, kw_, kb_ = jax.random.split(key, 3)
        params["lin"].append(dict(
            w=0.1 * jax.random.normal(kw_, (units, in_units), jnp.float32),
            b=0.1 * jax.random.normal(kb_, (units,), jnp.float32)))
        in_units = units
    return params


def _toeplitz_weight(w, in_w_real, in_w_store, out_w_real, out_w_store, stride, pad):
    """Block-Toeplitz conv weight over a full image row.

    Returns T[kh, w_in, cin, j, cout]; stride, kw taps and width padding are all
    encoded as zero entries, so the kernel's matmul needs no strided/masked loads."""
    cout, cin, k, _ = w.shape
    T = np.zeros((k, in_w_store, cin, out_w_store, cout), np.float32)
    wt = np.transpose(w, (2, 3, 1, 0))               # (kh, kw, cin, cout)
    for j in range(out_w_real):
        for kw in range(k):
            w_in = stride * j + kw - pad
            if 0 <= w_in < in_w_real:
                T[:, w_in, :, j, :] = wt[:, kw]
    return T


def prepare_params(params, state_space_dim):
    """One-time host-side weight layout (zero runtime cost):
       * conv weights -> block-Toeplitz matrices (bf16), biases/gamma/beta tiled
         to the lane-dense layout, 0/1 'fold' matrices for per-channel BN stats;
       * NCHW flatten folded into the first Linear's weight."""
    geo = _conv_geometry(state_space_dim)
    assert len(geo) == 3 and geo[0]["p"] == 0 and geo[1]["p"] == 0, \
        "kernel is specialized to the default PolicyNetwork conv stack"
    prepped = {"conv": [], "lin": []}
    in_w_real, in_w_store = state_space_dim[2], state_space_dim[2]
    for idx, (layer, g) in enumerate(zip(params["conv"], geo)):
        wt = np.asarray(layer["w"], np.float32)
        T = _toeplitz_weight(wt, in_w_real, in_w_store, g["ow"], g["ow_s"],
                             g["s"], g["p"])
        if idx < 2:   # unpadded layers: fuse all kh blocks -> one matmul
            T = T.reshape(g["k"] * in_w_store * g["cin"], g["ow_s"] * g["cout"])
        else:         # padded layer: keep per-kh blocks (H padding = skipped dots)
            T = T.reshape(g["k"], in_w_store * g["cin"], g["ow_s"] * g["cout"])
        L = g["ow_s"] * g["cout"]
        bias = np.zeros((1, L), np.float32)           # zero at width-pad lanes!
        bias[0, : g["ow"] * g["cout"]] = np.tile(np.asarray(layer["b"], np.float32),
                                                 g["ow"])
        gamma = np.tile(np.asarray(layer["gamma"], np.float32), g["ow_s"]).reshape(1, L)
        beta = np.tile(np.asarray(layer["beta"], np.float32), g["ow_s"]).reshape(1, L)
        fold = np.tile(np.eye(g["cout"], dtype=np.float32), (g["ow_s"], g["ow_s"]))
        prepped["conv"].append(dict(
            w=jnp.asarray(T, jnp.bfloat16),
            b=jnp.asarray(bias), gamma=jnp.asarray(gamma), beta=jnp.asarray(beta),
            fold=jnp.asarray(fold)))
        in_w_real, in_w_store = g["ow"], g["ow_s"]

    g3 = geo[-1]
    fc1_w = np.asarray(params["lin"][0]["w"], np.float32)   # (hidden, c*oh*ow), feat (c,h,w)
    hidden = fc1_w.shape[0]
    fc1_w = fc1_w.reshape(hidden, g3["cout"], g3["oh"], g3["ow"])
    W1p = np.zeros((g3["oh"], g3["ow_s"], g3["cout"], hidden), np.float32)
    W1p[:, : g3["ow"], :, :] = np.transpose(fc1_w, (2, 3, 1, 0))   # zero at pad cols
    W1p = W1p.reshape(g3["oh"] * g3["ow_s"] * g3["cout"], hidden)
    prepped["lin"].append(dict(
        w=jnp.asarray(W1p, jnp.bfloat16),
        b=jnp.asarray(np.asarray(params["lin"][0]["b"], np.float32).reshape(1, -1))))
    fc2_w = np.asarray(params["lin"][1]["w"], np.float32)           # (A, hidden)
    prepped["lin"].append(dict(
        w=jnp.asarray(fc2_w.T, jnp.bfloat16),
        b=jnp.asarray(np.asarray(params["lin"][1]["b"], np.float32).reshape(1, -1))))
    return prepped


# -------------------------------- forward ---------------------------------- #
@jax.jit
def policy_network_forward(prepped, x_nchw):
    n, c, h, w = x_nchw.shape
    assert n <= NB, "internal batch padding supports batch <= 8 (add a batch grid otherwise)"
    geo = _conv_geometry((c, h, w))
    g1, g2 = geo[0], geo[1]
    assert h % g1["s"] == 0 and g1["oh"] % g2["s"] == 0, "phase split needs divisible heights"
    action_dim = prepped["lin"][1]["w"].shape[1]

    # host-side layout plumbing only: NCHW -> phase-split (H/s, s, NB, W*C) f32
    xt = jnp.transpose(x_nchw.astype(jnp.float32), (2, 0, 3, 1)).reshape(h, n, w * c)
    xt = jnp.pad(xt, ((0, 0), (0, NB - n), (0, 0)))
    xk = xt.reshape(h // g1["s"], g1["s"], NB, w * c)

    kernel = functools.partial(
        _policy_kernel,
        geo=tuple((g["k"], g["s"], g["p"], g["oh"], g["ow"]) for g in geo),
        n_real=n)

    vmem = pl.BlockSpec(memory_space=pltpu.MemorySpace.VMEM)
    args = [xk]
    for layer in prepped["conv"]:
        args += [layer["w"], layer["b"], layer["gamma"], layer["beta"], layer["fold"]]
    args += [prepped["lin"][0]["w"], prepped["lin"][0]["b"],
             prepped["lin"][1]["w"], prepped["lin"][1]["b"]]

    return pl.pallas_call(
        kernel,
        out_shape=jax.ShapeDtypeStruct((n, action_dim), jnp.float32),
        in_specs=[vmem] * len(args),
        out_specs=vmem,
        compiler_params=pltpu.CompilerParams(vmem_limit_bytes=16 * 1024 * 1024),
    )(*args)


# ------------------------------- reference --------------------------------- #
def policy_network_reference(params, x):
    """Pure-JAX reference of the PyTorch train-mode forward.  Matmul operands are
    cast to bf16 at exactly the points the kernel casts, so the comparison isolates
    kernel structure; vs a full-f32 PyTorch forward the remaining delta is the
    documented ~1e-2 bf16 quantization."""
    a = x.astype(jnp.float32)
    for layer, (k, s, p) in zip(params["conv"], CONV_CONFIG):
        y = jax.lax.conv_general_dilated(
            a.astype(jnp.bfloat16), layer["w"].astype(jnp.bfloat16),
            window_strides=(s, s), padding=[(p, p), (p, p)],
            dimension_numbers=("NCHW", "OIHW", "NCHW"),
            preferred_element_type=jnp.float32)
        y = y + layer["b"].reshape(1, -1, 1, 1)
        mean = jnp.mean(y, axis=(0, 2, 3), keepdims=True)
        var = jnp.maximum(jnp.mean(y * y, axis=(0, 2, 3), keepdims=True) - mean * mean, 0.0)
        y = (y - mean) * jax.lax.rsqrt(var + EPS)
        y = y * layer["gamma"].reshape(1, -1, 1, 1) + layer["beta"].reshape(1, -1, 1, 1)
        a = jnp.tanh(y)
    a = a.reshape(a.shape[0], -1)
    h = jnp.tanh(jnp.dot(a.astype(jnp.bfloat16),
                         params["lin"][0]["w"].T.astype(jnp.bfloat16),
                         preferred_element_type=jnp.float32) + params["lin"][0]["b"])
    logits = jnp.dot(h.astype(jnp.bfloat16),
                     params["lin"][1]["w"].T.astype(jnp.bfloat16),
                     preferred_element_type=jnp.float32) + params["lin"][1]["b"]
    return logits


# ---------------------------------- demo ----------------------------------- #
if __name__ == "__main__":
    key = jax.random.PRNGKey(0)
    k_param, k_x = jax.random.split(key)

    state_space_dim = (4, 32, 32)   # (C, H, W) pixel observation
    action_space_dim = 2            # CartPole
    batch = 2

    params = init_params(k_param, state_space_dim, action_space_dim)
    prepped = prepare_params(params, state_space_dim)
    x = jax.random.normal(k_x, (batch,) + state_space_dim, jnp.float32)

    logits = policy_network_forward(prepped, x)
    jax.block_until_ready(logits)
    assert logits.shape == (batch, action_space_dim)

    # structural-correctness check against the bf16-matched pure-JAX reference
    ref = policy_network_reference(params, x)
    err = float(jnp.max(jnp.abs(logits - ref)))
    assert err < 2e-2, f"kernel vs reference mismatch: max abs err = {err}"
    print("KERNEL_OK")
</pallas_src>

<mosaic_0001>
module attributes {stable_mosaic.version = 11 : i64} {
  func.func @_policy_kernel(%arg0: memref<16x2x8x128xf32, #tpu.memory_space<vmem>>, %arg1: memref<640x256xbf16, #tpu.memory_space<vmem>>, %arg2: memref<1x256xf32, #tpu.memory_space<vmem>>, %arg3: memref<1x256xf32, #tpu.memory_space<vmem>>, %arg4: memref<1x256xf32, #tpu.memory_space<vmem>>, %arg5: memref<256x256xf32, #tpu.memory_space<vmem>>, %arg6: memref<1280x256xbf16, #tpu.memory_space<vmem>>, %arg7: memref<1x256xf32, #tpu.memory_space<vmem>>, %arg8: memref<1x256xf32, #tpu.memory_space<vmem>>, %arg9: memref<1x256xf32, #tpu.memory_space<vmem>>, %arg10: memref<256x256xf32, #tpu.memory_space<vmem>>, %arg11: memref<3x256x128xbf16, #tpu.memory_space<vmem>>, %arg12: memref<1x128xf32, #tpu.memory_space<vmem>>, %arg13: memref<1x128xf32, #tpu.memory_space<vmem>>, %arg14: memref<1x128xf32, #tpu.memory_space<vmem>>, %arg15: memref<128x128xf32, #tpu.memory_space<vmem>>, %arg16: memref<384x256xbf16, #tpu.memory_space<vmem>>, %arg17: memref<1x256xf32, #tpu.memory_space<vmem>>, %arg18: memref<256x2xbf16, #tpu.memory_space<vmem>>, %arg19: memref<1x2xf32, #tpu.memory_space<vmem>>, %arg20: memref<2x2xf32, #tpu.memory_space<vmem>>) attributes {dimension_semantics = [], scalar_prefetch = 0 : i64, scratch_operands = 0 : i64, tpu.core_type = #tpu.core_type<tc>} {
    %c0 = arith.constant 0 : index
    %c0_0 = arith.constant 0 : index
    %c0_1 = arith.constant 0 : index
    %c0_2 = arith.constant 0 : index
    %0 = vector.load %arg0[%c0, %c0_0, %c0_1, %c0_2] : memref<16x2x8x128xf32, #tpu.memory_space<vmem>>, vector<14x1x8x128xf32>
    %1 = vector.shape_cast %0 : vector<14x1x8x128xf32> to vector<14x8x128xf32>
    %2 = vector.shape_cast %1 : vector<14x8x128xf32> to vector<112x128xf32>
    %c0_3 = arith.constant 0 : index
    %c1 = arith.constant 1 : index
    %c0_4 = arith.constant 0 : index
    %c0_5 = arith.constant 0 : index
    %3 = vector.load %arg0[%c0_3, %c1, %c0_4, %c0_5] : memref<16x2x8x128xf32, #tpu.memory_space<vmem>>, vector<14x1x8x128xf32>
    %4 = vector.shape_cast %3 : vector<14x1x8x128xf32> to vector<14x8x128xf32>
    %5 = vector.shape_cast %4 : vector<14x8x128xf32> to vector<112x128xf32>
    %c1_6 = arith.constant 1 : index
    %c0_7 = arith.constant 0 : index
    %c0_8 = arith.constant 0 : index
    %c0_9 = arith.constant 0 : index
    %6 = vector.load %arg0[%c1_6, %c0_7, %c0_8, %c0_9] : memref<16x2x8x128xf32, #tpu.memory_space<vmem>>, vector<14x1x8x128xf32>
    %7 = vector.shape_cast %6 : vector<14x1x8x128xf32> to vector<14x8x128xf32>
    %8 = vector.shape_cast %7 : vector<14x8x128xf32> to vector<112x128xf32>
    %c1_10 = arith.constant 1 : index
    %c1_11 = arith.constant 1 : index
    %c0_12 = arith.constant 0 : index
    %c0_13 = arith.constant 0 : index
    %9 = vector.load %arg0[%c1_10, %c1_11, %c0_12, %c0_13] : memref<16x2x8x128xf32, #tpu.memory_space<vmem>>, vector<14x1x8x128xf32>
    %10 = vector.shape_cast %9 : vector<14x1x8x128xf32> to vector<14x8x128xf32>
    %11 = vector.shape_cast %10 : vector<14x8x128xf32> to vector<112x128xf32>
    %c2 = arith.constant 2 : index
    %c0_14 = arith.constant 0 : index
    %c0_15 = arith.constant 0 : index
    %c0_16 = arith.constant 0 : index
    %12 = vector.load %arg0[%c2, %c0_14, %c0_15, %c0_16] : memref<16x2x8x128xf32, #tpu.memory_space<vmem>>, vector<14x1x8x128xf32>
    %13 = vector.shape_cast %12 : vector<14x1x8x128xf32> to vector<14x8x128xf32>
    %14 = vector.shape_cast %13 : vector<14x8x128xf32> to vector<112x128xf32>
    %15 = tpu.concatenate %2, %5, %8, %11, %14 in 1 : vector<112x128xf32>, vector<112x128xf32>, vector<112x128xf32>, vector<112x128xf32>, vector<112x128xf32> -> vector<112x640xf32>
    %16 = arith.truncf %15 : vector<112x640xf32> to vector<112x640xbf16>
    %c0_17 = arith.constant 0 : index
    %c0_18 = arith.constant 0 : index
    %17 = vector.load %arg1[%c0_17, %c0_18] : memref<640x256xbf16, #tpu.memory_space<vmem>>, vector<640x256xbf16>
    %cst = arith.constant dense<0.000000e+00> : vector<112x256xf32>
    %18 = tpu.matmul %16, %17, %cst {dimension_numbers = #tpu.dot_dimension_numbers<[1], [0], [0], [1], [0, 0, 1, 1], [], []>} : vector<112x640xbf16>, vector<640x256xbf16>, vector<112x256xf32> -> vector<112x256xf32>
    %c0_19 = arith.constant 0 : index
    %c0_20 = arith.constant 0 : index
    %19 = vector.load %arg2[%c0_19, %c0_20] : memref<1x256xf32, #tpu.memory_space<vmem>>, vector<1x256xf32>
    %20 = vector.broadcast %19 : vector<1x256xf32> to vector<112x256xf32>
    %21 = arith.addf %18, %20 : vector<112x256xf32>
    %22 = tpu.iota {dimensions = array<i32: 0>} : vector<112x1xi32>
    %c8_i32 = arith.constant 8 : i32
    %c0_i32 = arith.constant 0 : i32
    %23 = arith.cmpi eq, %c8_i32, %c0_i32 : i32
    %c1_i32 = arith.constant 1 : i32
    %24 = arith.select %23, %c1_i32, %c8_i32 : i32
    %25 = vector.broadcast %24 : i32 to vector<112x1xi32>
    %26 = arith.remsi %22, %25 : vector<112x1xi32>
    %c0_i32_21 = arith.constant 0 : i32
    %27 = vector.broadcast %c0_i32_21 : i32 to vector<112x1xi32>
    %28 = arith.cmpi ne, %26, %27 : vector<112x1xi32>
    %c0_i32_22 = arith.constant 0 : i32
    %29 = vector.broadcast %c0_i32_22 : i32 to vector<112x1xi32>
    %30 = arith.cmpi slt, %26, %29 : vector<112x1xi32>
    %c0_i32_23 = arith.constant 0 : i32
    %31 = arith.cmpi slt, %24, %c0_i32_23 : i32
    %32 = vector.broadcast %31 : i1 to vector<112x1xi1>
    %33 = vector.broadcast %32 : vector<112x1xi1> to vector<112x1xi1>
    %34 = arith.xori %30, %33 : vector<112x1xi1>
    %35 = arith.andi %34, %28 : vector<112x1xi1>
    %36 = vector.broadcast %24 : i32 to vector<112x1xi32>
    %37 = arith.addi %26, %36 : vector<112x1xi32>
    %38 = arith.select %35, %37, %26 : vector<112x1xi1>, vector<112x1xi32>
    %c2_i32 = arith.constant 2 : i32
    %39 = vector.broadcast %c2_i32 : i32 to vector<112x1xi32>
    %40 = arith.cmpi slt, %38, %39 : vector<112x1xi32>
    %41 = arith.extui %40 : vector<112x1xi1> to vector<112x1xi32>
    %42 = arith.sitofp %41 : vector<112x1xi32> to vector<112x1xf32>
    %43 = vector.broadcast %42 : vector<112x1xf32> to vector<112x256xf32>
    %44 = arith.mulf %21, %43 : vector<112x256xf32>
    %cst_24 = arith.constant dense<0.000000e+00> : vector<256xf32>
    %45 = vector.multi_reduction <add>, %44, %cst_24 [0] : vector<112x256xf32> to vector<256xf32>
    %46 = vector.shape_cast %45 : vector<256xf32> to vector<1x256xf32>
    %47 = arith.mulf %44, %21 : vector<112x256xf32>
    %cst_25 = arith.constant dense<0.000000e+00> : vector<256xf32>
    %48 = vector.multi_reduction <add>, %47, %cst_25 [0] : vector<112x256xf32> to vector<256xf32>
    %49 = vector.shape_cast %48 : vector<256xf32> to vector<1x256xf32>
    %c0_26 = arith.constant 0 : index
    %c0_27 = arith.constant 0 : index
    %50 = vector.load %arg5[%c0_26, %c0_27] : memref<256x256xf32, #tpu.memory_space<vmem>>, vector<256x256xf32>
    %cst_28 = arith.constant dense<0.000000e+00> : vector<1x256xf32>
    %51 = tpu.matmul %46, %50, %cst_28 {dimension_numbers = #tpu.dot_dimension_numbers<[1], [0], [0], [1], [0, 0, 1, 1], [], []>} : vector<1x256xf32>, vector<256x256xf32>, vector<1x256xf32> -> vector<1x256xf32>
    %cst_29 = arith.constant 0.00255102036 : f32
    %52 = vector.broadcast %cst_29 : f32 to vector<1x256xf32>
    %53 = arith.mulf %51, %52 : vector<1x256xf32>
    %cst_30 = arith.constant dense<0.000000e+00> : vector<1x256xf32>
    %54 = tpu.matmul %49, %50, %cst_30 {dimension_numbers = #tpu.dot_dimension_numbers<[1], [0], [0], [1], [0, 0, 1, 1], [], []>} : vector<1x256xf32>, vector<256x256xf32>, vector<1x256xf32> -> vector<1x256xf32>
    %cst_31 = arith.constant 0.00255102036 : f32
    %55 = vector.broadcast %cst_31 : f32 to vector<1x256xf32>
    %56 = arith.mulf %54, %55 : vector<1x256xf32>
    %57 = arith.mulf %53, %53 : vector<1x256xf32>
    %58 = arith.subf %56, %57 : vector<1x256xf32>
    %cst_32 = arith.constant 0.000000e+00 : f32
    %59 = vector.broadcast %cst_32 : f32 to vector<1x256xf32>
    %60 = arith.maximumf %58, %59 : vector<1x256xf32>
    %c0_33 = arith.constant 0 : index
    %c0_34 = arith.constant 0 : index
    %61 = vector.load %arg3[%c0_33, %c0_34] : memref<1x256xf32, #tpu.memory_space<vmem>>, vector<1x256xf32>
    %cst_35 = arith.constant 9.99999974E-6 : f32
    %62 = vector.broadcast %cst_35 : f32 to vector<1x256xf32>
    %63 = arith.addf %60, %62 : vector<1x256xf32>
    %64 = math.rsqrt %63 : vector<1x256xf32>
    %65 = arith.mulf %61, %64 : vector<1x256xf32>
    %c0_36 = arith.constant 0 : index
    %c0_37 = arith.constant 0 : index
    %66 = vector.load %arg4[%c0_36, %c0_37] : memref<1x256xf32, #tpu.memory_space<vmem>>, vector<1x256xf32>
    %67 = arith.mulf %53, %65 : vector<1x256xf32>
    %68 = arith.subf %66, %67 : vector<1x256xf32>
    %69 = vector.broadcast %65 : vector<1x256xf32> to vector<112x256xf32>
    %70 = arith.mulf %21, %69 : vector<112x256xf32>
    %71 = vector.broadcast %68 : vector<1x256xf32> to vector<112x256xf32>
    %72 = arith.addf %70, %71 : vector<112x256xf32>
    %73 = math.tanh %72 : vector<112x256xf32>
    %74 = vector.shape_cast %73 : vector<112x256xf32> to vector<7x2x8x256xf32>
    %75 = vector.extract_strided_slice %74 {offsets = [0, 0, 0, 0], sizes = [5, 1, 8, 256], strides = [1, 1, 1, 1]} : vector<7x2x8x256xf32> to vector<5x1x8x256xf32>
    %76 = vector.shape_cast %75 : vector<5x1x8x256xf32> to vector<5x8x256xf32>
    %77 = vector.shape_cast %76 : vector<5x8x256xf32> to vector<40x256xf32>
    %78 = vector.extract_strided_slice %74 {offsets = [0, 1, 0, 0], sizes = [5, 1, 8, 256], strides = [1, 1, 1, 1]} : vector<7x2x8x256xf32> to vector<5x1x8x256xf32>
    %79 = vector.shape_cast %78 : vector<5x1x8x256xf32> to vector<5x8x256xf32>
    %80 = vector.shape_cast %79 : vector<5x8x256xf32> to vector<40x256xf32>
    %81 = vector.extract_strided_slice %74 {offsets = [1, 0, 0, 0], sizes = [5, 1, 8, 256], strides = [1, 1, 1, 1]} : vector<7x2x8x256xf32> to vector<5x1x8x256xf32>
    %82 = vector.shape_cast %81 : vector<5x1x8x256xf32> to vector<5x8x256xf32>
    %83 = vector.shape_cast %82 : vector<5x8x256xf32> to vector<40x256xf32>
    %84 = vector.extract_strided_slice %74 {offsets = [1, 1, 0, 0], sizes = [5, 1, 8, 256], strides = [1, 1, 1, 1]} : vector<7x2x8x256xf32> to vector<5x1x8x256xf32>
    %85 = vector.shape_cast %84 : vector<5x1x8x256xf32> to vector<5x8x256xf32>
    %86 = vector.shape_cast %85 : vector<5x8x256xf32> to vector<40x256xf32>
    %87 = vector.extract_strided_slice %74 {offsets = [2, 0, 0, 0], sizes = [5, 1, 8, 256], strides = [1, 1, 1, 1]} : vector<7x2x8x256xf32> to vector<5x1x8x256xf32>
    %88 = vector.shape_cast %87 : vector<5x1x8x256xf32> to vector<5x8x256xf32>
    %89 = vector.shape_cast %88 : vector<5x8x256xf32> to vector<40x256xf32>
    %90 = tpu.concatenate %77, %80, %83, %86, %89 in 1 : vector<40x256xf32>, vector<40x256xf32>, vector<40x256xf32>, vector<40x256xf32>, vector<40x256xf32> -> vector<40x1280xf32>
    %91 = arith.truncf %90 : vector<40x1280xf32> to vector<40x1280xbf16>
    %c0_38 = arith.constant 0 : index
    %c0_39 = arith.constant 0 : index
    %92 = vector.load %arg6[%c0_38, %c0_39] : memref<1280x256xbf16, #tpu.memory_space<vmem>>, vector<1280x256xbf16>
    %cst_40 = arith.constant dense<0.000000e+00> : vector<40x256xf32>
    %93 = tpu.matmul %91, %92, %cst_40 {dimension_numbers = #tpu.dot_dimension_numbers<[1], [0], [0], [1], [0, 0, 1, 1], [], []>} : vector<40x1280xbf16>, vector<1280x256xbf16>, vector<40x256xf32> -> vector<40x256xf32>
    %c0_41 = arith.constant 0 : index
    %c0_42 = arith.constant 0 : index
    %94 = vector.load %arg7[%c0_41, %c0_42] : memref<1x256xf32, #tpu.memory_space<vmem>>, vector<1x256xf32>
    %95 = vector.broadcast %94 : vector<1x256xf32> to vector<40x256xf32>
    %96 = arith.addf %93, %95 : vector<40x256xf32>
    %97 = tpu.iota {dimensions = array<i32: 0>} : vector<40x1xi32>
    %c8_i32_43 = arith.constant 8 : i32
    %c0_i32_44 = arith.constant 0 : i32
    %98 = arith.cmpi eq, %c8_i32_43, %c0_i32_44 : i32
    %c1_i32_45 = arith.constant 1 : i32
    %99 = arith.select %98, %c1_i32_45, %c8_i32_43 : i32
    %100 = vector.broadcast %99 : i32 to vector<40x1xi32>
    %101 = arith.remsi %97, %100 : vector<40x1xi32>
    %c0_i32_46 = arith.constant 0 : i32
    %102 = vector.broadcast %c0_i32_46 : i32 to vector<40x1xi32>
    %103 = arith.cmpi ne, %101, %102 : vector<40x1xi32>
    %c0_i32_47 = arith.constant 0 : i32
    %104 = vector.broadcast %c0_i32_47 : i32 to vector<40x1xi32>
    %105 = arith.cmpi slt, %101, %104 : vector<40x1xi32>
    %c0_i32_48 = arith.constant 0 : i32
    %106 = arith.cmpi slt, %99, %c0_i32_48 : i32
    %107 = vector.broadcast %106 : i1 to vector<40x1xi1>
    %108 = vector.broadcast %107 : vector<40x1xi1> to vector<40x1xi1>
    %109 = arith.xori %105, %108 : vector<40x1xi1>
    %110 = arith.andi %109, %103 : vector<40x1xi1>
    %111 = vector.broadcast %99 : i32 to vector<40x1xi32>
    %112 = arith.addi %101, %111 : vector<40x1xi32>
    %113 = arith.select %110, %112, %101 : vector<40x1xi1>, vector<40x1xi32>
    %c2_i32_49 = arith.constant 2 : i32
    %114 = vector.broadcast %c2_i32_49 : i32 to vector<40x1xi32>
    %115 = arith.cmpi slt, %113, %114 : vector<40x1xi32>
    %116 = arith.extui %115 : vector<40x1xi1> to vector<40x1xi32>
    %117 = arith.sitofp %116 : vector<40x1xi32> to vector<40x1xf32>
    %118 = vector.broadcast %117 : vector<40x1xf32> to vector<40x256xf32>
    %119 = arith.mulf %96, %118 : vector<40x256xf32>
    %cst_50 = arith.constant dense<0.000000e+00> : vector<256xf32>
    %120 = vector.multi_reduction <add>, %119, %cst_50 [0] : vector<40x256xf32> to vector<256xf32>
    %121 = vector.shape_cast %120 : vector<256xf32> to vector<1x256xf32>
    %122 = arith.mulf %119, %96 : vector<40x256xf32>
    %cst_51 = arith.constant dense<0.000000e+00> : vector<256xf32>
    %123 = vector.multi_reduction <add>, %122, %cst_51 [0] : vector<40x256xf32> to vector<256xf32>
    %124 = vector.shape_cast %123 : vector<256xf32> to vector<1x256xf32>
    %c0_52 = arith.constant 0 : index
    %c0_53 = arith.constant 0 : index
    %125 = vector.load %arg10[%c0_52, %c0_53] : memref<256x256xf32, #tpu.memory_space<vmem>>, vector<256x256xf32>
    %cst_54 = arith.constant dense<0.000000e+00> : vector<1x256xf32>
    %126 = tpu.matmul %121, %125, %cst_54 {dimension_numbers = #tpu.dot_dimension_numbers<[1], [0], [0], [1], [0, 0, 1, 1], [], []>} : vector<1x256xf32>, vector<256x256xf32>, vector<1x256xf32> -> vector<1x256xf32>
    %cst_55 = arith.constant 2.000000e-02 : f32
    %127 = vector.broadcast %cst_55 : f32 to vector<1x256xf32>
    %128 = arith.mulf %126, %127 : vector<1x256xf32>
    %cst_56 = arith.constant dense<0.000000e+00> : vector<1x256xf32>
    %129 = tpu.matmul %124, %125, %cst_56 {dimension_numbers = #tpu.dot_dimension_numbers<[1], [0], [0], [1], [0, 0, 1, 1], [], []>} : vector<1x256xf32>, vector<256x256xf32>, vector<1x256xf32> -> vector<1x256xf32>
    %cst_57 = arith.constant 2.000000e-02 : f32
    %130 = vector.broadcast %cst_57 : f32 to vector<1x256xf32>
    %131 = arith.mulf %129, %130 : vector<1x256xf32>
    %132 = arith.mulf %128, %128 : vector<1x256xf32>
    %133 = arith.subf %131, %132 : vector<1x256xf32>
    %cst_58 = arith.constant 0.000000e+00 : f32
    %134 = vector.broadcast %cst_58 : f32 to vector<1x256xf32>
    %135 = arith.maximumf %133, %134 : vector<1x256xf32>
    %c0_59 = arith.constant 0 : index
    %c0_60 = arith.constant 0 : index
    %136 = vector.load %arg8[%c0_59, %c0_60] : memref<1x256xf32, #tpu.memory_space<vmem>>, vector<1x256xf32>
    %cst_61 = arith.constant 9.99999974E-6 : f32
    %137 = vector.broadcast %cst_61 : f32 to vector<1x256xf32>
    %138 = arith.addf %135, %137 : vector<1x256xf32>
    %139 = math.rsqrt %138 : vector<1x256xf32>
    %140 = arith.mulf %136, %139 : vector<1x256xf32>
    %c0_62 = arith.constant 0 : index
    %c0_63 = arith.constant 0 : index
    %141 = vector.load %arg9[%c0_62, %c0_63] : memref<1x256xf32, #tpu.memory_space<vmem>>, vector<1x256xf32>
    %142 = arith.mulf %128, %140 : vector<1x256xf32>
    %143 = arith.subf %141, %142 : vector<1x256xf32>
    %144 = vector.broadcast %140 : vector<1x256xf32> to vector<40x256xf32>
    %145 = arith.mulf %96, %144 : vector<40x256xf32>
    %146 = vector.broadcast %143 : vector<1x256xf32> to vector<40x256xf32>
    %147 = arith.addf %145, %146 : vector<40x256xf32>
    %148 = math.tanh %147 : vector<40x256xf32>
    %149 = vector.shape_cast %148 : vector<40x256xf32> to vector<5x8x256xf32>
    %150 = vector.extract_strided_slice %149 {offsets = [0, 0, 0], sizes = [1, 8, 256], strides = [1, 1, 1]} : vector<5x8x256xf32> to vector<1x8x256xf32>
    %151 = vector.shape_cast %150 : vector<1x8x256xf32> to vector<8x256xf32>
    %152 = arith.truncf %151 : vector<8x256xf32> to vector<8x256xbf16>
    %c1_64 = arith.constant 1 : index
    %c0_65 = arith.constant 0 : index
    %c0_66 = arith.constant 0 : index
    %153 = vector.load %arg11[%c1_64, %c0_65, %c0_66] : memref<3x256x128xbf16, #tpu.memory_space<vmem>>, vector<1x256x128xbf16>
    %154 = vector.shape_cast %153 : vector<1x256x128xbf16> to vector<256x128xbf16>
    %cst_67 = arith.constant dense<0.000000e+00> : vector<8x128xf32>
    %155 = tpu.matmul %152, %154, %cst_67 {dimension_numbers = #tpu.dot_dimension_numbers<[1], [0], [0], [1], [0, 0, 1, 1], [], []>} : vector<8x256xbf16>, vector<256x128xbf16>, vector<8x128xf32> -> vector<8x128xf32>
    %156 = vector.extract_strided_slice %149 {offsets = [1, 0, 0], sizes = [1, 8, 256], strides = [1, 1, 1]} : vector<5x8x256xf32> to vector<1x8x256xf32>
    %157 = vector.shape_cast %156 : vector<1x8x256xf32> to vector<8x256xf32>
    %158 = arith.truncf %157 : vector<8x256xf32> to vector<8x256xbf16>
    %c2_68 = arith.constant 2 : index
    %c0_69 = arith.constant 0 : index
    %c0_70 = arith.constant 0 : index
    %159 = vector.load %arg11[%c2_68, %c0_69, %c0_70] : memref<3x256x128xbf16, #tpu.memory_space<vmem>>, vector<1x256x128xbf16>
    %160 = vector.shape_cast %159 : vector<1x256x128xbf16> to vector<256x128xbf16>
    %cst_71 = arith.constant dense<0.000000e+00> : vector<8x128xf32>
    %161 = tpu.matmul %158, %160, %cst_71 {dimension_numbers = #tpu.dot_dimension_numbers<[1], [0], [0], [1], [0, 0, 1, 1], [], []>} : vector<8x256xbf16>, vector<256x128xbf16>, vector<8x128xf32> -> vector<8x128xf32>
    %162 = arith.addf %155, %161 : vector<8x128xf32>
    %163 = vector.extract_strided_slice %149 {offsets = [1, 0, 0], sizes = [1, 8, 256], strides = [1, 1, 1]} : vector<5x8x256xf32> to vector<1x8x256xf32>
    %164 = vector.shape_cast %163 : vector<1x8x256xf32> to vector<8x256xf32>
    %165 = arith.truncf %164 : vector<8x256xf32> to vector<8x256xbf16>
    %c0_72 = arith.constant 0 : index
    %c0_73 = arith.constant 0 : index
    %c0_74 = arith.constant 0 : index
    %166 = vector.load %arg11[%c0_72, %c0_73, %c0_74] : memref<3x256x128xbf16, #tpu.memory_space<vmem>>, vector<1x256x128xbf16>
    %167 = vector.shape_cast %166 : vector<1x256x128xbf16> to vector<256x128xbf16>
    %cst_75 = arith.constant dense<0.000000e+00> : vector<8x128xf32>
    %168 = tpu.matmul %165, %167, %cst_75 {dimension_numbers = #tpu.dot_dimension_numbers<[1], [0], [0], [1], [0, 0, 1, 1], [], []>} : vector<8x256xbf16>, vector<256x128xbf16>, vector<8x128xf32> -> vector<8x128xf32>
    %169 = vector.extract_strided_slice %149 {offsets = [2, 0, 0], sizes = [1, 8, 256], strides = [1, 1, 1]} : vector<5x8x256xf32> to vector<1x8x256xf32>
    %170 = vector.shape_cast %169 : vector<1x8x256xf32> to vector<8x256xf32>
    %171 = arith.truncf %170 : vector<8x256xf32> to vector<8x256xbf16>
    %c1_76 = arith.constant 1 : index
    %c0_77 = arith.constant 0 : index
    %c0_78 = arith.constant 0 : index
    %172 = vector.load %arg11[%c1_76, %c0_77, %c0_78] : memref<3x256x128xbf16, #tpu.memory_space<vmem>>, vector<1x256x128xbf16>
    %173 = vector.shape_cast %172 : vector<1x256x128xbf16> to vector<256x128xbf16>
    %cst_79 = arith.constant dense<0.000000e+00> : vector<8x128xf32>
    %174 = tpu.matmul %171, %173, %cst_79 {dimension_numbers = #tpu.dot_dimension_numbers<[1], [0], [0], [1], [0, 0, 1, 1], [], []>} : vector<8x256xbf16>, vector<256x128xbf16>, vector<8x128xf32> -> vector<8x128xf32>
    %175 = arith.addf %168, %174 : vector<8x128xf32>
    %176 = vector.extract_strided_slice %149 {offsets = [3, 0, 0], sizes = [1, 8, 256], strides = [1, 1, 1]} : vector<5x8x256xf32> to vector<1x8x256xf32>
    %177 = vector.shape_cast %176 : vector<1x8x256xf32> to vector<8x256xf32>
    %178 = arith.truncf %177 : vector<8x256xf32> to vector<8x256xbf16>
    %c2_80 = arith.constant 2 : index
    %c0_81 = arith.constant 0 : index
    %c0_82 = arith.constant 0 : index
    %179 = vector.load %arg11[%c2_80, %c0_81, %c0_82] : memref<3x256x128xbf16, #tpu.memory_space<vmem>>, vector<1x256x128xbf16>
    %180 = vector.shape_cast %179 : vector<1x256x128xbf16> to vector<256x128xbf16>
    %cst_83 = arith.constant dense<0.000000e+00> : vector<8x128xf32>
    %181 = tpu.matmul %178, %180, %cst_83 {dimension_numbers = #tpu.dot_dimension_numbers<[1], [0], [0], [1], [0, 0, 1, 1], [], []>} : vector<8x256xbf16>, vector<256x128xbf16>, vector<8x128xf32> -> vector<8x128xf32>
    %182 = arith.addf %175, %181 : vector<8x128xf32>
    %183 = vector.extract_strided_slice %149 {offsets = [3, 0, 0], sizes = [1, 8, 256], strides = [1, 1, 1]} : vector<5x8x256xf32> to vector<1x8x256xf32>
    %184 = vector.shape_cast %183 : vector<1x8x256xf32> to vector<8x256xf32>
    %185 = arith.truncf %184 : vector<8x256xf32> to vector<8x256xbf16>
    %c0_84 = arith.constant 0 : index
    %c0_85 = arith.constant 0 : index
    %c0_86 = arith.constant 0 : index
    %186 = vector.load %arg11[%c0_84, %c0_85, %c0_86] : memref<3x256x128xbf16, #tpu.memory_space<vmem>>, vector<1x256x128xbf16>
    %187 = vector.shape_cast %186 : vector<1x256x128xbf16> to vector<256x128xbf16>
    %cst_87 = arith.constant dense<0.000000e+00> : vector<8x128xf32>
    %188 = tpu.matmul %185, %187, %cst_87 {dimension_numbers = #tpu.dot_dimension_numbers<[1], [0], [0], [1], [0, 0, 1, 1], [], []>} : vector<8x256xbf16>, vector<256x128xbf16>, vector<8x128xf32> -> vector<8x128xf32>
    %189 = vector.extract_strided_slice %149 {offsets = [4, 0, 0], sizes = [1, 8, 256], strides = [1, 1, 1]} : vector<5x8x256xf32> to vector<1x8x256xf32>
    %190 = vector.shape_cast %189 : vector<1x8x256xf32> to vector<8x256xf32>
    %191 = arith.truncf %190 : vector<8x256xf32> to vector<8x256xbf16>
    %c1_88 = arith.constant 1 : index
    %c0_89 = arith.constant 0 : index
    %c0_90 = arith.constant 0 : index
    %192 = vector.load %arg11[%c1_88, %c0_89, %c0_90] : memref<3x256x128xbf16, #tpu.memory_space<vmem>>, vector<1x256x128xbf16>
    %193 = vector.shape_cast %192 : vector<1x256x128xbf16> to vector<256x128xbf16>
    %cst_91 = arith.constant dense<0.000000e+00> : vector<8x128xf32>
    %194 = tpu.matmul %191, %193, %cst_91 {dimension_numbers = #tpu.dot_dimension_numbers<[1], [0], [0], [1], [0, 0, 1, 1], [], []>} : vector<8x256xbf16>, vector<256x128xbf16>, vector<8x128xf32> -> vector<8x128xf32>
    %195 = arith.addf %188, %194 : vector<8x128xf32>
    %196 = tpu.concatenate %162, %182, %195 in 0 : vector<8x128xf32>, vector<8x128xf32>, vector<8x128xf32> -> vector<24x128xf32>
    %c0_92 = arith.constant 0 : index
    %c0_93 = arith.constant 0 : index
    %197 = vector.load %arg12[%c0_92, %c0_93] : memref<1x128xf32, #tpu.memory_space<vmem>>, vector<1x128xf32>
    %198 = vector.broadcast %197 : vector<1x128xf32> to vector<24x128xf32>
    %199 = arith.addf %196, %198 : vector<24x128xf32>
    %200 = tpu.iota {dimensions = array<i32: 0>} : vector<24x1xi32>
    %c8_i32_94 = arith.constant 8 : i32
    %c0_i32_95 = arith.constant 0 : i32
    %201 = arith.cmpi eq, %c8_i32_94, %c0_i32_95 : i32
    %c1_i32_96 = arith.constant 1 : i32
    %202 = arith.select %201, %c1_i32_96, %c8_i32_94 : i32
    %203 = vector.broadcast %202 : i32 to vector<24x1xi32>
    %204 = arith.remsi %200, %203 : vector<24x1xi32>
    %c0_i32_97 = arith.constant 0 : i32
    %205 = vector.broadcast %c0_i32_97 : i32 to vector<24x1xi32>
    %206 = arith.cmpi ne, %204, %205 : vector<24x1xi32>
    %c0_i32_98 = arith.constant 0 : i32
    %207 = vector.broadcast %c0_i32_98 : i32 to vector<24x1xi32>
    %208 = arith.cmpi slt, %204, %207 : vector<24x1xi32>
    %c0_i32_99 = arith.constant 0 : i32
    %209 = arith.cmpi slt, %202, %c0_i32_99 : i32
    %210 = vector.broadcast %209 : i1 to vector<24x1xi1>
    %211 = vector.broadcast %210 : vector<24x1xi1> to vector<24x1xi1>
    %212 = arith.xori %208, %211 : vector<24x1xi1>
    %213 = arith.andi %212, %206 : vector<24x1xi1>
    %214 = vector.broadcast %202 : i32 to vector<24x1xi32>
    %215 = arith.addi %204, %214 : vector<24x1xi32>
    %216 = arith.select %213, %215, %204 : vector<24x1xi1>, vector<24x1xi32>
    %c2_i32_100 = arith.constant 2 : i32
    %217 = vector.broadcast %c2_i32_100 : i32 to vector<24x1xi32>
    %218 = arith.cmpi slt, %216, %217 : vector<24x1xi32>
    %219 = arith.extui %218 : vector<24x1xi1> to vector<24x1xi32>
    %220 = arith.sitofp %219 : vector<24x1xi32> to vector<24x1xf32>
    %221 = vector.broadcast %220 : vector<24x1xf32> to vector<24x128xf32>
    %222 = arith.mulf %199, %221 : vector<24x128xf32>
    %cst_101 = arith.constant dense<0.000000e+00> : vector<128xf32>
    %223 = vector.multi_reduction <add>, %222, %cst_101 [0] : vector<24x128xf32> to vector<128xf32>
    %224 = vector.shape_cast %223 : vector<128xf32> to vector<1x128xf32>
    %225 = arith.mulf %222, %199 : vector<24x128xf32>
    %cst_102 = arith.constant dense<0.000000e+00> : vector<128xf32>
    %226 = vector.multi_reduction <add>, %225, %cst_102 [0] : vector<24x128xf32> to vector<128xf32>
    %227 = vector.shape_cast %226 : vector<128xf32> to vector<1x128xf32>
    %c0_103 = arith.constant 0 : index
    %c0_104 = arith.constant 0 : index
    %228 = vector.load %arg15[%c0_103, %c0_104] : memref<128x128xf32, #tpu.memory_space<vmem>>, vector<128x128xf32>
    %cst_105 = arith.constant dense<0.000000e+00> : vector<1x128xf32>
    %229 = tpu.matmul %224, %228, %cst_105 {dimension_numbers = #tpu.dot_dimension_numbers<[1], [0], [0], [1], [0, 0, 1, 1], [], []>} : vector<1x128xf32>, vector<128x128xf32>, vector<1x128xf32> -> vector<1x128xf32>
    %cst_106 = arith.constant 0.055555556 : f32
    %230 = vector.broadcast %cst_106 : f32 to vector<1x128xf32>
    %231 = arith.mulf %229, %230 : vector<1x128xf32>
    %cst_107 = arith.constant dense<0.000000e+00> : vector<1x128xf32>
    %232 = tpu.matmul %227, %228, %cst_107 {dimension_numbers = #tpu.dot_dimension_numbers<[1], [0], [0], [1], [0, 0, 1, 1], [], []>} : vector<1x128xf32>, vector<128x128xf32>, vector<1x128xf32> -> vector<1x128xf32>
    %cst_108 = arith.constant 0.055555556 : f32
    %233 = vector.broadcast %cst_108 : f32 to vector<1x128xf32>
    %234 = arith.mulf %232, %233 : vector<1x128xf32>
    %235 = arith.mulf %231, %231 : vector<1x128xf32>
    %236 = arith.subf %234, %235 : vector<1x128xf32>
    %cst_109 = arith.constant 0.000000e+00 : f32
    %237 = vector.broadcast %cst_109 : f32 to vector<1x128xf32>
    %238 = arith.maximumf %236, %237 : vector<1x128xf32>
    %c0_110 = arith.constant 0 : index
    %c0_111 = arith.constant 0 : index
    %239 = vector.load %arg13[%c0_110, %c0_111] : memref<1x128xf32, #tpu.memory_space<vmem>>, vector<1x128xf32>
    %cst_112 = arith.constant 9.99999974E-6 : f32
    %240 = vector.broadcast %cst_112 : f32 to vector<1x128xf32>
    %241 = arith.addf %238, %240 : vector<1x128xf32>
    %242 = math.rsqrt %241 : vector<1x128xf32>
    %243 = arith.mulf %239, %242 : vector<1x128xf32>
    %c0_113 = arith.constant 0 : index
    %c0_114 = arith.constant 0 : index
    %244 = vector.load %arg14[%c0_113, %c0_114] : memref<1x128xf32, #tpu.memory_space<vmem>>, vector<1x128xf32>
    %245 = arith.mulf %231, %243 : vector<1x128xf32>
    %246 = arith.subf %244, %245 : vector<1x128xf32>
    %247 = vector.broadcast %243 : vector<1x128xf32> to vector<24x128xf32>
    %248 = arith.mulf %199, %247 : vector<24x128xf32>
    %249 = vector.broadcast %246 : vector<1x128xf32> to vector<24x128xf32>
    %250 = arith.addf %248, %249 : vector<24x128xf32>
    %251 = math.tanh %250 : vector<24x128xf32>
    %252 = vector.extract_strided_slice %251 {offsets = [0, 0], sizes = [8, 128], strides = [1, 1]} : vector<24x128xf32> to vector<8x128xf32>
    %253 = vector.extract_strided_slice %251 {offsets = [8, 0], sizes = [8, 128], strides = [1, 1]} : vector<24x128xf32> to vector<8x128xf32>
    %254 = vector.extract_strided_slice %251 {offsets = [16, 0], sizes = [8, 128], strides = [1, 1]} : vector<24x128xf32> to vector<8x128xf32>
    %255 = tpu.concatenate %252, %253, %254 in 1 : vector<8x128xf32>, vector<8x128xf32>, vector<8x128xf32> -> vector<8x384xf32>
    %256 = arith.truncf %255 : vector<8x384xf32> to vector<8x384xbf16>
    %c0_115 = arith.constant 0 : index
    %c0_116 = arith.constant 0 : index
    %257 = vector.load %arg16[%c0_115, %c0_116] : memref<384x256xbf16, #tpu.memory_space<vmem>>, vector<384x256xbf16>
    %cst_117 = arith.constant dense<0.000000e+00> : vector<8x256xf32>
    %258 = tpu.matmul %256, %257, %cst_117 {dimension_numbers = #tpu.dot_dimension_numbers<[1], [0], [0], [1], [0, 0, 1, 1], [], []>} : vector<8x384xbf16>, vector<384x256xbf16>, vector<8x256xf32> -> vector<8x256xf32>
    %c0_118 = arith.constant 0 : index
    %c0_119 = arith.constant 0 : index
    %259 = vector.load %arg17[%c0_118, %c0_119] : memref<1x256xf32, #tpu.memory_space<vmem>>, vector<1x256xf32>
    %260 = vector.broadcast %259 : vector<1x256xf32> to vector<8x256xf32>
    %261 = arith.addf %258, %260 : vector<8x256xf32>
    %262 = math.tanh %261 : vector<8x256xf32>
    %263 = arith.truncf %262 : vector<8x256xf32> to vector<8x256xbf16>
    %c0_120 = arith.constant 0 : index
    %c0_121 = arith.constant 0 : index
    %264 = vector.load %arg18[%c0_120, %c0_121] : memref<256x2xbf16, #tpu.memory_space<vmem>>, vector<256x2xbf16>
    %cst_122 = arith.constant dense<0.000000e+00> : vector<8x2xf32>
    %265 = tpu.matmul %263, %264, %cst_122 {dimension_numbers = #tpu.dot_dimension_numbers<[1], [0], [0], [1], [0, 0, 1, 1], [], []>} : vector<8x256xbf16>, vector<256x2xbf16>, vector<8x2xf32> -> vector<8x2xf32>
    %c0_123 = arith.constant 0 : index
    %c0_124 = arith.constant 0 : index
    %266 = vector.load %arg19[%c0_123, %c0_124] : memref<1x2xf32, #tpu.memory_space<vmem>>, vector<1x2xf32>
    %267 = vector.broadcast %266 : vector<1x2xf32> to vector<8x2xf32>
    %268 = arith.addf %265, %267 : vector<8x2xf32>
    %269 = vector.extract_strided_slice %268 {offsets = [0, 0], sizes = [2, 2], strides = [1, 1]} : vector<8x2xf32> to vector<2x2xf32>
    %c0_125 = arith.constant 0 : index
    %c0_126 = arith.constant 0 : index
    %270 = vector.load %arg20[%c0_125, %c0_126] : memref<2x2xf32, #tpu.memory_space<vmem>>, vector<2x2xf32>
    tpu.vector_store %arg20[%c0_125, %c0_126], %269 {strides = array<i32>} : memref<2x2xf32, #tpu.memory_space<vmem>>, vector<2x2xf32>,
    return
  }
}

</mosaic_0001>

<bundles_post_ra>
// kernel: policy_network_forward.1
= control target key start
LH: loop header
LB: loop body
LE: loop exit
PB: predicated region body
PF: predicated region fallthrough
CT: control target
= control target key end

     0   :  { %s8941_s0 = inlined_call_operand.vmem [shape: f32[16,2,8,128], index: 0, kind: input, shape index: {}]   ;;  %s8942_s1 = inlined_call_operand.hbm [shape: bf16[640,256], index: 1, kind: input, shape index: {}]   ;;  %s8943_s2 = inlined_call_operand.vmem [shape: f32[1,256], index: 2, kind: input, shape index: {}]   ;;  %s8944_s3 = inlined_call_operand.vmem [shape: f32[1,256], index: 3, kind: input, shape index: {}]   ;;  %s8945_s4 = inlined_call_operand.vmem [shape: f32[1,256], index: 4, kind: input, shape index: {}]   ;;  %s8946_s5 = inlined_call_operand.hbm [shape: f32[256,256], index: 5, kind: input, shape index: {}]   ;;  %s8947_s6 = inlined_call_operand.vmem [shape: bf16[1280,256], index: 6, kind: input, shape index: {}]   ;;  %s8948_s7 = inlined_call_operand.vmem [shape: f32[1,256], index: 7, kind: input, shape index: {}]   ;;  %s8949_s8 = inlined_call_operand.vmem [shape: f32[1,256], index: 8, kind: input, shape index: {}]   ;;  %s8950_s9 = inlined_call_operand.vmem [shape: f32[1,256], index: 9, kind: input, shape index: {}]   ;;  %s8951_s10 = inlined_call_operand.hbm [shape: f32[256,256], index: 10, kind: input, shape index: {}]   ;;  %s8952_s11 = inlined_call_operand.hbm [shape: bf16[3,256,128], index: 11, kind: input, shape index: {}]   ;;  %s8953_s12 = inlined_call_operand.vmem [shape: f32[1,128], index: 12, kind: input, shape index: {}]   ;;  %s8954_s13 = inlined_call_operand.vmem [shape: f32[1,128], index: 13, kind: input, shape index: {}]   ;;  %s8955_s14 = inlined_call_operand.vmem [shape: f32[1,128], index: 14, kind: input, shape index: {}]   ;;  %s8956_s15 = inlined_call_operand.hbm [shape: f32[128,128], index: 15, kind: input, shape index: {}]   ;;  %s8957_s16 = inlined_call_operand.hbm [shape: bf16[384,256], index: 16, kind: input, shape index: {}]   ;;  %s8958_s17 = inlined_call_operand.vmem [shape: f32[1,256], index: 17, kind: input, shape index: {}]   ;;  %s8959_s18 = inlined_call_operand.vmem [shape: bf16[256,2], index: 18, kind: input, shape index: {}]   ;;  %s8960_s19 = inlined_call_operand.vmem [shape: f32[1,2], index: 19, kind: input, shape index: {}]   ;;  %s8961_s20 = inlined_call_operand.hbm [shape: f32[2,2], index: 20, kind: output, shape index: {}]  }
   0x1   :  { %9034 = sst [smem:[#allocation61_spill]] %s8941_s0 }
   0x2   :  { %9035 = sst [smem:[#allocation62_spill]] %s8942_s1 }
   0x3   :  { %9036 = sst [smem:[#allocation63_spill]] %s8943_s2 }
   0x4   :  { %9037 = sst [smem:[#allocation64_spill]] %s8944_s3 }
   0x5   :  { %9038 = sst [smem:[#allocation65_spill]] %s8945_s4 }
   0x6   :  { %25 = vsyncpa [#allocation3], 0 }
   0x7   :  { %26 = vsyncpa [#allocation6], 0 }
   0x8   :  { %27 = vsyncpa [#allocation9], 0 }
   0x9   :  { %28 = vsyncpa [#allocation12], 0 }
   0xa   :  { %29 = vsyncpa [#allocation4], 0  ;;  %s6865_s1 = smov [#allocation5]   ;;  %s6701_s2 = scalar_lea.hbm %s8946_s5, 8192 }
   0xb   :  { %s55_s22 = sshll.u32 %s6865_s1, 4  ;;  %p6702_p0 = scmp.ne.s32.totalorder %s8946_s5, %s6701_s2  ;;  %s56_s22 = int_to_ptr.vmem [resolvable:$true] %s55_s22 }
   0xc   :  { %p6705_p1 = scmp.lt.u32.totalorder %s6701_s2, %s8946_s5 }
   0xe   :  { %p6707_p2 = pnand %p6705_p1, %p6702_p0 }
  0x10   :  { %6710 = shalt.err (!%p6707_p2)
}
  0x11   :  { %s6711_s28 = scalar_lea.vmem %s56_s22, 8192  ;;  %p6716_p4 = scmp.lt.s32.totalorder %s56_s22, %s56_s22 }
  0x12   :  { %p6712_p3 = scmp.ne.s32.totalorder %s56_s22, %s6711_s28  ;;  %p6717_p5 = scmp.lt.s32.totalorder %s6711_s28, %s6711_s28 }
  0x14   :  { %p6718_p6 = por %p6717_p5, %p6716_p4 }
  0x16   :  { %p6719_p7 = pnand %p6718_p6, %p6712_p3 }
  0x18   :  { %6722 = shalt.err (!%p6719_p7)
}
  0x19   :  { %s8964_s4 = smov 256   ;;  %s8965_s29 = smov 16  }
  0x1a   :  { %61 = dma.hbm_to_vmem [thread:$0]  %s8946_s5, 8192, %s56_s22, [#allocation6], %s8964_s4, %s8964_s4, %s8965_s29  }
  0x1b   :  { %s6868_s21 = smov [#allocation8]   ;;  %s6723_s2 = scalar_lea.hbm %s8952_s11, 6144 }
  0x1c   :  { %s87_s1 = sshll.u32 %s6868_s21, 4  ;;  %p6724_p8 = scmp.ne.s32.totalorder %s8952_s11, %s6723_s2  ;;  %s88_s1 = int_to_ptr.vmem [resolvable:$true] %s87_s1 }
  0x1d   :  { %p6727_p9 = scmp.lt.u32.totalorder %s6723_s2, %s8952_s11 }
  0x1f   :  { %p6729_p10 = pnand %p6727_p9, %p6724_p8 }
  0x21   :  { %6732 = shalt.err (!%p6729_p10)
}
  0x22   :  { %s6733_s28 = scalar_lea.vmem %s88_s1, 6144  ;;  %p6738_p12 = scmp.lt.s32.totalorder %s88_s1, %s88_s1 }
  0x23   :  { %p6734_p11 = scmp.ne.s32.totalorder %s88_s1, %s6733_s28  ;;  %p6739_p13 = scmp.lt.s32.totalorder %s6733_s28, %s6733_s28 }
  0x25   :  { %p6740_p0 = por %p6739_p13, %p6738_p12 }
  0x27   :  { %p6741_p1 = pnand %p6740_p0, %p6734_p11 }
  0x29   :  { %6744 = shalt.err (!%p6741_p1)
}
  0x2a   :  { %s6869_s5 = smov 64   ;;  %s6870_s22 = smov 4  }
  0x2b   :  { %93 = dma.hbm_to_vmem [thread:$0]  %s8952_s11, 6144, %s88_s1, [#allocation9], %s6869_s5, %s6869_s5, %s6870_s22  }
  0x2c   :  { %s6871_s21 = smov [#allocation2]   ;;  %s9039_s25 = sld [smem:[#allocation62_spill]] }
  0x2d   :  { %s37_s23 = sshll.u32 %s6871_s21, 4  ;;  %s38_s23 = int_to_ptr.vmem [resolvable:$true] %s37_s23 }
  0x32   :  { %s6745_s3 = scalar_lea.hbm %s9039_s25, 10240 }
  0x33   :  { %p6746_p2 = scmp.ne.s32.totalorder %s9039_s25, %s6745_s3  ;;  %p6749_p3 = scmp.lt.u32.totalorder %s6745_s3, %s9039_s25 }
  0x35   :  { %p6751_p4 = pnand %p6749_p3, %p6746_p2 }
  0x37   :  { %6754 = shalt.err (!%p6751_p4)
}
  0x38   :  { %s6755_s29 = scalar_lea.vmem %s38_s23, 10240  ;;  %p6760_p6 = scmp.lt.s32.totalorder %s38_s23, %s38_s23 }
  0x39   :  { %p6756_p5 = scmp.ne.s32.totalorder %s38_s23, %s6755_s29  ;;  %p6761_p7 = scmp.lt.s32.totalorder %s6755_s29, %s6755_s29 }
  0x3b   :  { %p6762_p8 = por %p6761_p7, %p6760_p6 }
  0x3d   :  { %p6763_p9 = pnand %p6762_p8, %p6756_p5 }
  0x3f   :  { %6766 = shalt.err (!%p6763_p9)
}
  0x40   :  { %s6872_s11 = smov 128   ;;  %s6873_s1 = smov 8  }
  0x41   :  { %43 = dma.hbm_to_vmem [thread:$0]  %s9039_s25, 10240, %s38_s23, [#allocation3], %s6872_s11, %s6872_s11, %s6873_s1  }
  0x42   :  { %s6874_s4 = smov [#allocation7]   ;;  %s6875_s0 = smov [#allocation10]  }
  0x43   :  { %s75_s30 = sshll.u32 %s6874_s4, 4  ;;  %s105_s21 = sshll.u32 %s6875_s0, 4  ;;  %s76_s30 = int_to_ptr.vmem [resolvable:$true] %s75_s30  ;;  %s106_s21 = int_to_ptr.vmem [resolvable:$true] %s105_s21 }
  0x44   :  { %s6767_s29 = scalar_lea.hbm %s8951_s10, 8192 }
  0x45   :  { %p6768_p10 = scmp.ne.s32.totalorder %s8951_s10, %s6767_s29  ;;  %p6771_p11 = scmp.lt.u32.totalorder %s6767_s29, %s8951_s10 }
  0x47   :  { %p6773_p12 = pnand %p6771_p11, %p6768_p10 }
  0x49   :  { %6776 = shalt.err (!%p6773_p12)
}
  0x4a   :  { %s6777_s23 = scalar_lea.vmem %s76_s30, 8192  ;;  %p6782_p0 = scmp.lt.s32.totalorder %s76_s30, %s76_s30 }
  0x4b   :  { %p6778_p13 = scmp.ne.s32.totalorder %s76_s30, %s6777_s23  ;;  %p6783_p1 = scmp.lt.s32.totalorder %s6777_s23, %s6777_s23 }
  0x4d   :  { %p6784_p2 = por %p6783_p1, %p6782_p0 }
  0x4f   :  { %p6785_p3 = pnand %p6784_p2, %p6778_p13 }
  0x51   :  { %6788 = shalt.err (!%p6785_p3)
}
  0x52   :  { %s9040_s25 = smov 16   ;;  %s9041_s5 = smov 256  }
  0x53   :  { %81 = dma.hbm_to_vmem [thread:$0]  %s8951_s10, 8192, %s76_s30, [#allocation6], %s9041_s5, %s9041_s5, %s9040_s25  }
  0x54   :  { %s6789_s2 = scalar_lea.hbm %s8956_s15, 2048 }
  0x55   :  { %p6790_p4 = scmp.ne.s32.totalorder %s8956_s15, %s6789_s2  ;;  %p6793_p5 = scmp.lt.u32.totalorder %s6789_s2, %s8956_s15 }
  0x57   :  { %p6795_p6 = pnand %p6793_p5, %p6790_p4 }
  0x59   :  { %6798 = shalt.err (!%p6795_p6)
}
  0x5a   :  { %s6799_s28 = scalar_lea.vmem %s106_s21, 2048  ;;  %p6804_p8 = scmp.lt.s32.totalorder %s106_s21, %s106_s21 }
  0x5b   :  { %p6800_p7 = scmp.ne.s32.totalorder %s106_s21, %s6799_s28  ;;  %p6805_p9 = scmp.lt.s32.totalorder %s6799_s28, %s6799_s28 }
  0x5d   :  { %p6806_p10 = por %p6805_p9, %p6804_p8 }
  0x5f   :  { %p6807_p11 = pnand %p6806_p10, %p6800_p7 }
  0x61   :  { %6810 = shalt.err (!%p6807_p11)
}
  0x62   :  { %111 = dma.hbm_to_vmem [thread:$0]  %s8956_s15, 2048, %s106_s21, [#allocation9], %s6872_s11, %s6872_s11, %s6873_s1  }
  0x63   :  { %s6876_s23 = smov [#allocation11]   ;;  %s6811_s4 = scalar_lea.hbm %s8957_s16, 6144 }
  0x64   :  { %s117_s25 = sshll.u32 %s6876_s23, 4  ;;  %p6812_p12 = scmp.ne.s32.totalorder %s8957_s16, %s6811_s4  ;;  %s118_s25 = int_to_ptr.vmem [resolvable:$true] %s117_s25 }
  0x65   :  { %p6815_p13 = scmp.lt.u32.totalorder %s6811_s4, %s8957_s16 }
  0x67   :  { %p6817_p0 = pnand %p6815_p13, %p6812_p12 }
  0x69   :  { %6820 = shalt.err (!%p6817_p0)
}
  0x6a   :  { %s6821_s3 = scalar_lea.vmem %s118_s25, 6144  ;;  %p6826_p2 = scmp.lt.s32.totalorder %s118_s25, %s118_s25 }
  0x6b   :  { %p6822_p1 = scmp.ne.s32.totalorder %s118_s25, %s6821_s3  ;;  %p6827_p3 = scmp.lt.s32.totalorder %s6821_s3, %s6821_s3 }
  0x6d   :  { %p6828_p4 = por %p6827_p3, %p6826_p2 }
  0x6f   :  { %p6829_p5 = pnand %p6828_p4, %p6822_p1 }
  0x71   :  { %6832 = shalt.err (!%p6829_p5)
}
  0x72   :  { %123 = dma.hbm_to_vmem [thread:$0]  %s8957_s16, 6144, %s118_s25, [#allocation12], %s6872_s11, %s6872_s11, %s6873_s1  }
  0x73   :  { %6855 = dma.done.wait [#allocation3], 10240  }
  0x74   :  { %6856 = vsyncadd [#allocation3], 4294957056 }
  0x75   :  { %6857 = dma.done.wait [#allocation6], 16384  }
  0x76   :  { %6858 = vsyncadd [#allocation6], 4294950912 }
  0x77   :  { %6859 = dma.done.wait [#allocation9], 8192  }
  0x78   :  { %6860 = vsyncadd [#allocation9], 4294959104 }
  0x79   :  { %6861 = dma.done.wait [#allocation12], 6144  }
  0x7a   :  { %6862 = vsyncadd [#allocation12], 4294961152  ;;  %v6113_v0 = vld [vmem:[#allocation2 + $0x4] ss:$8 sps:$4 sm:$0xff]   ;;  %v6115_v1 = vld [vmem:[#allocation2] ss:$8 sps:$4 sm:$0xff]  }
  0x7b   :  { %750 = vmatprep.subr.bf16.mxu0 %v6113_v0  ;;  %v6116_v2 = vld [vmem:[#allocation2 + $0x14] ss:$8 sps:$4 sm:$0xff]   ;;  %v6118_v3 = vld [vmem:[#allocation2 + $0x10] ss:$8 sps:$4 sm:$0xff]   ;;  %v6119_v4 = vld [vmem:[#allocation2 + $0x24] ss:$8 sps:$4 sm:$0xff]  }
  0x7c   :  { %751 = vmatpush1.bf16.msra.mxu0 %v6115_v1  ;;  %v6121_v5 = vld [vmem:[#allocation2 + $0x20] ss:$8 sps:$4 sm:$0xff]   ;;  %v6122_v6 = vld [vmem:[#allocation2 + $0x34] ss:$8 sps:$4 sm:$0xff]   ;;  %v6124_v7 = vld [vmem:[#allocation2 + $0x30] ss:$8 sps:$4 sm:$0xff]  }
  0x7d   :  { %752 = vmatprep.subr.bf16.mxu0 %v6116_v2  ;;  %v6125_v8 = vld [vmem:[#allocation2 + $0x44] ss:$8 sps:$4 sm:$0xff]   ;;  %v6127_v9 = vld [vmem:[#allocation2 + $0x40] ss:$8 sps:$4 sm:$0xff]   ;;  %v6128_v10 = vld [vmem:[#allocation2 + $0x54] ss:$8 sps:$4 sm:$0xff]  }
  0x7e   :  { %v6130_v11 = vld [vmem:[#allocation2 + $0x50] ss:$8 sps:$4 sm:$0xff]   ;;  %v6131_v12 = vld [vmem:[#allocation2 + $0x64] ss:$8 sps:$4 sm:$0xff]   ;;  %s9042_s1 = sld [smem:[#allocation61_spill]]  ;;  %s9063_s30 = sld [smem:[#allocation63_spill]] }
  0x7f   :  { %v6133_v16 = vld [vmem:[#allocation2 + $0x60] ss:$8 sps:$4 sm:$0xff]   ;;  %v6134_v17 = vld [vmem:[#allocation2 + $0x74] ss:$8 sps:$4 sm:$0xff]   ;;  %v6136_v18 = vld [vmem:[#allocation2 + $0x70] ss:$8 sps:$4 sm:$0xff]  }
  0x80   :  { %753 = vmatpush1.bf16.msra.mxu0 %v6118_v3  ;;  %v6137_v19 = vld [vmem:[#allocation2 + $0x84] ss:$8 sps:$4 sm:$0xff]   ;;  %v6139_v20 = vld [vmem:[#allocation2 + $0x80] ss:$8 sps:$4 sm:$0xff]   ;;  %v6140_v21 = vld [vmem:[#allocation2 + $0x94] ss:$8 sps:$4 sm:$0xff]  }
  0x81   :  { %754 = vmatprep.subr.bf16.mxu0 %v6119_v4  ;;  %v6142_v22 = vld [vmem:[#allocation2 + $0x90] ss:$8 sps:$4 sm:$0xff]   ;;  %v6143_v23 = vld [vmem:[#allocation2 + $0xa4] ss:$8 sps:$4 sm:$0xff]   ;;  %v6145_v24 = vld [vmem:[#allocation2 + $0xa0] ss:$8 sps:$4 sm:$0xff]  }
  0x82   :  { %v6146_v25 = vld [vmem:[#allocation2 + $0xb4] ss:$8 sps:$4 sm:$0xff]   ;;  %v6148_v26 = vld [vmem:[#allocation2 + $0xb0] ss:$8 sps:$4 sm:$0xff]   ;;  %v6149_v27 = vld [vmem:[#allocation2 + $0xc4] ss:$8 sps:$4 sm:$0xff]  }
  0x83   :  { %v6151_v28 = vld [vmem:[#allocation2 + $0xc0] ss:$8 sps:$4 sm:$0xff]   ;;  %v6152_v29 = vld [vmem:[#allocation2 + $0xd4] ss:$8 sps:$4 sm:$0xff]   ;;  %v6154_v30 = vld [vmem:[#allocation2 + $0xd0] ss:$8 sps:$4 sm:$0xff]  }
  0x84   :  { %755 = vmatpush1.bf16.msra.mxu0 %v6121_v5  ;;  %v4939_v13 = vld [vmem:[%s9042_s1 + $0x8] sm:$0xff]  ;;  %v7081_v14 = vld [vmem:[%s9042_s1 + $0x18] sm:$0xff]  ;;  %v149_v36 = vld [vmem:[%s9042_s1] sm:$0xff]  ;;  %s9118_s29 = sld [smem:[#allocation64_spill]]  ;;  %s9123_s21 = sld [smem:[#allocation65_spill]]  ;;  %vm6881_vm14 = vmmov 0  }
  0x85   :  { %756 = vmatprep.subr.bf16.mxu0 %v6122_v6  ;;  %v224_v15 = vpack.c.bf16 %v7081_v14, %v4939_v13  ;;  %v6155_v31 = vld [vmem:[#allocation2 + $0xe4] ss:$8 sps:$4 sm:$0xff]   ;;  %v6157_v32 = vld [vmem:[#allocation2 + $0xe0] ss:$8 sps:$4 sm:$0xff]   ;;  %v6158_v33 = vld [vmem:[#allocation2 + $0xf4] ss:$8 sps:$4 sm:$0xff]  }
  0x86   :  { %v6160_v34 = vld [vmem:[#allocation2 + $0xf0] ss:$8 sps:$4 sm:$0xff]   ;;  %v6163_v35 = vld [vmem:[#allocation2 + $0x104] ss:$8 sps:$4 sm:$0xff]   ;;  %v6161_v40 = vld [vmem:[#allocation2 + $0x100] ss:$8 sps:$4 sm:$0xff]  }
  0x87   :  { %782 = vmatprep.mubr.bf16.mxu0 %v224_v15  ;;  %v7090_v37 = vld [vmem:[%s9042_s1 + $0x10] sm:$0xff]  ;;  %v7095_v38 = vld [vmem:[%s9042_s1 + $0x28] sm:$0xff]  ;;  %v7100_v39 = vld [vmem:[%s9042_s1 + $0x38] sm:$0xff]  ;;  %s6882_s23 = smov [#allocation13]   ;;  %vm4919_vm15 = vcmask 9216  }
  0x88   :  { %757 = vmatpush1.bf16.msra.mxu0 %v6124_v7  ;;  %v223_v41 = vpack.c.bf16 %v7090_v37, %v149_v36  ;;  %v6166_v42 = vld [vmem:[#allocation2 + $0x114] ss:$8 sps:$4 sm:$0xff]   ;;  %v229_v43 = vpack.c.bf16 %v7100_v39, %v7095_v38  ;;  %v6164_v44 = vld [vmem:[#allocation2 + $0x110] ss:$8 sps:$4 sm:$0xff]   ;;  %v7108_v45 = vld [vmem:[%s9042_s1 + $0x20] sm:$0xff]  ;;  %s4927_s25 = sshll.u32 %s6882_s23, 4  ;;  %s4928_s25 = int_to_ptr.vmem [resolvable:$true] %s4927_s25 }
  0x89   :  { %758 = vmatprep.subr.bf16.mxu0 %v6125_v8  ;;  %v7113_v46 = vld [vmem:[%s9042_s1 + $0x30] sm:$0xff]  ;;  %v6169_v47 = vld [vmem:[#allocation2 + $0x124] ss:$8 sps:$4 sm:$0xff]   ;;  %v7123_v49 = vld [vmem:[%s9042_s1 + $0x58] sm:$0xff]  ;;  %s6833_s5 = scalar_lea.vmem %s4928_s25, 32  ;;  %p6838_p7 = scmp.lt.s32.totalorder %s4928_s25, %s4928_s25 }
  0x8a   :  { %v7118_v48 = vld [vmem:[%s9042_s1 + $0x48] sm:$0xff]  ;;  %v6172_v51 = vld [vmem:[#allocation2 + $0x134] ss:$8 sps:$4 sm:$0xff]   ;;  %v7127_v52 = vpack.c.bf16 %v7113_v46, %v7108_v45  ;;  %v6170_v54 = vld [vmem:[#allocation2 + $0x130] ss:$8 sps:$4 sm:$0xff]   ;;  %p6834_p6 = scmp.ne.s32.totalorder %s4928_s25, %s6833_s5  ;;  %p6839_p8 = scmp.lt.s32.totalorder %s6833_s5, %s6833_s5 }
  0x8b   :  { %v6167_v50 = vld [vmem:[#allocation2 + $0x120] ss:$8 sps:$4 sm:$0xff]   ;;  %v234_v53 = vpack.c.bf16 %v7123_v49, %v7118_v48  ;;  %v7139_v56 = vld [vmem:[%s9042_s1 + $0x50] sm:$0xff]  ;;  %v6175_v57 = vld [vmem:[#allocation2 + $0x144] ss:$8 sps:$4 sm:$0xff]  }
  0x8c   :  { %759 = vmatpush1.bf16.msra.mxu0 %v6127_v9  ;;  %v7134_v55 = vld [vmem:[%s9042_s1 + $0x40] sm:$0xff]  ;;  %v7145_v58 = vld [vmem:[%s9042_s1 + $0x68] sm:$0xff]  ;;  %v7150_v59 = vld [vmem:[%s9042_s1 + $0x78] sm:$0xff]  ;;  %p6840_p9 = por %p6839_p8, %p6838_p7 }
  0x8d   :  { %760 = vmatprep.subr.bf16.mxu0 %v6128_v10  ;;  %v6173_v60 = vld [vmem:[#allocation2 + $0x140] ss:$8 sps:$4 sm:$0xff]   ;;  %v6178_v61 = vld [vmem:[#allocation2 + $0x154] ss:$8 sps:$4 sm:$0xff]   ;;  %v7154_v62 = vpack.c.bf16 %v7139_v56, %v7134_v55  ;;  %v239_v63 = vpack.c.bf16 %v7150_v59, %v7145_v58  ;;  %v6176_v0 = vld [vmem:[#allocation2 + $0x150] ss:$8 sps:$4 sm:$0xff]  }
  0x8e   :  { %v7161_v1 = vld [vmem:[%s9042_s1 + $0x60] sm:$0xff]  ;;  %v7166_v2 = vld [vmem:[%s9042_s1 + $0x70] sm:$0xff]  ;;  %v7172_v4 = vld [vmem:[%s9042_s1 + $0x88] sm:$0xff]  ;;  %p6841_p10 = pnand %p6840_p9, %p6834_p6 }
  0x8f   :  { %v6181_v3 = vld [vmem:[#allocation2 + $0x164] ss:$8 sps:$4 sm:$0xff]   ;;  %v7177_v5 = vld [vmem:[%s9042_s1 + $0x98] sm:$0xff]  ;;  %v6179_v6 = vld [vmem:[#allocation2 + $0x160] ss:$8 sps:$4 sm:$0xff]   ;;  %v7181_v8 = vpack.c.bf16 %v7166_v2, %v7161_v1 }
  0x90   :  { %761 = vmatpush1.bf16.msra.mxu0 %v6130_v11  ;;  %v6184_v7 = vld [vmem:[#allocation2 + $0x174] ss:$8 sps:$4 sm:$0xff]   ;;  %v244_v9 = vpack.c.bf16 %v7177_v5, %v7172_v4  ;;  %v6182_v10 = vld [vmem:[#allocation2 + $0x170] ss:$8 sps:$4 sm:$0xff]   ;;  %v7188_v11 = vld [vmem:[%s9042_s1 + $0x80] sm:$0xff] }
  0x91   :  { %762 = vmatprep.subr.bf16.mxu0 %v6131_v12  ;;  %v7193_v12 = vld [vmem:[%s9042_s1 + $0x90] sm:$0xff]  ;;  %v6187_v13 = vld [vmem:[#allocation2 + $0x184] ss:$8 sps:$4 sm:$0xff]  }
  0x92   :  { %v7199_v15 = vld [vmem:[%s9042_s1 + $0xa8] sm:$0xff]  ;;  %v6202_v36 = vld [vmem:[#allocation2 + $0x1d4] ss:$8 sps:$4 sm:$0xff]  }
  0x94   :  { %763 = vmatpush1.bf16.msra.mxu0 %v6133_v16  ;;  %v7204_v16 = vld [vmem:[%s9042_s1 + $0xb8] sm:$0xff] }
  0x95   :  { %764 = vmatprep.subr.bf16.mxu0 %v6134_v17  ;;  %v6185_v17 = vld [vmem:[#allocation2 + $0x180] ss:$8 sps:$4 sm:$0xff]  }
  0x98   :  { %765 = vmatpush1.bf16.msra.mxu0 %v6136_v18  ;;  %v6190_v18 = vld [vmem:[#allocation2 + $0x194] ss:$8 sps:$4 sm:$0xff]  }
  0x99   :  { %766 = vmatprep.subr.bf16.mxu0 %v6137_v19  ;;  %v7208_v19 = vpack.c.bf16 %v7193_v12, %v7188_v11 }
  0x9c   :  { %767 = vmatpush1.bf16.msra.mxu0 %v6139_v20  ;;  %v249_v20 = vpack.c.bf16 %v7204_v16, %v7199_v15 }
  0x9d   :  { %768 = vmatprep.subr.bf16.mxu0 %v6140_v21  ;;  %v6188_v21 = vld [vmem:[#allocation2 + $0x190] ss:$8 sps:$4 sm:$0xff]  }
  0xa0   :  { %769 = vmatpush1.bf16.msra.mxu0 %v6142_v22  ;;  %v7215_v22 = vld [vmem:[%s9042_s1 + $0xa0] sm:$0xff] }
  0xa1   :  { %770 = vmatprep.subr.bf16.mxu0 %v6143_v23  ;;  %v7220_v23 = vld [vmem:[%s9042_s1 + $0xb0] sm:$0xff] }
  0xa4   :  { %771 = vmatpush1.bf16.msra.mxu0 %v6145_v24  ;;  %v6193_v24 = vld [vmem:[#allocation2 + $0x1a4] ss:$8 sps:$4 sm:$0xff]  }
  0xa5   :  { %772 = vmatprep.subr.bf16.mxu0 %v6146_v25  ;;  %v7226_v25 = vld [vmem:[%s9042_s1 + $0xc8] sm:$0xff] }
  0xa8   :  { %773 = vmatpush1.bf16.msra.mxu0 %v6148_v26  ;;  %v7231_v26 = vld [vmem:[%s9042_s1 + $0xd8] sm:$0xff] }
  0xa9   :  { %774 = vmatprep.subr.bf16.mxu0 %v6149_v27  ;;  %v6191_v27 = vld [vmem:[#allocation2 + $0x1a0] ss:$8 sps:$4 sm:$0xff]  }
  0xac   :  { %775 = vmatpush1.bf16.msra.mxu0 %v6151_v28  ;;  %v6196_v28 = vld [vmem:[#allocation2 + $0x1b4] ss:$8 sps:$4 sm:$0xff]  }
  0xad   :  { %776 = vmatprep.subr.bf16.mxu0 %v6152_v29  ;;  %v7235_v29 = vpack.c.bf16 %v7220_v23, %v7215_v22 }
  0xb0   :  { %777 = vmatpush1.bf16.msra.mxu0 %v6154_v30  ;;  %v254_v30 = vpack.c.bf16 %v7231_v26, %v7226_v25 }
  0xb1   :  { %778 = vmatprep.subr.bf16.mxu0 %v6155_v31  ;;  %v6194_v31 = vld [vmem:[#allocation2 + $0x1b0] ss:$8 sps:$4 sm:$0xff]  }
  0xb4   :  { %779 = vmatpush1.bf16.msra.mxu0 %v6157_v32  ;;  %v7242_v32 = vld [vmem:[%s9042_s1 + $0xc0] sm:$0xff] }
  0xb5   :  { %780 = vmatprep.subr.bf16.mxu0 %v6158_v33  ;;  %v6199_v33 = vld [vmem:[#allocation2 + $0x1c4] ss:$8 sps:$4 sm:$0xff]  }
  0xb8   :  { %781 = vmatpush1.bf16.msra.mxu0 %v6160_v34  ;;  %v7248_v34 = vld [vmem:[%s9042_s1 + $0xd0] sm:$0xff] }
  0xb9   :  { %853 = vmatprep.subr.bf16.mxu0 %v6163_v35  ;;  %v6197_v35 = vld [vmem:[#allocation2 + $0x1c0] ss:$8 sps:$4 sm:$0xff]  }
  0xbb   :  { %783 = vmatmul.mubr.bf16.vlgmr.msra.gmra.mrb[0].mxu0 %v223_v41  ;;  %v226_v41 = vpack.c.bf16 %v7095_v38, %v7081_v14  ;;  %v225_v14 = vpack.c.bf16 %v7108_v45, %v7090_v37  ;;  %v6214_v38 = vld [vmem:[#allocation2 + $0x214] ss:$8 sps:$4 sm:$0xff]   ;;  %v236_v37 = vpack.c.bf16 %v7145_v58, %v7123_v49  ;;  %v6218_v45 = vld [vmem:[#allocation2 + $0x230] ss:$8 sps:$4 sm:$0xff]   ;;  %v6229_v49 = vld [vmem:[#allocation2 + $0x264] ss:$8 sps:$4 sm:$0xff]  }
  0xbc   :  { %854 = vmatpush1.bf16.msra.mxu0 %v6161_v40  ;;  %792 = vmatprep.mubr.bf16.mxu0 %v229_v43  ;;  %v7252_v40 = vpack.c.bf16 %v7248_v34, %v7242_v32  ;;  %v6205_v43 = vld [vmem:[#allocation2 + $0x1e4] ss:$8 sps:$4 sm:$0xff]   ;;  %v6227_v58 = vld [vmem:[#allocation2 + $0x260] ss:$8 sps:$4 sm:$0xff]  }
  0xbd   :  { %855 = vmatprep.subr.bf16.mxu0 %v6166_v42  ;;  %v6200_v42 = vld [vmem:[#allocation2 + $0x1d0] ss:$8 sps:$4 sm:$0xff]  }
  0xc0   :  { %856 = vmatpush1.bf16.msra.mxu0 %v6164_v44  ;;  %v6203_v44 = vld [vmem:[#allocation2 + $0x1e0] ss:$8 sps:$4 sm:$0xff]  }
  0xc1   :  { %857 = vmatprep.subr.bf16.mxu0 %v6169_v47  ;;  %v6208_v47 = vld [vmem:[#allocation2 + $0x1f4] ss:$8 sps:$4 sm:$0xff]  }
  0xc3   :  { %793 = vmatmul.mubr.bf16.gmra.mrb[4].mxu0 %v7127_v52 }
  0xc4   :  { %858 = vmatpush1.bf16.msra.mxu0 %v6167_v50  ;;  %802 = vmatprep.mubr.bf16.mxu0 %v234_v53  ;;  %v6206_v50 = vld [vmem:[#allocation2 + $0x1f0] ss:$8 sps:$4 sm:$0xff]   ;;  %v6209_v53 = vld [vmem:[#allocation2 + $0x200] ss:$8 sps:$4 sm:$0xff]  }
  0xc5   :  { %859 = vmatprep.subr.bf16.mxu0 %v6172_v51  ;;  %v6211_v51 = vld [vmem:[#allocation2 + $0x204] ss:$8 sps:$4 sm:$0xff]  }
  0xc8   :  { %860 = vmatpush1.bf16.msra.mxu0 %v6170_v54  ;;  %v231_v54 = vpack.c.bf16 %v7118_v48, %v7100_v39  ;;  %v6223_v39 = vld [vmem:[#allocation2 + $0x244] ss:$8 sps:$4 sm:$0xff]   ;;  %v6221_v48 = vld [vmem:[#allocation2 + $0x240] ss:$8 sps:$4 sm:$0xff]  }
  0xc9   :  { %861 = vmatprep.subr.bf16.mxu0 %v6175_v57  ;;  %v6212_v57 = vld [vmem:[#allocation2 + $0x210] ss:$8 sps:$4 sm:$0xff]  }
  0xcb   :  { %803 = vmatmul.mubr.bf16.gmra.mrb[8].mxu0 %v7154_v62 }
  0xcc   :  { %862 = vmatpush1.bf16.msra.mxu0 %v6173_v60  ;;  %812 = vmatprep.mubr.bf16.mxu0 %v239_v63  ;;  %v6217_v60 = vld [vmem:[#allocation2 + $0x224] ss:$8 sps:$4 sm:$0xff]   ;;  %v230_v63 = vpack.c.bf16 %v7134_v55, %v7113_v46  ;;  %v241_v46 = vpack.c.bf16 %v7172_v4, %v7150_v59  ;;  %v6224_v55 = vld [vmem:[#allocation2 + $0x250] ss:$8 sps:$4 sm:$0xff]   ;;  %v245_v59 = vpack.c.bf16 %v7215_v22, %v7193_v12 }
  0xcd   :  { %863 = vmatprep.subr.bf16.mxu0 %v6178_v61  ;;  %v6215_v61 = vld [vmem:[#allocation2 + $0x220] ss:$8 sps:$4 sm:$0xff]   ;;  %v251_v4 = vpack.c.bf16 %v7226_v25, %v7204_v16 }
  0xd0   :  { %864 = vmatpush1.bf16.msra.mxu0 %v6176_v0  ;;  %v6220_v0 = vld [vmem:[#allocation2 + $0x234] ss:$8 sps:$4 sm:$0xff]  }
  0xd1   :  { %865 = vmatprep.subr.bf16.mxu0 %v6181_v3  ;;  %v235_v3 = vpack.c.bf16 %v7161_v1, %v7139_v56  ;;  %v246_v56 = vpack.c.bf16 %v7199_v15, %v7177_v5  ;;  %v6230_v1 = vld [vmem:[#allocation2 + $0x270] ss:$8 sps:$4 sm:$0xff]   ;;  %v250_v5 = vpack.c.bf16 %v7242_v32, %v7220_v23  ;;  %v1420_v23 = vld [vmem:[#allocation5 + $0x20] sm:$0xff]  ;;  %v1429_v32 = vld [vmem:[#allocation5 + $0x68] sm:$0xff] }
  0xd2   :  { %v1419_v15 = vld [vmem:[#allocation5 + $0x18] sm:$0xff] }
  0xd3   :  { %813 = vmatmul.mubr.bf16.gmra.mrb[12].mxu0 %v7181_v8 }
  0xd4   :  { %866 = vmatpush1.bf16.msra.mxu0 %v6179_v6  ;;  %822 = vmatprep.mubr.bf16.mxu0 %v244_v9  ;;  %v6226_v6 = vld [vmem:[#allocation2 + $0x254] ss:$8 sps:$4 sm:$0xff]  }
  0xd5   :  { %867 = vmatprep.subr.bf16.mxu0 %v6184_v7  ;;  %v240_v7 = vpack.c.bf16 %v7188_v11, %v7166_v2  ;;  %v6232_v9 = vld [vmem:[#allocation2 + $0x274] ss:$8 sps:$4 sm:$0xff]   ;;  %v4980_v2 = vld [vmem:[%s9042_s1 + $0xe8] sm:$0xff]  ;;  %v4966_v11 = vld [vmem:[%s9042_s1 + $0xe0] sm:$0xff] }
  0xd6   :  { %v255_v12 = vpack.c.bf16 %v4966_v11, %v7248_v34 }
  0xd8   :  { %868 = vmatpush1.bf16.msra.mxu0 %v6182_v10  ;;  %v256_v10 = vpack.c.bf16 %v4980_v2, %v7231_v26  ;;  %v1425_v26 = vld [vmem:[#allocation5 + $0x48] sm:$0xff] }
  0xd9   :  { %869 = vmatprep.subr.bf16.mxu0 %v6187_v13  ;;  %v8966_v13 = vmov 0  }
  0xdb   :  { %823 = vmatmul.mubr.bf16.gmra.mrb[16].mxu0 %v7208_v19 }
  0xdc   :  { %870 = vmatpush1.bf16.msra.mxu0 %v6185_v17  ;;  %832 = vmatprep.mubr.bf16.mxu0 %v249_v20  ;;  %v1416_v17 = vld [vmem:[#allocation5] sm:$0xff]  ;;  %v1421_v20 = vld [vmem:[#allocation5 + $0x28] sm:$0xff] }
  0xdd   :  { %871 = vmatprep.subr.bf16.mxu0 %v6190_v18  ;;  %v1418_v18 = vld [vmem:[#allocation5 + $0x10] sm:$0xff] }
  0xe0   :  { %872 = vmatpush1.bf16.msra.mxu0 %v6188_v21  ;;  %v1423_v21 = vld [vmem:[#allocation5 + $0x38] sm:$0xff] }
  0xe1   :  { %873 = vmatprep.subr.bf16.mxu0 %v6193_v24  ;;  %v7309_v22 = vpack.c.bf16 %v1423_v21, %v1421_v20  ;;  %v1422_v24 = vld [vmem:[#allocation5 + $0x30] sm:$0xff]  ;;  %v1463_v20 = vld [vmem:[#allocation5 + $0x178] sm:$0xff] }
  0xe2   :  { %v7311_v25 = vpack.c.bf16 %v1422_v24, %v1420_v23  ;;  %v1460_v23 = vld [vmem:[#allocation5 + $0x160] sm:$0xff]  ;;  %v1462_v24 = vld [vmem:[#allocation5 + $0x170] sm:$0xff] }
  0xe3   :  { %833 = vmatmul.mubr.bf16.gmra.mrb[20].mxu0 %v7235_v29 }
  0xe4   :  { %874 = vmatpush1.bf16.msra.mxu0 %v6191_v27  ;;  %842 = vmatprep.mubr.bf16.mxu0 %v254_v30  ;;  %v1427_v27 = vld [vmem:[#allocation5 + $0x58] sm:$0xff]  ;;  %v1426_v30 = vld [vmem:[#allocation5 + $0x50] sm:$0xff] }
  0xe5   :  { %875 = vmatprep.subr.bf16.mxu0 %v6196_v28  ;;  %v7315_v28 = vpack.c.bf16 %v1427_v27, %v1425_v26  ;;  %v7371_v26 = vpack.c.bf16 %v1462_v24, %v1460_v23  ;;  %v1465_v27 = vld [vmem:[#allocation5 + $0x188] sm:$0xff] }
  0xe7   :  { %9052 = vst [vmem:[#allocation28_spill] sm:$0xff] %v7371_v26 }
  0xe8   :  { %876 = vmatpush1.bf16.msra.mxu0 %v6194_v31 }
  0xe9   :  { %877 = vmatprep.subr.bf16.mxu0 %v6199_v33  ;;  %v1431_v33 = vld [vmem:[#allocation5 + $0x78] sm:$0xff] }
  0xea   :  { %v7321_v34 = vpack.c.bf16 %v1431_v33, %v1429_v32  ;;  %v1464_v32 = vld [vmem:[#allocation5 + $0x180] sm:$0xff]  ;;  %v1466_v33 = vld [vmem:[#allocation5 + $0x190] sm:$0xff] }
  0xeb   :  { %843 = vmatmul.mubr.bf16.gmra.mrb[24].mxu0 %v7252_v40 }
  0xec   :  { %878 = vmatpush1.bf16.msra.mxu0 %v6197_v35  ;;  %885 = vmatprep.mubr.bf16.mxu0 %v226_v41  ;;  %v1428_v35 = vld [vmem:[#allocation5 + $0x60] sm:$0xff]  ;;  %v1433_v41 = vld [vmem:[#allocation5 + $0x88] sm:$0xff] }
  0xed   :  { %879 = vmatprep.subr.bf16.mxu0 %v6202_v36  ;;  %v1430_v36 = vld [vmem:[#allocation5 + $0x70] sm:$0xff] }
  0xf0   :  { %880 = vmatpush1.bf16.msra.mxu0 %v6200_v42  ;;  %v1435_v42 = vld [vmem:[#allocation5 + $0x98] sm:$0xff] }
  0xf1   :  { %881 = vmatprep.subr.bf16.mxu0 %v6205_v43  ;;  %v7327_v43 = vpack.c.bf16 %v1435_v42, %v1433_v41  ;;  %v1471_v41 = vld [vmem:[#allocation5 + $0x1b8] sm:$0xff] }
  0xf4   :  { %882 = vmatpush1.bf16.msra.mxu0 %v6203_v44  ;;  %v1432_v44 = vld [vmem:[#allocation5 + $0x80] sm:$0xff] }
  0xf5   :  { %883 = vmatprep.subr.bf16.mxu0 %v6208_v47  ;;  %v1434_v47 = vld [vmem:[#allocation5 + $0x90] sm:$0xff] }
  0xf8   :  { %884 = vmatpush1.bf16.msra.mxu0 %v6206_v50  ;;  %v7329_v50 = vpack.c.bf16 %v1434_v47, %v1432_v44  ;;  %v1468_v44 = vld [vmem:[#allocation5 + $0x1a0] sm:$0xff]  ;;  %v1470_v47 = vld [vmem:[#allocation5 + $0x1b0] sm:$0xff] }
  0xf9   :  { %956 = vmatprep.subr.bf16.mxu0 %v6211_v51  ;;  %v1437_v51 = vld [vmem:[#allocation5 + $0xa8] sm:$0xff] }
  0xfb   :  { %886 = vmatmul.mubr.bf16.vlgmr.msra.gmra.mrb[0].mxu0 %v225_v14 }
  0xfc   :  { %957 = vmatpush1.bf16.msra.mxu0 %v6209_v53  ;;  %895 = vmatprep.mubr.bf16.mxu0 %v231_v54  ;;  %v1439_v53 = vld [vmem:[#allocation5 + $0xb8] sm:$0xff]  ;;  %v1438_v54 = vld [vmem:[#allocation5 + $0xb0] sm:$0xff] }
  0xfd   :  { %958 = vmatprep.subr.bf16.mxu0 %v6214_v38  ;;  %v7333_v14 = vpack.c.bf16 %v1439_v53, %v1437_v51  ;;  %v1436_v38 = vld [vmem:[#allocation5 + $0xa0] sm:$0xff]  ;;  %v7383_v51 = vpack.c.bf16 %v1470_v47, %v1468_v44  ;;  %v1473_v53 = vld [vmem:[#allocation5 + $0x1c8] sm:$0xff] }
  0xff   :  { %9056 = vst [vmem:[#allocation32_spill] sm:$0xff] %v7383_v51 }
 0x100   :  { %959 = vmatpush1.bf16.msra.mxu0 %v6212_v57  ;;  %v7335_v57 = vpack.c.bf16 %v1438_v54, %v1436_v38  ;;  %v1475_v38 = vld [vmem:[#allocation5 + $0x1d8] sm:$0xff] }
 0x101   :  { %960 = vmatprep.subr.bf16.mxu0 %v6217_v60  ;;  %v1441_v60 = vld [vmem:[#allocation5 + $0xc8] sm:$0xff]  ;;  %v7387_v54 = vpack.c.bf16 %v1475_v38, %v1473_v53  ;;  %v8967_v53 = vmov 0.0  }
 0x103   :  { %896 = vmatmul.mubr.bf16.gmra.mrb[4].mxu0 %v230_v63  ;;  %9057 = vst [vmem:[#allocation33_spill] sm:$0xff] %v7387_v54 }
 0x104   :  { %905 = vmatprep.mubr.bf16.mxu0 %v236_v37  ;;  %961 = vmatpush1.bf16.msra.mxu0 %v6215_v61  ;;  %v1443_v61 = vld [vmem:[#allocation5 + $0xd8] sm:$0xff]  ;;  %v1442_v37 = vld [vmem:[#allocation5 + $0xd0] sm:$0xff] }
 0x105   :  { %962 = vmatprep.subr.bf16.mxu0 %v6220_v0  ;;  %v7339_v63 = vpack.c.bf16 %v1443_v61, %v1441_v60  ;;  %v1440_v0 = vld [vmem:[#allocation5 + $0xc0] sm:$0xff]  ;;  %v1474_v61 = vld [vmem:[#allocation5 + $0x1d0] sm:$0xff] }
 0x106   :  { %v1472_v60 = vld [vmem:[#allocation5 + $0x1c0] sm:$0xff] }
 0x108   :  { %963 = vmatpush1.bf16.msra.mxu0 %v6218_v45  ;;  %v7341_v45 = vpack.c.bf16 %v1442_v37, %v1440_v0  ;;  %v7389_v0 = vpack.c.bf16 %v1474_v61, %v1472_v60  ;;  %v1477_v37 = vld [vmem:[#allocation5 + $0x1e8] sm:$0xff] }
 0x109   :  { %964 = vmatprep.subr.bf16.mxu0 %v6223_v39  ;;  %v1445_v39 = vld [vmem:[#allocation5 + $0xe8] sm:$0xff] }
 0x10a   :  { %9058 = vst [vmem:[#allocation34_spill] sm:$0xff] %v7389_v0 }
 0x10b   :  { %906 = vmatmul.mubr.bf16.gmra.mrb[8].mxu0 %v235_v3 }
 0x10c   :  { %915 = vmatprep.mubr.bf16.mxu0 %v241_v46  ;;  %965 = vmatpush1.bf16.msra.mxu0 %v6221_v48  ;;  %v1447_v48 = vld [vmem:[#allocation5 + $0xf8] sm:$0xff]  ;;  %v1446_v46 = vld [vmem:[#allocation5 + $0xf0] sm:$0xff] }
 0x10d   :  { %966 = vmatprep.subr.bf16.mxu0 %v6226_v6  ;;  %v7345_v3 = vpack.c.bf16 %v1447_v48, %v1445_v39  ;;  %v1444_v6 = vld [vmem:[#allocation5 + $0xe0] sm:$0xff]  ;;  %v1479_v39 = vld [vmem:[#allocation5 + $0x1f8] sm:$0xff] }
 0x10e   :  { %v7393_v48 = vpack.c.bf16 %v1479_v39, %v1477_v37 }
 0x10f   :  { %9043 = vst [vmem:[#allocation19_spill] sm:$0xff] %v7345_v3 }
 0x110   :  { %967 = vmatpush1.bf16.msra.mxu0 %v6224_v55  ;;  %v7347_v55 = vpack.c.bf16 %v1446_v46, %v1444_v6  ;;  %9059 = vst [vmem:[#allocation35_spill] sm:$0xff] %v7393_v48  ;;  %v1476_v6 = vld [vmem:[#allocation5 + $0x1e0] sm:$0xff]  ;;  %v1478_v46 = vld [vmem:[#allocation5 + $0x1f0] sm:$0xff] }
 0x111   :  { %968 = vmatprep.subr.bf16.mxu0 %v6229_v49  ;;  %v1449_v49 = vld [vmem:[#allocation5 + $0x108] sm:$0xff] }
 0x112   :  { %9044 = vst [vmem:[#allocation20_spill] sm:$0xff] %v7347_v55 }
 0x113   :  { %916 = vmatmul.mubr.bf16.gmra.mrb[12].mxu0 %v240_v7 }
 0x114   :  { %925 = vmatprep.mubr.bf16.mxu0 %v246_v56  ;;  %969 = vmatpush1.bf16.msra.mxu0 %v6227_v58  ;;  %v1451_v58 = vld [vmem:[#allocation5 + $0x118] sm:$0xff]  ;;  %v1450_v56 = vld [vmem:[#allocation5 + $0x110] sm:$0xff] }
 0x115   :  { %970 = vmatprep.subr.bf16.mxu0 %v6232_v9  ;;  %v7351_v7 = vpack.c.bf16 %v1451_v58, %v1449_v49  ;;  %v1448_v9 = vld [vmem:[#allocation5 + $0x100] sm:$0xff]  ;;  %v7395_v49 = vpack.c.bf16 %v1478_v46, %v1476_v6  ;;  %v340_v58 = vlaneseq }
 0x117   :  { %9045 = vst [vmem:[#allocation21_spill] sm:$0xff] %v7351_v7  ;;  %9060 = vst [vmem:[#allocation36_spill] sm:$0xff] %v7395_v49 }
 0x118   :  { %971 = vmatpush1.bf16.msra.mxu0 %v6230_v1  ;;  %v7353_v1 = vpack.c.bf16 %v1450_v56, %v1448_v9  ;;  %v7400_v9 = vshrl.u32 %v340_v58, 7 }
 0x11a   :  { %9046 = vst [vmem:[#allocation22_spill] sm:$0xff] %v7353_v1  ;;  %9061 = vst [vmem:[#allocation37_spill] sm:$0xff] %v7400_v9 }
 0x11b   :  { %926 = vmatmul.mubr.bf16.gmra.mrb[16].mxu0 %v245_v59  ;;  %v1453_v59 = vld [vmem:[#allocation5 + $0x128] sm:$0xff] }
 0x11c   :  { %935 = vmatprep.mubr.bf16.mxu0 %v251_v4  ;;  %v1455_v4 = vld [vmem:[#allocation5 + $0x138] sm:$0xff] }
 0x11d   :  { %v7357_v2 = vpack.c.bf16 %v1455_v4, %v1453_v59 }
 0x11f   :  { %9047 = vst [vmem:[#allocation23_spill] sm:$0xff] %v7357_v2 }
 0x123   :  { %936 = vmatmul.mubr.bf16.gmra.mrb[20].mxu0 %v250_v5  ;;  %v1452_v5 = vld [vmem:[#allocation5 + $0x120] sm:$0xff] }
 0x124   :  { %945 = vmatprep.mubr.bf16.mxu0 %v256_v10  ;;  %v1454_v10 = vld [vmem:[#allocation5 + $0x130] sm:$0xff] }
 0x12b   :  { %946 = vmatmul.mubr.bf16.gmra.mrb[24].mxu0 %v255_v12  ;;  %v1457_v12 = vld [vmem:[#allocation5 + $0x148] sm:$0xff] }
 0x12c   :  { %988 = vmatprep.mubr.bf16.mxu0 %v8966_v13 }
 0x133   :  { %989 = vmatmul.mubr.bf16.vlgmr.msra.gmra.mrb[0].mxu0 %v7127_v52  ;;  %v4994_v52 = vld [vmem:[%s9042_s1 + $0xf0] sm:$0xff] }
 0x134   :  { %998 = vmatprep.mubr.bf16.mxu0 %v8966_v13 }
 0x13b   :  { %999 = vmatmul.mubr.bf16.gmra.mrb[4].mxu0 %v7154_v62  ;;  %v257_v62 = vpack.c.bf16 %v4994_v52, %v4966_v11  ;;  %v7359_v11 = vpack.c.bf16 %v1454_v10, %v1452_v5  ;;  %v1459_v52 = vld [vmem:[#allocation5 + $0x158] sm:$0xff]  ;;  %v1061_v5 = vadd.s32 8, %v7400_v9 }
 0x13c   :  { %1008 = vmatprep.mubr.bf16.mxu0 %v8966_v13 }
 0x13d   :  { %9048 = vst [vmem:[#allocation24_spill] sm:$0xff] %v7359_v11 }
 0x143   :  { %1009 = vmatmul.mubr.bf16.gmra.mrb[8].mxu0 %v7181_v8  ;;  %v1417_v8 = vld [vmem:[#allocation5 + $0x8] sm:$0xff] }
 0x144   :  { %1018 = vmatprep.mubr.bf16.mxu0 %v8966_v13  ;;  %v7303_v16 = vpack.c.bf16 %v1419_v15, %v1417_v8  ;;  %v1456_v8 = vld [vmem:[#allocation5 + $0x140] sm:$0xff]  ;;  %v1458_v15 = vld [vmem:[#allocation5 + $0x150] sm:$0xff] }
 0x146   :  { %5644 = vmatprep.subr.bf16.mxu1 %v7303_v16 }
 0x14b   :  { %1019 = vmatmul.mubr.bf16.gmra.mrb[12].mxu0 %v7208_v19  ;;  %v7305_v19 = vpack.c.bf16 %v1418_v18, %v1416_v17  ;;  %v7365_v17 = vpack.c.bf16 %v1458_v15, %v1456_v8  ;;  %v1461_v18 = vld [vmem:[#allocation5 + $0x168] sm:$0xff]  ;;  %v7406_v8 = vsub.s32 1, %v7400_v9  ;;  %v1085_v15 = vand.u32 7, %v1061_v5 }
 0x14c   :  { %1028 = vmatprep.mubr.bf16.mxu0 %v8966_v13  ;;  %v7369_v21 = vpack.c.bf16 %v1463_v20, %v1461_v18  ;;  %v1063_v18 = vadd.s32 24, %v7400_v9  ;;  %v7413_v20 = vsub.s32 0, %v7400_v9  ;;  %v1066_v5 = vadd.s32 48, %v7400_v9 }
 0x14d   :  { %5646 = vmatpush1.bf16.msra.mxu1 %v7305_v19  ;;  %9050 = vst [vmem:[#allocation26_spill] sm:$0xff] %v7365_v17  ;;  %9062 = vst [vmem:[#allocation38_spill] sm:$0xff] %v7406_v8  ;;  %vm1243_vm1 = vcmp.lt.s32.totalorder %v1085_v15, 2 }
 0x14e   :  { %5648 = vmatprep.subr.bf16.mxu1 %v7309_v22  ;;  %9051 = vst [vmem:[#allocation27_spill] sm:$0xff] %v7369_v21  ;;  %9064 = vst [vmem:[#allocation39_spill] sm:$0xff] %v7413_v20  ;;  %v7433_v37 = vsel %vm1243_vm1, 1.0, %v8967_v53 }
 0x14f   :  { %9067 = vst [vmem:[#allocation42_spill] sm:$0xff] %v7433_v37 }
 0x151   :  { %5650 = vmatpush1.bf16.msra.mxu1 %v7311_v25 }
 0x152   :  { %5652 = vmatprep.subr.bf16.mxu1 %v7315_v28 }
 0x153   :  { %1029 = vmatmul.mubr.bf16.gmra.mrb[16].mxu0 %v7235_v29  ;;  %v1424_v29 = vld [vmem:[#allocation5 + $0x40] sm:$0xff] }
 0x154   :  { %1038 = vmatprep.mubr.bf16.mxu0 %v8966_v13  ;;  %v7317_v31 = vpack.c.bf16 %v1426_v30, %v1424_v29  ;;  %v1467_v29 = vld [vmem:[#allocation5 + $0x198] sm:$0xff] }
 0x155   :  { %v7375_v30 = vpack.c.bf16 %v1467_v29, %v1465_v27  ;;  %v1064_v29 = vadd.s32 32, %v7400_v9 }
 0x156   :  { %5654 = vmatpush1.bf16.msra.mxu1 %v7317_v31 }
 0x157   :  { %5656 = vmatprep.subr.bf16.mxu1 %v7321_v34  ;;  %9053 = vst [vmem:[#allocation29_spill] sm:$0xff] %v7375_v30  ;;  %v1106_v39 = vand.u32 7, %v1064_v29 }
 0x159   :  { %vm1246_vm4 = vcmp.lt.s32.totalorder %v1106_v39, 2 }
 0x15b   :  { %1039 = vmatmul.mubr.bf16.gmra.mrb[20].mxu0 %v7252_v40  ;;  %v7323_v40 = vpack.c.bf16 %v1430_v36, %v1428_v35  ;;  %v7377_v35 = vpack.c.bf16 %v1466_v33, %v1464_v32  ;;  %v1469_v36 = vld [vmem:[#allocation5 + $0x1a8] sm:$0xff]  ;;  %v1065_v32 = vadd.s32 40, %v7400_v9 }
 0x15c   :  { %1048 = vmatprep.mubr.bf16.mxu0 %v8966_v13  ;;  %v7381_v42 = vpack.c.bf16 %v1471_v41, %v1469_v36  ;;  %v1099_v41 = vand.u32 7, %v1063_v18 }
 0x15d   :  { %5658 = vmatpush1.bf16.msra.mxu1 %v7323_v40  ;;  %9054 = vst [vmem:[#allocation30_spill] sm:$0xff] %v7377_v35  ;;  %v1113_v6 = vand.u32 7, %v1065_v32 }
 0x15e   :  { %5660 = vmatprep.subr.bf16.mxu1 %v7327_v43  ;;  %9055 = vst [vmem:[#allocation31_spill] sm:$0xff] %v7381_v42  ;;  %vm1245_vm3 = vcmp.lt.s32.totalorder %v1099_v41, 2  ;;  %v1120_v41 = vand.u32 7, %v1066_v5 }
 0x15f   :  { %vm7461_vm5 = vcmp.lt.s32.totalorder %v1113_v6, 2 }
 0x160   :  { %vm7508_vm6 = vcmp.lt.s32.totalorder %v1120_v41, 2 }
 0x161   :  { %5662 = vmatpush1.bf16.msra.mxu1 %v7329_v50 }
 0x162   :  { %5664 = vmatprep.subr.bf16.mxu1 %v7333_v14 }
 0x163   :  { %1049 = vmatmul.mubr.bf16.gmra.mrb[24].mxu0 %v257_v62  ;;  %v7363_v62 = vpack.c.bf16 %v1459_v52, %v1457_v12  ;;  %v1062_v12 = vadd.s32 16, %v7400_v9  ;;  %v1078_v52 = vand.u32 7, %v7400_v9 }
 0x165   :  { %5666 = vmatpush1.bf16.msra.mxu1 %v7335_v57  ;;  %9049 = vst [vmem:[#allocation25_spill] sm:$0xff] %v7363_v62  ;;  %v1092_v24 = vand.u32 7, %v1062_v12  ;;  %vm1242_vm0 = vcmp.lt.s32.totalorder %v1078_v52, 2  ;;  %v1067_v52 = vadd.s32 56, %v7400_v9 }
 0x166   :  { %5668 = vmatprep.subr.bf16.mxu1 %v7339_v63  ;;  %v7424_v38 = vsel %vm1242_vm0, 1.0, %v8967_v53 }
 0x167   :  { %9065 = vst [vmem:[#allocation40_spill] sm:$0xff] %v7424_v38  ;;  %vm1244_vm2 = vcmp.lt.s32.totalorder %v1092_v24, 2 }
 0x168   :  { %v7449_v12 = vsel %vm1244_vm2, 1.0, %v8967_v53 }
 0x169   :  { %5670 = vmatpush1.bf16.msra.mxu1 %v7341_v45  ;;  %9070 = vst [vmem:[#allocation45_spill] sm:$0xff] %v7449_v12 }
 0x16a   :  { %5672 = vmatprep.subr.bf16.mxu1 %v7345_v3 }
 0x16d   :  { %5674 = vmatpush1.bf16.msra.mxu1 %v7347_v55 }
 0x16e   :  { %5676 = vmatprep.subr.bf16.mxu1 %v7351_v7 }
 0x171   :  { %5678 = vmatpush1.bf16.msra.mxu1 %v7353_v1 }
 0x172   :  { %5680 = vmatprep.subr.bf16.mxu1 %v7357_v2 }
 0x175   :  { %5682 = vmatpush1.bf16.msra.mxu1 %v7359_v11 }
 0x176   :  { %5684 = vmatprep.subr.bf16.mxu1 %v7363_v62 }
 0x179   :  { %5686 = vmatpush1.bf16.msra.mxu1 %v7365_v17 }
 0x17a   :  { %5688 = vmatprep.subr.bf16.mxu1 %v7369_v21 }
 0x17d   :  { %5690 = vmatpush1.bf16.msra.mxu1 %v7371_v26 }
 0x17e   :  { %5692 = vmatprep.subr.bf16.mxu1 %v7375_v30 }
 0x181   :  { %5694 = vmatpush1.bf16.msra.mxu1 %v7377_v35 }
 0x182   :  { %5696 = vmatprep.subr.bf16.mxu1 %v7381_v42  ;;  %v1069_v42 = vadd.s32 72, %v7400_v9 }
 0x185   :  { %5698 = vmatpush1.bf16.msra.mxu1 %v7383_v51 }
 0x186   :  { %5700 = vmatprep.subr.bf16.mxu1 %v7387_v54  ;;  %v1141_v54 = vand.u32 7, %v1069_v42 }
 0x188   :  { %vm7567_vm9 = vcmp.lt.s32.totalorder %v1141_v54, 2 }
 0x189   :  { %5702 = vmatpush1.bf16.msra.mxu1 %v7389_v0 }
 0x18a   :  { %5704 = vmatprep.subr.bf16.mxu1 %v7393_v48 }
 0x18d   :  { %5706 = vmatpush1.bf16.msra.mxu1 %v7395_v49 }
 0x18e   :  { %5708 = vmatprep.subr.bf16.mxu1 %v7303_v16  ;;  %v338_v16 = vld [vmem:[%s9063_s30] sm:$0x3] }
 0x18f   :  { %v7418_v33 = vrot.slane %v338_v16, %v7406_v8  ;;  %v7421_v44 = vrot.slane %v338_v16, %v7413_v20  ;;  %v7459_v16 = vsel %vm1245_vm3, 1.0, %v8967_v53  ;;  %v9075_v20 = vmov 0.0  }
 0x190   :  { %9071 = vst [vmem:[#allocation46_spill] sm:$0xff] %v7459_v16 }
 0x206   :  { %v990_v56 = vpop.f32.mrb[0].mxu0 }
 0x207   :  { %v992_v59 = vpop.f32.mrb[1].mxu0 }
 0x208   :  { %v994_v4 = vpop.f32.mrb[2].mxu0  ;;  %v7436_v46 = vadd.f32 %v992_v59, %v7418_v33 }
 0x209   :  { %v996_v10 = vpop.f32.mrb[3].mxu0  ;;  %v7430_v61 = vadd.f32 %v994_v4, %v7421_v44 }
 0x20a   :  { %v7427_v60 = vadd.f32 %v996_v10, %v7418_v33  ;;  %9068 = vst [vmem:[#allocation43_spill] sm:$0xff] %v7436_v46  ;;  %v7443_v10 = vadd.f32 %v990_v56, %v7421_v44  ;;  %v1285_v24 = vmul.f32 %v7436_v46, %v7424_v38 }
 0x20b   :  { %v7456_v18 = vmul.f32 %v7430_v61, %v7433_v37 }
 0x20c   :  { %9066 = vst [vmem:[#allocation41_spill] sm:$0xff] %v7427_v60  ;;  %v1287_v59 = vmul.f32 %v7427_v60, %v7433_v37  ;;  %v7474_v13 = vmul.f32 %v7443_v10, %v7424_v38  ;;  %v1127_v37 = vand.u32 7, %v1067_v52  ;;  %v1068_v52 = vadd.s32 64, %v7400_v9 }
 0x20e   :  { %v1000_v23 = vpop.f32.mrb[4].mxu0  ;;  %v1353_v8 = vmul.f32 %v7427_v60, %v1287_v59  ;;  %v1312_v38 = vadd.f32 %v7456_v18, %v7474_v13  ;;  %v1331_v60 = vadd.f32 %v1287_v59, %v1285_v24  ;;  %vm7512_vm7 = vcmp.lt.s32.totalorder %v1127_v37, 2 }
 0x20f   :  { %v1002_v27 = vpop.f32.mrb[5].mxu0  ;;  %v7446_v4 = vadd.f32 %v1000_v23, %v7421_v44  ;;  %v1134_v51 = vand.u32 7, %v1068_v52  ;;  %v1070_v52 = vadd.s32 80, %v7400_v9 }
 0x210   :  { %v1004_v36 = vpop.f32.mrb[6].mxu0  ;;  %v7439_v58 = vadd.f32 %v1002_v27, %v7418_v33 }
 0x211   :  { %v1006_v47 = vpop.f32.mrb[7].mxu0  ;;  %v7478_v39 = vmul.f32 %v7446_v4, %v7449_v12  ;;  %v7481_v6 = vadd.f32 %v1004_v36, %v7421_v44  ;;  %v5080_v36 = vsel %vm7461_vm5, 1.0, %v9075_v20  ;;  %vm1250_vm8 = vcmp.lt.s32.totalorder %v1134_v51, 2 }
 0x212   :  { %9069 = vst [vmem:[#allocation44_spill] sm:$0xff] %v7439_v58  ;;  %v1289_v27 = vmul.f32 %v7439_v58, %v7449_v12  ;;  %v7470_v29 = vadd.f32 %v1006_v47, %v7418_v33  ;;  %v7485_v47 = vsel %vm1246_vm4, 1.0, %v9075_v20  ;;  %v1351_v12 = vmul.f32 %v7436_v46, %v1285_v24 }
 0x213   :  { %9076 = vst [vmem:[#allocation48_spill] sm:$0xff] %v7485_v47  ;;  %v1313_v0 = vadd.f32 %v1312_v38, %v7478_v39 }
 0x214   :  { %9074 = vst [vmem:[#allocation47_spill] sm:$0xff] %v7470_v29  ;;  %v1355_v48 = vmul.f32 %v7439_v58, %v1289_v27  ;;  %v1397_v59 = vadd.f32 %v1353_v8, %v1351_v12  ;;  %v1332_v24 = vadd.f32 %v1331_v60, %v1289_v27 }
 0x216   :  { %v1010_v15 = vpop.f32.mrb[8].mxu0  ;;  %v1398_v8 = vadd.f32 %v1397_v59, %v1355_v48 }
 0x217   :  { %v1012_v56 = vpop.f32.mrb[9].mxu0  ;;  %v7493_v49 = vadd.f32 %v1010_v15, %v7421_v44  ;;  %v7506_v15 = vmul.f32 %v7481_v6, %v7459_v16 }
 0x218   :  { %v1014_v32 = vpop.f32.mrb[10].mxu0  ;;  %v7488_v5 = vadd.f32 %v1012_v56, %v7418_v33  ;;  %v1291_v56 = vmul.f32 %v7470_v29, %v7459_v16 }
 0x219   :  { %v1016_v53 = vpop.f32.mrb[11].mxu0  ;;  %v7523_v16 = vmul.f32 %v7493_v49, %v7485_v47  ;;  %v7526_v41 = vadd.f32 %v1014_v32, %v7421_v44  ;;  %v1314_v27 = vadd.f32 %v1313_v0, %v7506_v15  ;;  %v5081_v32 = vsel %vm7508_vm6, 1.0, %v9075_v20 }
 0x21a   :  { %9077 = vst [vmem:[#allocation49_spill] sm:$0xff] %v7488_v5  ;;  %v1293_v58 = vmul.f32 %v7488_v5, %v7485_v47  ;;  %v7519_v46 = vadd.f32 %v1016_v53, %v7418_v33  ;;  %v1357_v60 = vmul.f32 %v7470_v29, %v1291_v56  ;;  %v1333_v30 = vadd.f32 %v1332_v24, %v1291_v56 }
 0x21b   :  { %v1315_v0 = vadd.f32 %v1314_v27, %v7523_v16  ;;  %v1071_v27 = vadd.s32 88, %v7400_v9 }
 0x21c   :  { %9082 = vst [vmem:[#allocation50_spill] sm:$0xff] %v7519_v46  ;;  %v1359_v48 = vmul.f32 %v7488_v5, %v1293_v58  ;;  %v1295_v59 = vmul.f32 %v7519_v46, %v5080_v36  ;;  %v1399_v29 = vadd.f32 %v1398_v8, %v1357_v60  ;;  %v1334_v26 = vadd.f32 %v1333_v30, %v1293_v58 }
 0x21d   :  { %v1148_v5 = vand.u32 7, %v1070_v52  ;;  %v1155_v54 = vand.u32 7, %v1071_v27 }
 0x21e   :  { %v1020_v38 = vpop.f32.mrb[12].mxu0  ;;  %v1361_v51 = vmul.f32 %v7519_v46, %v1295_v59 }
 0x21f   :  { %v1022_v37 = vpop.f32.mrb[13].mxu0  ;;  %v7535_v35 = vadd.f32 %v1020_v38, %v7421_v44  ;;  %v7548_v38 = vmul.f32 %v7526_v41, %v5080_v36  ;;  %v1400_v36 = vadd.f32 %v1399_v29, %v1359_v48  ;;  %vm1252_vm10 = vcmp.lt.s32.totalorder %v1148_v5, 2 }
 0x220   :  { %v7531_v12 = vadd.f32 %v1022_v37, %v7418_v33  ;;  %v1024_v53 = vpop.f32.mrb[14].mxu0  ;;  %v5082_v37 = vsel %vm7512_vm7, 1.0, %v9075_v20  ;;  %v1072_v5 = vadd.s32 96, %v7400_v9  ;;  %vm1253_vm11 = vcmp.lt.s32.totalorder %v1155_v54, 2 }
 0x221   :  { %v1026_v47 = vpop.f32.mrb[15].mxu0  ;;  %v7555_v24 = vmul.f32 %v7535_v35, %v5081_v32  ;;  %v7558_v23 = vadd.f32 %v1024_v53, %v7421_v44  ;;  %v1316_v30 = vadd.f32 %v1315_v0, %v7548_v38  ;;  %v1335_v53 = vadd.f32 %v1334_v26, %v1295_v59 }
 0x222   :  { %9083 = vst [vmem:[#allocation51_spill] sm:$0xff] %v7531_v12  ;;  %v1297_v21 = vmul.f32 %v7531_v12, %v5081_v32  ;;  %v7552_v56 = vadd.f32 %v1026_v47, %v7418_v33  ;;  %v5083_v47 = vsel %vm1250_vm8, 1.0, %v9075_v20  ;;  %v1401_v17 = vadd.f32 %v1400_v36, %v1361_v51 }
 0x223   :  { %v1317_v0 = vadd.f32 %v1316_v30, %v7555_v24  ;;  %v1073_v51 = vadd.s32 104, %v7400_v9 }
 0x224   :  { %9084 = vst [vmem:[#allocation52_spill] sm:$0xff] %v7552_v56  ;;  %v1363_v32 = vmul.f32 %v7531_v12, %v1297_v21  ;;  %v1299_v29 = vmul.f32 %v7552_v56, %v5082_v37  ;;  %v1336_v62 = vadd.f32 %v1335_v53, %v1297_v21 }
 0x225   :  { %v1169_v9 = vand.u32 7, %v1073_v51 }
 0x226   :  { %v1030_v42 = vpop.f32.mrb[16].mxu0  ;;  %v1402_v27 = vadd.f32 %v1401_v17, %v1363_v32  ;;  %v1365_v21 = vmul.f32 %v7552_v56, %v1299_v29  ;;  %v1337_v30 = vadd.f32 %v1336_v62, %v1299_v29 }
 0x227   :  { %v7564_v58 = vadd.f32 %v1030_v42, %v7421_v44  ;;  %v1032_v8 = vpop.f32.mrb[17].mxu0  ;;  %v7578_v42 = vmul.f32 %v7558_v23, %v5082_v37  ;;  %v5084_v37 = vsel %vm7567_vm9, 1.0, %v9075_v20  ;;  %vm1255_vm13 = vcmp.lt.s32.totalorder %v1169_v9, 2 }
 0x228   :  { %v7574_v52 = vadd.f32 %v1032_v8, %v7418_v33  ;;  %v1034_v48 = vpop.f32.mrb[18].mxu0  ;;  %v1403_v56 = vadd.f32 %v1402_v27, %v1365_v21 }
 0x229   :  { %v1036_v46 = vpop.f32.mrb[19].mxu0  ;;  %v7585_v12 = vmul.f32 %v7564_v58, %v5083_v47  ;;  %v7588_v8 = vadd.f32 %v1034_v48, %v7421_v44  ;;  %v1318_v36 = vadd.f32 %v1317_v0, %v7578_v42  ;;  %v1162_v0 = vand.u32 7, %v1072_v5 }
 0x22a   :  { %9087 = vst [vmem:[#allocation53_spill] sm:$0xff] %v7574_v52  ;;  %v1301_v26 = vmul.f32 %v7574_v52, %v5083_v47  ;;  %v7582_v59 = vadd.f32 %v1036_v46, %v7418_v33  ;;  %v5085_v46 = vsel %vm1252_vm10, 1.0, %v9075_v20 }
 0x22b   :  { %v1319_v60 = vadd.f32 %v1318_v36, %v7585_v12  ;;  %v7602_v11 = vmul.f32 %v7588_v8, %v5084_v37  ;;  %vm1254_vm12 = vcmp.lt.s32.totalorder %v1162_v0, 2 }
 0x22c   :  { %9088 = vst [vmem:[#allocation54_spill] sm:$0xff] %v7582_v59  ;;  %v1367_v47 = vmul.f32 %v7574_v52, %v1301_v26  ;;  %v1303_v53 = vmul.f32 %v7582_v59, %v5084_v37  ;;  %v1338_v2 = vadd.f32 %v1337_v30, %v1301_v26  ;;  %v5086_v37 = vsel %vm1253_vm11, 1.0, %v9075_v20 }
 0x22d   :  { %v1320_v27 = vadd.f32 %v1319_v60, %v7602_v11 }
 0x22e   :  { %v1040_v48 = vpop.f32.mrb[20].mxu0  ;;  %v1369_v1 = vmul.f32 %v7582_v59, %v1303_v53  ;;  %v1339_v21 = vadd.f32 %v1338_v2, %v1303_v53 }
 0x22f   :  { %v7605_v17 = vadd.f32 %v1040_v48, %v7421_v44  ;;  %v1042_v32 = vpop.f32.mrb[21].mxu0  ;;  %v1404_v48 = vadd.f32 %v1403_v56, %v1367_v47 }
 0x230   :  { %v7608_v62 = vadd.f32 %v1042_v32, %v7418_v33  ;;  %v1044_v29 = vpop.f32.mrb[22].mxu0 }
 0x231   :  { %v7611_v52 = vmul.f32 %v7605_v17, %v5085_v46  ;;  %v7614_v54 = vadd.f32 %v1044_v29, %v7421_v44  ;;  %v1046_v36 = vpop.f32.mrb[23].mxu0  ;;  %v1405_v56 = vadd.f32 %v1404_v48, %v1369_v1 }
 0x232   :  { %9089 = vst [vmem:[#allocation55_spill] sm:$0xff] %v7608_v62  ;;  %v1305_v5 = vmul.f32 %v7608_v62, %v5085_v46  ;;  %v7620_v26 = vadd.f32 %v1046_v36, %v7418_v33  ;;  %v5087_v36 = vsel %vm1254_vm12, 1.0, %v9075_v20 }
 0x233   :  { %9090 = vst [vmem:[#allocation56_spill] sm:$0xff] %v7614_v54  ;;  %v1321_v29 = vadd.f32 %v1320_v27, %v7611_v52  ;;  %v7627_v51 = vmul.f32 %v7614_v54, %v5086_v37 }
 0x234   :  { %9091 = vst [vmem:[#allocation57_spill] sm:$0xff] %v7620_v26  ;;  %v1371_v30 = vmul.f32 %v7608_v62, %v1305_v5  ;;  %v1307_v32 = vmul.f32 %v7620_v26, %v5086_v37  ;;  %v1340_v47 = vadd.f32 %v1339_v21, %v1305_v5  ;;  %v5088_v37 = vsel %vm1255_vm13, 1.0, %v9075_v20 }
 0x235   :  { %9092 = vst [vmem:[#allocation58_spill] sm:$0xff] %v7627_v51  ;;  %v1322_v9 = vadd.f32 %v1321_v29, %v7627_v51 }
 0x236   :  { %v1050_v46 = vpop.f32.mrb[24].mxu0  ;;  %v1406_v2 = vadd.f32 %v1405_v56, %v1371_v30  ;;  %v1373_v53 = vmul.f32 %v7620_v26, %v1307_v32  ;;  %v1341_v21 = vadd.f32 %v1340_v47, %v1307_v32 }
 0x237   :  { %v7631_v59 = vadd.f32 %v1050_v46, %v7421_v44  ;;  %v1052_v60 = vpop.f32.mrb[25].mxu0 }
 0x238   :  { %v7635_v0 = vadd.f32 %v1052_v60, %v7418_v33  ;;  %v1054_v27 = vpop.f32.mrb[26].mxu0  ;;  %v1407_v26 = vadd.f32 %v1406_v2, %v1373_v53 }
 0x239   :  { %9093 = vst [vmem:[#allocation59_spill] sm:$0xff] %v7631_v59  ;;  %v7640_v1 = vmul.f32 %v7631_v59, %v5087_v36  ;;  %v5973_v48 = vadd.f32 %v1054_v27, %v7421_v44  ;;  %v1056_v5 = vpop.f32.mrb[27].mxu0 }
 0x23a   :  { %9094 = vst [vmem:[#allocation60_spill] sm:$0xff] %v7635_v0  ;;  %v1309_v46 = vmul.f32 %v7635_v0, %v5087_v36  ;;  %v5974_v30 = vadd.f32 %v1056_v5, %v7418_v33 }
 0x23b   :  { %v1310_v56 = vmul.f32 %v5973_v48, %v5088_v37  ;;  %v1323_v60 = vadd.f32 %v1322_v9, %v7640_v1 }
 0x23c   :  { %v1375_v62 = vmul.f32 %v7635_v0, %v1309_v46  ;;  %v1311_v20 = vmul.f32 %v5974_v30, %v5088_v37  ;;  %v1342_v7 = vadd.f32 %v1341_v21, %v1309_v46 }
 0x23d   :  { %v1324_v29 = vadd.f32 %v1323_v60, %v1310_v56  ;;  %v7647_v55 = vmul.f32 %v5973_v48, %v1310_v56  ;;  %v9101_v60 = vld [vmem:[#allocation22_spill] sm:$0xff] }
 0x23e   :  { %v1343_v59 = vadd.f32 %v1342_v7, %v1311_v20  ;;  %v1377_v54 = vmul.f32 %v5974_v30, %v1311_v20  ;;  %v1408_v44 = vadd.f32 %v1407_v26, %v1375_v62  ;;  %v1352_v7 = vmul.f32 %v7430_v61, %v7456_v18 }
 0x23f   :  { %v1325_v27 = vrot.slane %v1324_v29, 4  ;;  %v1356_v18 = vmul.f32 %v7481_v6, %v7506_v15 }
 0x240   :  { %v1409_v32 = vadd.f32 %v1408_v44, %v1377_v54  ;;  %v1344_v47 = vrot.slane %v1343_v59, 4  ;;  %v1354_v54 = vmul.f32 %v7446_v4, %v7478_v39 }
 0x241   :  { %v1326_v36 = vadd.f32 %v1325_v27, %v1324_v29  ;;  %v9102_v29 = vld [vmem:[#allocation23_spill] sm:$0xff]  ;;  %v9104_v27 = vld [vmem:[#allocation25_spill] sm:$0xff] }
 0x242   :  { %v1410_v51 = vrot.slane %v1409_v32, 4  ;;  %v1345_v33 = vadd.f32 %v1344_v47, %v1343_v59  ;;  %v1350_v59 = vmul.f32 %v7443_v10, %v7474_v13 }
 0x243   :  { %v1327_v5 = vrot.slane %v1326_v36, 2 }
 0x244   :  { %v1411_v3 = vadd.f32 %v1410_v51, %v1409_v32  ;;  %v1346_v9 = vrot.slane %v1345_v33, 2  ;;  %v1378_v26 = vadd.f32 %v1352_v7, %v1350_v59  ;;  %v1358_v51 = vmul.f32 %v7493_v49, %v7523_v16  ;;  %v9105_v32 = vld [vmem:[#allocation26_spill] sm:$0xff]  ;;  %v9115_v7 = vld [vmem:[#allocation36_spill] sm:$0xff] }
 0x245   :  { %v1328_v2 = vadd.f32 %v1327_v5, %v1326_v36  ;;  %v9106_v36 = vld [vmem:[#allocation27_spill] sm:$0xff]  ;;  %v9108_v5 = vld [vmem:[#allocation29_spill] sm:$0xff] }
 0x246   :  { %v1347_v53 = vadd.f32 %v1346_v9, %v1345_v33  ;;  %v1412_v0 = vrot.slane %v1411_v3, 2  ;;  %v9109_v9 = vld [vmem:[#allocation30_spill] sm:$0xff]  ;;  %v6235_v59 = vld [vmem:[%s8947_s6 + $0x4] ss:$8 sps:$4 sm:$0xff]  }
 0x247   :  { %v1329_v37 = vrot.slane %v1328_v2, 1 }
 0x248   :  { %v1348_v21 = vrot.slane %v1347_v53, 1  ;;  %v1413_v46 = vadd.f32 %v1412_v0, %v1411_v3  ;;  %v1379_v3 = vadd.f32 %v1378_v26, %v1354_v54  ;;  %v9098_v0 = vld [vmem:[#allocation20_spill] sm:$0xff]  ;;  %v6238_v54 = vld [vmem:[%s8947_s6 + $0x14] ss:$8 sps:$4 sm:$0xff]  }
 0x249   :  { %v1330_v20 = vadd.f32 %v1329_v37, %v1328_v2  ;;  %v9111_v37 = vld [vmem:[#allocation32_spill] sm:$0xff] }
 0x24a   :  { %v1349_v48 = vadd.f32 %v1348_v21, %v1347_v53  ;;  %v1414_v56 = vrot.slane %v1413_v46, 1  ;;  %v1380_v13 = vadd.f32 %v1379_v3, %v1356_v18  ;;  %v9110_v53 = vld [vmem:[#allocation31_spill] sm:$0xff]  ;;  %v9112_v21 = vld [vmem:[#allocation33_spill] sm:$0xff] }
 0x24b   :  { %v6236_v26 = vld [vmem:[%s8947_s6 + $0x10] ss:$8 sps:$4 sm:$0xff]   ;;  %v6241_v3 = vld [vmem:[%s8947_s6 + $0x24] ss:$8 sps:$4 sm:$0xff]   ;;  %v6239_v18 = vld [vmem:[%s8947_s6 + $0x20] ss:$8 sps:$4 sm:$0xff]  }
 0x24c   :  { %1544 = vmatprep.mubr.f32.mxu1 %v1349_v48  ;;  %v1415_v62 = vadd.f32 %v1414_v56, %v1413_v46  ;;  %v1381_v39 = vadd.f32 %v1380_v13, %v1358_v51  ;;  %v9113_v46 = vld [vmem:[#allocation34_spill] sm:$0xff]  ;;  %v9114_v48 = vld [vmem:[#allocation35_spill] sm:$0xff] }
 0x24d   :  { %1545 = vmatmul.mubr.f32.vlgmr.msra.gmra.mrb[0].mxu1 %v1330_v20  ;;  %v6244_v51 = vld [vmem:[%s8947_s6 + $0x34] ss:$8 sps:$4 sm:$0xff]   ;;  %v6242_v13 = vld [vmem:[%s8947_s6 + $0x30] ss:$8 sps:$4 sm:$0xff]  }
 0x24e   :  { %5710 = vmatpush1.bf16.msra.mxu1 %v7305_v19  ;;  %1617 = vmatprep.mubr.f32.mxu1 %v1415_v62  ;;  %v1360_v19 = vmul.f32 %v7526_v41, %v7548_v38  ;;  %v9095_v38 = vld [vmem:[#allocation19_spill] sm:$0xff] }
 0x24f   :  { %5712 = vmatprep.subr.bf16.mxu1 %v7309_v22  ;;  %v1362_v22 = vmul.f32 %v7535_v35, %v7555_v24  ;;  %v9096_v24 = vld [vmem:[#allocation58_spill] sm:$0xff] }
 0x250   :  { %v6233_v62 = vld [vmem:[%s8947_s6] ss:$8 sps:$4 sm:$0xff]  }
 0x252   :  { %5714 = vmatpush1.bf16.msra.mxu1 %v7311_v25  ;;  %v1382_v25 = vadd.f32 %v1381_v39, %v1360_v19  ;;  %v6247_v39 = vld [vmem:[%s8947_s6 + $0x44] ss:$8 sps:$4 sm:$0xff]   ;;  %v6245_v19 = vld [vmem:[%s8947_s6 + $0x40] ss:$8 sps:$4 sm:$0xff]  }
 0x253   :  { %5716 = vmatprep.subr.bf16.mxu1 %v7315_v28  ;;  %v1364_v28 = vmul.f32 %v7558_v23, %v7578_v42 }
 0x254   :  { %v1383_v16 = vadd.f32 %v1382_v25, %v1362_v22  ;;  %v6250_v22 = vld [vmem:[%s8947_s6 + $0x54] ss:$8 sps:$4 sm:$0xff]   ;;  %v6248_v25 = vld [vmem:[%s8947_s6 + $0x50] ss:$8 sps:$4 sm:$0xff]  }
 0x256   :  { %5718 = vmatpush1.bf16.msra.mxu1 %v7317_v31  ;;  %v1366_v31 = vmul.f32 %v7564_v58, %v7585_v12 }
 0x257   :  { %5720 = vmatprep.subr.bf16.mxu1 %v7321_v34  ;;  %v1384_v34 = vadd.f32 %v1383_v16, %v1364_v28  ;;  %v6253_v16 = vld [vmem:[%s8947_s6 + $0x64] ss:$8 sps:$4 sm:$0xff]   ;;  %v6251_v28 = vld [vmem:[%s8947_s6 + $0x60] ss:$8 sps:$4 sm:$0xff]  }
 0x259   :  { %v1385_v15 = vadd.f32 %v1384_v34, %v1366_v31  ;;  %v6256_v31 = vld [vmem:[%s8947_s6 + $0x74] ss:$8 sps:$4 sm:$0xff]   ;;  %v6254_v34 = vld [vmem:[%s8947_s6 + $0x70] ss:$8 sps:$4 sm:$0xff]  }
 0x25a   :  { %5722 = vmatpush1.bf16.msra.mxu1 %v7323_v40  ;;  %v1368_v40 = vmul.f32 %v7588_v8, %v7602_v11  ;;  %v9100_v11 = vld [vmem:[#allocation21_spill] sm:$0xff] }
 0x25b   :  { %5724 = vmatprep.subr.bf16.mxu1 %v7327_v43  ;;  %v1370_v43 = vmul.f32 %v7605_v17, %v7611_v52 }
 0x25e   :  { %5726 = vmatpush1.bf16.msra.mxu1 %v7329_v50  ;;  %v1386_v50 = vadd.f32 %v1385_v15, %v1368_v40  ;;  %v6259_v15 = vld [vmem:[%s8947_s6 + $0x84] ss:$8 sps:$4 sm:$0xff]   ;;  %v6257_v40 = vld [vmem:[%s8947_s6 + $0x80] ss:$8 sps:$4 sm:$0xff]  }
 0x25f   :  { %5728 = vmatprep.subr.bf16.mxu1 %v7333_v14  ;;  %v9097_v14 = vld [vmem:[#allocation56_spill] sm:$0xff] }
 0x260   :  { %v1387_v12 = vadd.f32 %v1386_v50, %v1370_v43  ;;  %v1372_v42 = vmul.f32 %v9097_v14, %v9096_v24  ;;  %v6262_v43 = vld [vmem:[%s8947_s6 + $0x94] ss:$8 sps:$4 sm:$0xff]   ;;  %v6260_v50 = vld [vmem:[%s8947_s6 + $0x90] ss:$8 sps:$4 sm:$0xff]  }
 0x261   :  { %v6268_v24 = vld [vmem:[%s8947_s6 + $0xb4] ss:$8 sps:$4 sm:$0xff]  }
 0x262   :  { %5730 = vmatpush1.bf16.msra.mxu1 %v7335_v57  ;;  %v9099_v57 = vld [vmem:[#allocation59_spill] sm:$0xff] }
 0x263   :  { %5732 = vmatprep.subr.bf16.mxu1 %v7339_v63  ;;  %v1374_v30 = vmul.f32 %v9099_v57, %v7640_v1  ;;  %v1388_v63 = vadd.f32 %v1387_v12, %v1372_v42  ;;  %v9107_v1 = vld [vmem:[#allocation28_spill] sm:$0xff] }
 0x264   :  { %v6263_v12 = vld [vmem:[%s8947_s6 + $0xa0] ss:$8 sps:$4 sm:$0xff]   ;;  %v6266_v42 = vld [vmem:[%s8947_s6 + $0xb0] ss:$8 sps:$4 sm:$0xff]  }
 0x265   :  { %v1389_v52 = vadd.f32 %v1388_v63, %v1374_v30  ;;  %v6269_v30 = vld [vmem:[%s8947_s6 + $0xc0] ss:$8 sps:$4 sm:$0xff]   ;;  %v6272_v63 = vld [vmem:[%s8947_s6 + $0xd0] ss:$8 sps:$4 sm:$0xff]  }
 0x266   :  { %5734 = vmatpush1.bf16.msra.mxu1 %v7341_v45  ;;  %v9103_v45 = vld [vmem:[#allocation24_spill] sm:$0xff] }
 0x267   :  { %5736 = vmatprep.subr.bf16.mxu1 %v9095_v38  ;;  %v1390_v44 = vadd.f32 %v1389_v52, %v7647_v55  ;;  %v6265_v38 = vld [vmem:[%s8947_s6 + $0xa4] ss:$8 sps:$4 sm:$0xff]   ;;  %v6275_v52 = vld [vmem:[%s8947_s6 + $0xe0] ss:$8 sps:$4 sm:$0xff]  }
 0x269   :  { %v1391_v47 = vrot.slane %v1390_v44, 4 }
 0x26a   :  { %5738 = vmatpush1.bf16.msra.mxu1 %v9098_v0  ;;  %v6271_v0 = vld [vmem:[%s8947_s6 + $0xc4] ss:$8 sps:$4 sm:$0xff]  }
 0x26b   :  { %5740 = vmatprep.subr.bf16.mxu1 %v9100_v11  ;;  %v1392_v33 = vadd.f32 %v1391_v47, %v1390_v44  ;;  %v6274_v11 = vld [vmem:[%s8947_s6 + $0xd4] ss:$8 sps:$4 sm:$0xff]   ;;  %v6283_v44 = vld [vmem:[%s8947_s6 + $0x104] ss:$8 sps:$4 sm:$0xff]  }
 0x26d   :  { %v1393_v2 = vrot.slane %v1392_v33, 2 }
 0x26e   :  { %5742 = vmatpush1.bf16.msra.mxu1 %v9101_v60  ;;  %v6277_v60 = vld [vmem:[%s8947_s6 + $0xe4] ss:$8 sps:$4 sm:$0xff]  }
 0x26f   :  { %5744 = vmatprep.subr.bf16.mxu1 %v9102_v29  ;;  %v1394_v55 = vadd.f32 %v1393_v2, %v1392_v33  ;;  %v6280_v29 = vld [vmem:[%s8947_s6 + $0xf4] ss:$8 sps:$4 sm:$0xff]  }
 0x271   :  { %v1395_v56 = vrot.slane %v1394_v55, 1 }
 0x272   :  { %5746 = vmatpush1.bf16.msra.mxu1 %v9103_v45  ;;  %v6278_v45 = vld [vmem:[%s8947_s6 + $0xf0] ss:$8 sps:$4 sm:$0xff]  }
 0x273   :  { %5748 = vmatprep.subr.bf16.mxu1 %v9104_v27  ;;  %v1396_v20 = vadd.f32 %v1395_v56, %v1394_v55 }
 0x276   :  { %5750 = vmatpush1.bf16.msra.mxu1 %v9105_v32 }
 0x277   :  { %5752 = vmatprep.subr.bf16.mxu1 %v9106_v36 }
 0x27a   :  { %5754 = vmatpush1.bf16.msra.mxu1 %v9107_v1 }
 0x27b   :  { %5756 = vmatprep.subr.bf16.mxu1 %v9108_v5 }
 0x27e   :  { %5758 = vmatpush1.bf16.msra.mxu1 %v9109_v9 }
 0x27f   :  { %5760 = vmatprep.subr.bf16.mxu1 %v9110_v53 }
 0x282   :  { %5762 = vmatpush1.bf16.msra.mxu1 %v9111_v37 }
 0x283   :  { %5764 = vmatprep.subr.bf16.mxu1 %v9112_v21 }
 0x286   :  { %5766 = vmatpush1.bf16.msra.mxu1 %v9113_v46 }
 0x287   :  { %5768 = vmatprep.subr.bf16.mxu1 %v9114_v48 }
 0x28a   :  { %5770 = vmatpush1.bf16.msra.mxu1 %v9115_v7  ;;  %v6879_v7 = vmov 1966171168  }
 0x28b   :  { %2778 = vmatprep.subr.bf16.mxu1 %v6235_v59 }
 0x28d   :  { %1618 = vmatmul.mubr.f32.vlgmr.msra.gmra.mrb[2].mxu1 %v1396_v20  ;;  %v1641_v20 = vunpack.c.l.s4 %v6879_v7  ;;  %v9133_v7 = vld [vmem:[#allocation57_spill] sm:$0xff] }
 0x28e   :  { %2779 = vmatpush1.bf16.msra.mxu1 %v6233_v62 }
 0x28f   :  { %2780 = vmatprep.subr.bf16.mxu1 %v6238_v54  ;;  %v1642_v62 = vunpack.c.0.s8 %v1641_v20  ;;  %v9116_v54 = vld [vmem:[#allocation37_spill] sm:$0xff] }
 0x292   :  { %2781 = vmatpush1.bf16.msra.mxu1 %v6236_v26  ;;  %v7807_v26 = vsub.s32 %v1642_v62, %v9116_v54 }
 0x293   :  { %2782 = vmatprep.subr.bf16.mxu1 %v6241_v3 }
 0x294   :  { %9117 = vst [vmem:[#allocation19_spill] sm:$0xff] %v7807_v26 }
 0x296   :  { %2783 = vmatpush1.bf16.msra.mxu1 %v6239_v18 }
 0x297   :  { %2784 = vmatprep.subr.bf16.mxu1 %v6244_v51 }
 0x29a   :  { %2785 = vmatpush1.bf16.msra.mxu1 %v6242_v13  ;;  %v1632_v13 = vld [vmem:[%s9118_s29] sm:$0x3] }
 0x29b   :  { %2786 = vmatprep.subr.bf16.mxu1 %v6247_v39 }
 0x29e   :  { %2787 = vmatpush1.bf16.msra.mxu1 %v6245_v19 }
 0x29f   :  { %2788 = vmatprep.subr.bf16.mxu1 %v6250_v22  ;;  %v9119_v22 = vld [vmem:[#allocation39_spill] sm:$0xff] }
 0x2a2   :  { %2789 = vmatpush1.bf16.msra.mxu1 %v6248_v25 }
 0x2a3   :  { %2790 = vmatprep.subr.bf16.mxu1 %v6253_v16  ;;  %v9120_v16 = vld [vmem:[#allocation38_spill] sm:$0xff] }
 0x2a6   :  { %2791 = vmatpush1.bf16.msra.mxu1 %v6251_v28 }
 0x2a7   :  { %2792 = vmatprep.subr.bf16.mxu1 %v6256_v31 }
 0x2aa   :  { %2793 = vmatpush1.bf16.msra.mxu1 %v6254_v34 }
 0x2ab   :  { %2794 = vmatprep.subr.bf16.mxu1 %v6259_v15 }
 0x2ae   :  { %2795 = vmatpush1.bf16.msra.mxu1 %v6257_v40 }
 0x2af   :  { %2796 = vmatprep.subr.bf16.mxu1 %v6262_v43  ;;  %v9121_v43 = vld [vmem:[#allocation43_spill] sm:$0xff] }
 0x2b2   :  { %2797 = vmatpush1.bf16.msra.mxu1 %v6260_v50 }
 0x2b3   :  { %2798 = vmatprep.subr.bf16.mxu1 %v6265_v38  ;;  %v9122_v38 = vld [vmem:[#allocation44_spill] sm:$0xff] }
 0x2b6   :  { %2799 = vmatpush1.bf16.msra.mxu1 %v6263_v12 }
 0x2b7   :  { %2800 = vmatprep.subr.bf16.mxu1 %v6268_v24  ;;  %v1656_v24 = vld [vmem:[%s9123_s21] sm:$0x3] }
 0x2ba   :  { %2801 = vmatpush1.bf16.msra.mxu1 %v6266_v42 }
 0x2bb   :  { %2802 = vmatprep.subr.bf16.mxu1 %v6271_v0 }
 0x2be   :  { %2803 = vmatpush1.bf16.msra.mxu1 %v6269_v30  ;;  %v9124_v30 = vld [vmem:[#allocation49_spill] sm:$0xff] }
 0x2bf   :  { %2804 = vmatprep.subr.bf16.mxu1 %v6274_v11 }
 0x2c2   :  { %2805 = vmatpush1.bf16.msra.mxu1 %v6272_v63  ;;  %v9125_v63 = vld [vmem:[#allocation51_spill] sm:$0xff] }
 0x2c3   :  { %2806 = vmatprep.subr.bf16.mxu1 %v6277_v60 }
 0x2c6   :  { %2807 = vmatpush1.bf16.msra.mxu1 %v6275_v52 }
 0x2c7   :  { %2808 = vmatprep.subr.bf16.mxu1 %v6280_v29 }
 0x2ca   :  { %2809 = vmatpush1.bf16.msra.mxu1 %v6278_v45 }
 0x2cb   :  { %2839 = vmatprep.subr.bf16.mxu1 %v6283_v44  ;;  %v9126_v44 = vld [vmem:[#allocation53_spill] sm:$0xff] }
 0x320   :  { %v1546_v27 = vpop.f32.mrb[0].mxu1 }
 0x321   :  { %v1548_v32 = vpop.f32.mrb[1].mxu1  ;;  %v1551_v47 = vmul.f32 0.0025510204, %v1546_v27 }
 0x322   :  { %v1552_v36 = vmul.f32 0.0025510204, %v1548_v32 }
 0x323   :  { %v1626_v33 = vmul.f32 %v1551_v47, %v1551_v47 }
 0x324   :  { %v1627_v2 = vmul.f32 %v1552_v36, %v1552_v36 }
 0x360   :  { %v1619_v1 = vpop.f32.mrb[2].mxu1 }
 0x361   :  { %v1624_v5 = vmul.f32 0.0025510204, %v1619_v1  ;;  %v1621_v9 = vpop.f32.mrb[3].mxu1  ;;  %v9128_v1 = vld [vmem:[#allocation47_spill] sm:$0xff] }
 0x362   :  { %v1625_v53 = vmul.f32 0.0025510204, %v1621_v9  ;;  %v9129_v9 = vld [vmem:[#allocation50_spill] sm:$0xff] }
 0x363   :  { %v1628_v37 = vsub.f32 %v1624_v5, %v1626_v33 }
 0x364   :  { %v1629_v55 = vsub.f32 %v1625_v53, %v1627_v2  ;;  %v9130_v53 = vld [vmem:[#allocation52_spill] sm:$0xff] }
 0x365   :  { %v1630_v21 = vmax.f32 %v1628_v37, 0.0 }
 0x366   :  { %v1631_v46 = vmax.f32 %v1629_v55, 0.0  ;;  %v9131_v55 = vld [vmem:[#allocation54_spill] sm:$0xff] }
 0x367   :  { %v1633_v48 = vadd.f32 1e-05, %v1630_v21 }
 0x368   :  { %v1634_v56 = vadd.f32 1e-05, %v1631_v46 }
 0x369   :  { %6609 = vrsqrt.f32 %v1633_v48 }
 0x36a   :  { %6611 = vrsqrt.f32 %v1634_v56 }
 0x373   :  { %v6610_v59 = vpop.eup %6609 }
 0x374   :  { %v6612_v3 = vpop.eup %6611 }
 0x375   :  { %v1639_v18 = vcombine.low %v6610_v59, %v6612_v3  ;;  %v9134_v59 = vld [vmem:[#allocation60_spill] sm:$0xff] }
 0x377   :  { %v1646_v51 = vrot.slane %v1639_v18, %v7807_v26 }
 0x379   :  { %v1653_v39 = vrot.slane %v1646_v51, %v7807_v26 }
 0x37b   :  { %v1655_v19 = vmul.f32 %v1653_v39, %v1632_v13 }
 0x37d   :  { %v1661_v25 = vrot.slane %v1655_v19, %v9119_v22  ;;  %v1665_v28 = vrot.slane %v1655_v19, %v9120_v16 }
 0x37f   :  { %v1668_v31 = vmul.f32 %v1661_v25, %v1551_v47  ;;  %v1669_v34 = vmul.f32 %v1665_v28, %v1552_v36  ;;  %v1690_v50 = vmul.f32 %v9121_v43, %v1665_v28  ;;  %v1694_v12 = vmul.f32 %v9122_v38, %v1665_v28  ;;  %v9127_v47 = vld [vmem:[#allocation41_spill] sm:$0xff] }
 0x380   :  { %v1689_v42 = vmul.f32 %v7443_v10, %v1661_v25  ;;  %v1693_v0 = vmul.f32 %v7446_v4, %v1661_v25  ;;  %v1698_v11 = vmul.f32 %v9124_v30, %v1665_v28  ;;  %v1702_v60 = vmul.f32 %v9125_v63, %v1665_v28 }
 0x381   :  { %v1672_v15 = vcombine.low %v1668_v31, %v1669_v34  ;;  %v1697_v29 = vmul.f32 %v7493_v49, %v1661_v25  ;;  %v1701_v45 = vmul.f32 %v7535_v35, %v1661_v25  ;;  %v1706_v27 = vmul.f32 %v9126_v44, %v1665_v28  ;;  %v6281_v44 = vld [vmem:[%s8947_s6 + $0x100] ss:$8 sps:$4 sm:$0xff]  }
 0x382   :  { %v1705_v32 = vmul.f32 %v7564_v58, %v1661_v25  ;;  %v1692_v36 = vmul.f32 %v9127_v47, %v1665_v28  ;;  %v1696_v10 = vmul.f32 %v9128_v1, %v1665_v28  ;;  %v1691_v4 = vmul.f32 %v7430_v61, %v1661_v25  ;;  %v9132_v61 = vld [vmem:[#allocation55_spill] sm:$0xff]  ;;  %v6286_v47 = vld [vmem:[%s8947_s6 + $0x114] ss:$8 sps:$4 sm:$0xff]  }
 0x383   :  { %v1679_v40 = vrot.slane %v1672_v15, %v7807_v26  ;;  %v1695_v5 = vmul.f32 %v7481_v6, %v1661_v25  ;;  %v1700_v2 = vmul.f32 %v9129_v9, %v1665_v28  ;;  %v1704_v37 = vmul.f32 %v9130_v53, %v1665_v28  ;;  %v6289_v53 = vld [vmem:[%s8947_s6 + $0x124] ss:$8 sps:$4 sm:$0xff]  }
 0x384   :  { %v1699_v49 = vmul.f32 %v7526_v41, %v1661_v25  ;;  %v1703_v35 = vmul.f32 %v7558_v23, %v1661_v25  ;;  %v1708_v21 = vmul.f32 %v9131_v55, %v1665_v28  ;;  %v1707_v58 = vmul.f32 %v7588_v8, %v1661_v25 }
 0x385   :  { %v1686_v52 = vrot.slane %v1679_v40, %v7807_v26  ;;  %v1710_v56 = vmul.f32 %v9132_v61, %v1665_v28  ;;  %v1709_v6 = vmul.f32 %v7605_v17, %v1661_v25  ;;  %v1712_v20 = vmul.f32 %v9133_v7, %v1665_v28  ;;  %v6292_v61 = vld [vmem:[%s8947_s6 + $0x134] ss:$8 sps:$4 sm:$0xff]  }
 0x386   :  { %v1711_v62 = vmul.f32 %v9097_v14, %v1661_v25  ;;  %v1714_v41 = vmul.f32 %v9134_v59, %v1665_v28  ;;  %v1713_v23 = vmul.f32 %v9099_v57, %v1661_v25 }
 0x387   :  { %v1688_v33 = vsub.f32 %v1656_v24, %v1686_v52 }
 0x389   :  { %v1719_v46 = vrot.slane %v1688_v33, %v9119_v22  ;;  %v1723_v48 = vrot.slane %v1688_v33, %v9120_v16 }
 0x38b   :  { %v1727_v54 = vadd.f32 %v1723_v48, %v1690_v50  ;;  %v1731_v3 = vadd.f32 %v1723_v48, %v1694_v12  ;;  %v1726_v18 = vadd.f32 %v1719_v46, %v1689_v42  ;;  %v1730_v8 = vadd.f32 %v1719_v46, %v1693_v0 }
 0x38c   :  { %v1735_v51 = vadd.f32 %v1723_v48, %v1698_v11  ;;  %v1739_v13 = vadd.f32 %v1723_v48, %v1702_v60  ;;  %v1734_v39 = vadd.f32 %v1719_v46, %v1697_v29  ;;  %v1738_v19 = vadd.f32 %v1719_v46, %v1701_v45 }
 0x38d   :  { %6613 = vtanh.f32 %v1727_v54  ;;  %v1743_v31 = vadd.f32 %v1723_v48, %v1706_v27  ;;  %v1742_v34 = vadd.f32 %v1719_v46, %v1705_v32  ;;  %v1729_v17 = vadd.f32 %v1723_v48, %v1692_v36 }
 0x38e   :  { %6615 = vtanh.f32 %v1731_v3  ;;  %v1733_v15 = vadd.f32 %v1723_v48, %v1696_v10  ;;  %v1728_v40 = vadd.f32 %v1719_v46, %v1691_v4  ;;  %v1732_v14 = vadd.f32 %v1719_v46, %v1695_v5  ;;  %v6284_v5 = vld [vmem:[%s8947_s6 + $0x110] ss:$8 sps:$4 sm:$0xff]   ;;  %v6295_v3 = vld [vmem:[%s8947_s6 + $0x144] ss:$8 sps:$4 sm:$0xff]  }
 0x38f   :  { %6617 = vtanh.f32 %v1726_v18  ;;  %v1737_v28 = vadd.f32 %v1723_v48, %v1700_v2  ;;  %v1741_v43 = vadd.f32 %v1723_v48, %v1704_v37  ;;  %v1736_v57 = vadd.f32 %v1719_v46, %v1699_v49 }
 0x390   :  { %6619 = vtanh.f32 %v1730_v8  ;;  %v1740_v25 = vadd.f32 %v1719_v46, %v1703_v35  ;;  %v1745_v50 = vadd.f32 %v1723_v48, %v1708_v21  ;;  %v1744_v38 = vadd.f32 %v1719_v46, %v1707_v58 }
 0x391   :  { %6621 = vtanh.f32 %v1735_v51  ;;  %v1747_v12 = vadd.f32 %v1723_v48, %v1710_v56  ;;  %v1746_v24 = vadd.f32 %v1719_v46, %v1709_v6  ;;  %v7849_v42 = vadd.f32 %v1723_v48, %v1712_v20 }
 0x392   :  { %6623 = vtanh.f32 %v1739_v13  ;;  %v7851_v0 = vadd.f32 %v1719_v46, %v1711_v62  ;;  %v7853_v30 = vadd.f32 %v1723_v48, %v1714_v41  ;;  %v7855_v11 = vadd.f32 %v1719_v46, %v1713_v23  ;;  %v6287_v46 = vld [vmem:[%s8947_s6 + $0x120] ss:$8 sps:$4 sm:$0xff]   ;;  %v6290_v41 = vld [vmem:[%s8947_s6 + $0x130] ss:$8 sps:$4 sm:$0xff]  }
 0x393   :  { %6625 = vtanh.f32 %v1734_v39 }
 0x394   :  { %6627 = vtanh.f32 %v1738_v19 }
 0x395   :  { %6629 = vtanh.f32 %v1743_v31  ;;  %v6293_v31 = vld [vmem:[%s8947_s6 + $0x140] ss:$8 sps:$4 sm:$0xff]  }
 0x396   :  { %6631 = vtanh.f32 %v1742_v34 }
 0x397   :  { %v6614_v63 = vpop.eup %6613  ;;  %6633 = vtanh.f32 %v1729_v17 }
 0x398   :  { %v7857_v60 = vpop.eup %6615  ;;  %6635 = vtanh.f32 %v1733_v15 }
 0x399   :  { %v6618_v52 = vpop.eup %6617  ;;  %v1779_v29 = vpack.c.bf16 %v7857_v60, %v6614_v63  ;;  %6637 = vtanh.f32 %v1728_v40  ;;  %v6298_v40 = vld [vmem:[%s8947_s6 + $0x154] ss:$8 sps:$4 sm:$0xff]   ;;  %v6307_v63 = vld [vmem:[%s8947_s6 + $0x184] ss:$8 sps:$4 sm:$0xff]  }
 0x39a   :  { %v7860_v45 = vpop.eup %6619  ;;  %6639 = vtanh.f32 %v1732_v14 }
 0x39b   :  { %v7865_v27 = vpop.eup %6621  ;;  %2810 = vmatprep.mubr.bf16.mxu1 %v1779_v29  ;;  %v1778_v32 = vpack.c.bf16 %v7860_v45, %v6618_v52  ;;  %6641 = vtanh.f32 %v1737_v28  ;;  %v6305_v52 = vld [vmem:[%s8947_s6 + $0x180] ss:$8 sps:$4 sm:$0xff]   ;;  %v6310_v29 = vld [vmem:[%s8947_s6 + $0x194] ss:$8 sps:$4 sm:$0xff]  }
 0x39c   :  { %v7871_v36 = vpop.eup %6623  ;;  %6643 = vtanh.f32 %v1741_v43  ;;  %v1783_v1 = vpack.c.bf16 %v7865_v27, %v7857_v60  ;;  %v6352_v60 = vld [vmem:[%s8947_s6 + $0x274] ss:$8 sps:$4 sm:$0xff]  }
 0x39d   :  { %v7875_v10 = vpop.eup %6625  ;;  %2811 = vmatmul.mubr.bf16.vlgmr.msra.gmra.mrb[4].mxu1 %v1778_v32  ;;  %v7879_v4 = vpack.c.bf16 %v7871_v36, %v7865_v27  ;;  %6645 = vtanh.f32 %v1736_v57  ;;  %v6313_v32 = vld [vmem:[%s8947_s6 + $0x1a4] ss:$8 sps:$4 sm:$0xff]   ;;  %v6350_v27 = vld [vmem:[%s8947_s6 + $0x270] ss:$8 sps:$4 sm:$0xff]  }
 0x39e   :  { %v7881_v33 = vpop.eup %6627  ;;  %2840 = vmatpush1.bf16.msra.mxu1 %v6281_v44  ;;  %6647 = vtanh.f32 %v1740_v25  ;;  %v1782_v9 = vpack.c.bf16 %v7875_v10, %v7860_v45  ;;  %v6296_v25 = vld [vmem:[%s8947_s6 + $0x150] ss:$8 sps:$4 sm:$0xff]   ;;  %v6383_v45 = vld [vmem:[%s8947_s6 + $0x320] ss:$8 sps:$4 sm:$0xff]  }
 0x39f   :  { %v7888_v2 = vpop.eup %6629  ;;  %2820 = vmatprep.mubr.bf16.mxu1 %v7879_v4  ;;  %2841 = vmatprep.subr.bf16.mxu1 %v6286_v47  ;;  %v7896_v37 = vpack.c.bf16 %v7881_v33, %v7875_v10  ;;  %6649 = vtanh.f32 %v1745_v50  ;;  %v6301_v50 = vld [vmem:[%s8947_s6 + $0x164] ss:$8 sps:$4 sm:$0xff]   ;;  %v6308_v44 = vld [vmem:[%s8947_s6 + $0x190] ss:$8 sps:$4 sm:$0xff]   ;;  %v6311_v47 = vld [vmem:[%s8947_s6 + $0x1a0] ss:$8 sps:$4 sm:$0xff]  }
 0x3a0   :  { %v7898_v49 = vpop.eup %6631  ;;  %6651 = vtanh.f32 %v1744_v38  ;;  %v1791_v35 = vpack.c.bf16 %v7888_v2, %v7871_v36  ;;  %v1797_v7 = vpack.c.bf16 %v7888_v2, %v7888_v2  ;;  %v6299_v38 = vld [vmem:[%s8947_s6 + $0x160] ss:$8 sps:$4 sm:$0xff]   ;;  %v6388_v36 = vld [vmem:[%s8947_s6 + $0x334] ss:$8 sps:$4 sm:$0xff]  }
 0x3a1   :  { %v6634_v55 = vpop.eup %6633  ;;  %v1790_v21 = vpack.c.bf16 %v7898_v49, %v7881_v33  ;;  %6653 = vtanh.f32 %v1747_v12  ;;  %v1796_v15 = vpack.c.bf16 %v7898_v49, %v7898_v49  ;;  %v6304_v12 = vld [vmem:[%s8947_s6 + $0x174] ss:$8 sps:$4 sm:$0xff]  }
 0x3a2   :  { %v7904_v58 = vpop.eup %6635  ;;  %2842 = vmatpush1.bf16.msra.mxu1 %v6284_v5  ;;  %6655 = vtanh.f32 %v1746_v24  ;;  %v6302_v24 = vld [vmem:[%s8947_s6 + $0x170] ss:$8 sps:$4 sm:$0xff]   ;;  %v6316_v5 = vld [vmem:[%s8947_s6 + $0x1b4] ss:$8 sps:$4 sm:$0xff]  }
 0x3a3   :  { %v7909_v48 = vpop.eup %6637  ;;  %2843 = vmatprep.subr.bf16.mxu1 %v6289_v53  ;;  %v1781_v56 = vpack.c.bf16 %v7904_v58, %v6634_v55  ;;  %v6314_v53 = vld [vmem:[%s8947_s6 + $0x1b0] ss:$8 sps:$4 sm:$0xff]   ;;  %v6319_v55 = vld [vmem:[%s8947_s6 + $0x1c4] ss:$8 sps:$4 sm:$0xff]   ;;  %6657 = vtanh.f32 %v7849_v42 }
 0x3a4   :  { %v7915_v6 = vpop.eup %6639  ;;  %v6428_v42 = vld [vmem:[%s8947_s6 + $0x410] ss:$8 sps:$4 sm:$0xff]   ;;  %6659 = vtanh.f32 %v7851_v0 }
 0x3a5   :  { %v7919_v20 = vpop.eup %6641  ;;  %2821 = vmatmul.mubr.bf16.gmra.mrb[8].mxu1 %v7896_v37  ;;  %v1780_v62 = vpack.c.bf16 %v7915_v6, %v7909_v48  ;;  %v6335_v48 = vld [vmem:[%s8947_s6 + $0x220] ss:$8 sps:$4 sm:$0xff]   ;;  %v6434_v0 = vld [vmem:[%s8947_s6 + $0x430] ss:$8 sps:$4 sm:$0xff]   ;;  %6661 = vtanh.f32 %v7853_v30 }
 0x3a6   :  { %v7924_v59 = vpop.eup %6643  ;;  %2844 = vmatpush1.bf16.msra.mxu1 %v6287_v46  ;;  %2830 = vmatprep.mubr.bf16.mxu1 %v1797_v7  ;;  %v1785_v23 = vpack.c.bf16 %v7919_v20, %v7904_v58  ;;  %v6317_v46 = vld [vmem:[%s8947_s6 + $0x1c0] ss:$8 sps:$4 sm:$0xff]   ;;  %v6325_v7 = vld [vmem:[%s8947_s6 + $0x1e4] ss:$8 sps:$4 sm:$0xff]   ;;  %6663 = vtanh.f32 %v7855_v11 }
 0x3a7   :  { %v7931_v54 = vpop.eup %6645  ;;  %2845 = vmatprep.subr.bf16.mxu1 %v6292_v61  ;;  %v1789_v18 = vpack.c.bf16 %v7924_v59, %v7919_v20  ;;  %v6322_v61 = vld [vmem:[%s8947_s6 + $0x1d4] ss:$8 sps:$4 sm:$0xff]   ;;  %v6395_v20 = vld [vmem:[%s8947_s6 + $0x360] ss:$8 sps:$4 sm:$0xff]  }
 0x3a8   :  { %v7938_v8 = vpop.eup %6647  ;;  %v1784_v51 = vpack.c.bf16 %v7931_v54, %v7915_v6  ;;  %v6431_v6 = vld [vmem:[%s8947_s6 + $0x420] ss:$8 sps:$4 sm:$0xff]  }
 0x3a9   :  { %v7942_v13 = vpop.eup %6649  ;;  %v1788_v39 = vpack.c.bf16 %v7938_v8, %v7931_v54  ;;  %v3172_v30 = vld [vmem:[#allocation7 + $0xe8] sm:$0xff] }
 0x3aa   :  { %v7946_v19 = vpop.eup %6651  ;;  %2846 = vmatpush1.bf16.msra.mxu1 %v6290_v41  ;;  %v1793_v34 = vpack.c.bf16 %v7942_v13, %v7924_v59  ;;  %v6323_v41 = vld [vmem:[%s8947_s6 + $0x1e0] ss:$8 sps:$4 sm:$0xff]   ;;  %v6436_v59 = vld [vmem:[%s8947_s6 + $0x434] ss:$8 sps:$4 sm:$0xff]  }
 0x3ab   :  { %v7953_v17 = vpop.eup %6653  ;;  %2847 = vmatprep.subr.bf16.mxu1 %v6295_v3  ;;  %v1792_v14 = vpack.c.bf16 %v7946_v19, %v7938_v8  ;;  %v6328_v3 = vld [vmem:[%s8947_s6 + $0x1f4] ss:$8 sps:$4 sm:$0xff]   ;;  %v3176_v11 = vld [vmem:[#allocation7 + $0x108] sm:$0xff] }
 0x3ac   :  { %v7962_v28 = vpop.eup %6655  ;;  %v1795_v43 = vpack.c.bf16 %v7953_v17, %v7888_v2  ;;  %v1801_v10 = vpack.c.bf16 %v7953_v17, %v7953_v17  ;;  %v6442_v8 = vld [vmem:[%s8947_s6 + $0x454] ss:$8 sps:$4 sm:$0xff]  }
 0x3ad   :  { %2831 = vmatmul.mubr.bf16.gmra.mrb[12].mxu1 %v1796_v15  ;;  %v1794_v57 = vpack.c.bf16 %v7962_v28, %v7898_v49  ;;  %v6331_v15 = vld [vmem:[%s8947_s6 + $0x204] ss:$8 sps:$4 sm:$0xff]   ;;  %v1800_v33 = vpack.c.bf16 %v7962_v28, %v7962_v28  ;;  %v3178_v17 = vld [vmem:[#allocation7 + $0x118] sm:$0xff] }
 0x3ae   :  { %2848 = vmatpush1.bf16.msra.mxu1 %v6293_v31  ;;  %2871 = vmatprep.mubr.bf16.mxu1 %v1781_v56  ;;  %v6320_v56 = vld [vmem:[%s8947_s6 + $0x1d0] ss:$8 sps:$4 sm:$0xff]   ;;  %v3175_v49 = vld [vmem:[#allocation7 + $0x100] sm:$0xff]  ;;  %v8420_v28 = vpack.c.bf16 %v3178_v17, %v3176_v11 }
 0x3af   :  { %2849 = vmatprep.subr.bf16.mxu1 %v6298_v40  ;;  %v6326_v31 = vld [vmem:[%s8947_s6 + $0x1f0] ss:$8 sps:$4 sm:$0xff]   ;;  %v6329_v40 = vld [vmem:[%s8947_s6 + $0x200] ss:$8 sps:$4 sm:$0xff]  }
 0x3b0   :  { %v3203_v11 = vld [vmem:[#allocation7 + $0x1e0] sm:$0xff]  ;;  %v3205_v17 = vld [vmem:[#allocation7 + $0x1f0] sm:$0xff] }
 0x3b2   :  { %2850 = vmatpush1.bf16.msra.mxu1 %v6296_v25  ;;  %v6334_v25 = vld [vmem:[%s8947_s6 + $0x214] ss:$8 sps:$4 sm:$0xff]  }
 0x3b3   :  { %2851 = vmatprep.subr.bf16.mxu1 %v6301_v50  ;;  %v6332_v50 = vld [vmem:[%s8947_s6 + $0x210] ss:$8 sps:$4 sm:$0xff]  }
 0x3b6   :  { %2852 = vmatpush1.bf16.msra.mxu1 %v6299_v38  ;;  %v6337_v38 = vld [vmem:[%s8947_s6 + $0x224] ss:$8 sps:$4 sm:$0xff]  }
 0x3b7   :  { %2853 = vmatprep.subr.bf16.mxu1 %v6304_v12  ;;  %v6338_v12 = vld [vmem:[%s8947_s6 + $0x230] ss:$8 sps:$4 sm:$0xff]  }
 0x3ba   :  { %2854 = vmatpush1.bf16.msra.mxu1 %v6302_v24  ;;  %v6343_v24 = vld [vmem:[%s8947_s6 + $0x244] ss:$8 sps:$4 sm:$0xff]  }
 0x3bb   :  { %2855 = vmatprep.subr.bf16.mxu1 %v6307_v63  ;;  %v6341_v63 = vld [vmem:[%s8947_s6 + $0x240] ss:$8 sps:$4 sm:$0xff]  }
 0x3be   :  { %2856 = vmatpush1.bf16.msra.mxu1 %v6305_v52  ;;  %v1798_v52 = vpack.c.bf16 %v7946_v19, %v7946_v19  ;;  %v6440_v19 = vld [vmem:[%s8947_s6 + $0x450] ss:$8 sps:$4 sm:$0xff]  }
 0x3bf   :  { %2857 = vmatprep.subr.bf16.mxu1 %v6310_v29  ;;  %v6344_v29 = vld [vmem:[%s8947_s6 + $0x250] ss:$8 sps:$4 sm:$0xff]  }
 0x3c2   :  { %2858 = vmatpush1.bf16.msra.mxu1 %v6308_v44  ;;  %v6349_v44 = vld [vmem:[%s8947_s6 + $0x264] ss:$8 sps:$4 sm:$0xff]  }
 0x3c3   :  { %2859 = vmatprep.subr.bf16.mxu1 %v6313_v32  ;;  %v6347_v32 = vld [vmem:[%s8947_s6 + $0x260] ss:$8 sps:$4 sm:$0xff]  }
 0x3c6   :  { %2860 = vmatpush1.bf16.msra.mxu1 %v6311_v47  ;;  %v6353_v47 = vld [vmem:[%s8947_s6 + $0x280] ss:$8 sps:$4 sm:$0xff]  }
 0x3c7   :  { %2861 = vmatprep.subr.bf16.mxu1 %v6316_v5  ;;  %v6358_v5 = vld [vmem:[%s8947_s6 + $0x294] ss:$8 sps:$4 sm:$0xff]  }
 0x3ca   :  { %2862 = vmatpush1.bf16.msra.mxu1 %v6314_v53  ;;  %v6356_v53 = vld [vmem:[%s8947_s6 + $0x290] ss:$8 sps:$4 sm:$0xff]  }
 0x3cb   :  { %2863 = vmatprep.subr.bf16.mxu1 %v6319_v55  ;;  %v6361_v55 = vld [vmem:[%s8947_s6 + $0x2a4] ss:$8 sps:$4 sm:$0xff]  }
 0x3ce   :  { %2864 = vmatpush1.bf16.msra.mxu1 %v6317_v46  ;;  %v6359_v46 = vld [vmem:[%s8947_s6 + $0x2a0] ss:$8 sps:$4 sm:$0xff]  }
 0x3cf   :  { %2865 = vmatprep.subr.bf16.mxu1 %v6322_v61  ;;  %v6364_v61 = vld [vmem:[%s8947_s6 + $0x2b4] ss:$8 sps:$4 sm:$0xff]  }
 0x3d2   :  { %2866 = vmatpush1.bf16.msra.mxu1 %v6320_v56  ;;  %v6362_v56 = vld [vmem:[%s8947_s6 + $0x2b0] ss:$8 sps:$4 sm:$0xff]  }
 0x3d3   :  { %2867 = vmatprep.subr.bf16.mxu1 %v6325_v7  ;;  %v6367_v7 = vld [vmem:[%s8947_s6 + $0x2c4] ss:$8 sps:$4 sm:$0xff]  }
 0x3d6   :  { %2868 = vmatpush1.bf16.msra.mxu1 %v6323_v41  ;;  %v6365_v41 = vld [vmem:[%s8947_s6 + $0x2c0] ss:$8 sps:$4 sm:$0xff]  }
 0x3d7   :  { %2869 = vmatprep.subr.bf16.mxu1 %v6328_v3  ;;  %v6370_v3 = vld [vmem:[%s8947_s6 + $0x2d4] ss:$8 sps:$4 sm:$0xff]  }
 0x3da   :  { %2870 = vmatpush1.bf16.msra.mxu1 %v6326_v31  ;;  %v6368_v31 = vld [vmem:[%s8947_s6 + $0x2d0] ss:$8 sps:$4 sm:$0xff]  }
 0x3db   :  { %2900 = vmatprep.subr.bf16.mxu1 %v6331_v15  ;;  %v6373_v15 = vld [vmem:[%s8947_s6 + $0x2e4] ss:$8 sps:$4 sm:$0xff]  }
 0x3dd   :  { %2872 = vmatmul.mubr.bf16.vlgmr.msra.gmra.mrb[4].mxu1 %v1780_v62  ;;  %v6340_v62 = vld [vmem:[%s8947_s6 + $0x234] ss:$8 sps:$4 sm:$0xff]  }
 0x3de   :  { %2881 = vmatprep.mubr.bf16.mxu1 %v1789_v18  ;;  %2901 = vmatpush1.bf16.msra.mxu1 %v6329_v40  ;;  %v1799_v18 = vpack.c.bf16 %v7942_v13, %v7942_v13  ;;  %v6371_v40 = vld [vmem:[%s8947_s6 + $0x2e0] ss:$8 sps:$4 sm:$0xff]  }
 0x3df   :  { %2902 = vmatprep.subr.bf16.mxu1 %v6334_v25  ;;  %v6376_v25 = vld [vmem:[%s8947_s6 + $0x2f4] ss:$8 sps:$4 sm:$0xff]  }
 0x3e2   :  { %2903 = vmatpush1.bf16.msra.mxu1 %v6332_v50  ;;  %v6374_v50 = vld [vmem:[%s8947_s6 + $0x2f0] ss:$8 sps:$4 sm:$0xff]  }
 0x3e3   :  { %2904 = vmatprep.subr.bf16.mxu1 %v6337_v38  ;;  %v6379_v38 = vld [vmem:[%s8947_s6 + $0x304] ss:$8 sps:$4 sm:$0xff]  }
 0x3e5   :  { %2882 = vmatmul.mubr.bf16.gmra.mrb[8].mxu1 %v1788_v39  ;;  %v6346_v39 = vld [vmem:[%s8947_s6 + $0x254] ss:$8 sps:$4 sm:$0xff]  }
 0x3e6   :  { %2891 = vmatprep.mubr.bf16.mxu1 %v1799_v18  ;;  %2905 = vmatpush1.bf16.msra.mxu1 %v6335_v48  ;;  %v6377_v48 = vld [vmem:[%s8947_s6 + $0x300] ss:$8 sps:$4 sm:$0xff]   ;;  %v6380_v18 = vld [vmem:[%s8947_s6 + $0x310] ss:$8 sps:$4 sm:$0xff]  }
 0x3e7   :  { %2906 = vmatprep.subr.bf16.mxu1 %v6340_v62  ;;  %v6382_v62 = vld [vmem:[%s8947_s6 + $0x314] ss:$8 sps:$4 sm:$0xff]  }
 0x3ea   :  { %2907 = vmatpush1.bf16.msra.mxu1 %v6338_v12  ;;  %v6385_v12 = vld [vmem:[%s8947_s6 + $0x324] ss:$8 sps:$4 sm:$0xff]  }
 0x3eb   :  { %2908 = vmatprep.subr.bf16.mxu1 %v6343_v24  ;;  %v6389_v24 = vld [vmem:[%s8947_s6 + $0x340] ss:$8 sps:$4 sm:$0xff]  }
 0x3ed   :  { %2892 = vmatmul.mubr.bf16.gmra.mrb[12].mxu1 %v1798_v52  ;;  %v6397_v52 = vld [vmem:[%s8947_s6 + $0x364] ss:$8 sps:$4 sm:$0xff]  }
 0x3ee   :  { %2909 = vmatpush1.bf16.msra.mxu1 %v6341_v63  ;;  %2932 = vmatprep.mubr.bf16.mxu1 %v1783_v1  ;;  %v6355_v1 = vld [vmem:[%s8947_s6 + $0x284] ss:$8 sps:$4 sm:$0xff]   ;;  %v6392_v63 = vld [vmem:[%s8947_s6 + $0x350] ss:$8 sps:$4 sm:$0xff]  }
 0x3ef   :  { %2910 = vmatprep.subr.bf16.mxu1 %v6346_v39  ;;  %v3144_v39 = vld [vmem:[#allocation7 + $0x8] sm:$0xff] }
 0x3f2   :  { %2911 = vmatpush1.bf16.msra.mxu1 %v6344_v29  ;;  %v3146_v29 = vld [vmem:[#allocation7 + $0x18] sm:$0xff] }
 0x3f3   :  { %2912 = vmatprep.subr.bf16.mxu1 %v6349_v44  ;;  %v3143_v44 = vld [vmem:[#allocation7] sm:$0xff] }
 0x3f6   :  { %2913 = vmatpush1.bf16.msra.mxu1 %v6347_v32  ;;  %v8198_v32 = vpack.c.bf16 %v3146_v29, %v3144_v39  ;;  %v3163_v39 = vld [vmem:[#allocation7 + $0xa0] sm:$0xff]  ;;  %v3165_v29 = vld [vmem:[#allocation7 + $0xb0] sm:$0xff] }
 0x3f7   :  { %2914 = vmatprep.subr.bf16.mxu1 %v6352_v60  ;;  %v3145_v60 = vld [vmem:[#allocation7 + $0x10] sm:$0xff] }
 0x3f8   :  { %5772 = vmatprep.subr.bf16.mxu0 %v8198_v32 }
 0x3fa   :  { %2915 = vmatpush1.bf16.msra.mxu1 %v6350_v27  ;;  %v3148_v27 = vld [vmem:[#allocation7 + $0x28] sm:$0xff] }
 0x3fb   :  { %2916 = vmatprep.subr.bf16.mxu1 %v6355_v1  ;;  %v3150_v1 = vld [vmem:[#allocation7 + $0x38] sm:$0xff] }
 0x3fe   :  { %2917 = vmatpush1.bf16.msra.mxu1 %v6353_v47  ;;  %v8200_v47 = vpack.c.bf16 %v3145_v60, %v3143_v44  ;;  %v6409_v44 = vld [vmem:[%s8947_s6 + $0x3a4] ss:$8 sps:$4 sm:$0xff]  }
 0x3ff   :  { %2918 = vmatprep.subr.bf16.mxu1 %v6358_v5  ;;  %v8202_v5 = vpack.c.bf16 %v3150_v1, %v3148_v27  ;;  %v3168_v60 = vld [vmem:[#allocation7 + $0xc8] sm:$0xff]  ;;  %v3170_v27 = vld [vmem:[#allocation7 + $0xd8] sm:$0xff]  ;;  %v8254_v1 = vpack.c.bf16 %v3165_v29, %v3163_v39 }
 0x400   :  { %5774 = vmatpush1.bf16.msra.mxu0 %v8200_v47  ;;  %v6451_v39 = vld [vmem:[%s8947_s6 + $0x484] ss:$8 sps:$4 sm:$0xff]   ;;  %v6449_v29 = vld [vmem:[%s8947_s6 + $0x480] ss:$8 sps:$4 sm:$0xff]  }
 0x401   :  { %5776 = vmatprep.subr.bf16.mxu0 %v8202_v5 }
 0x402   :  { %2919 = vmatpush1.bf16.msra.mxu1 %v6356_v53  ;;  %v3147_v53 = vld [vmem:[#allocation7 + $0x20] sm:$0xff] }
 0x403   :  { %2920 = vmatprep.subr.bf16.mxu1 %v6361_v55  ;;  %v3149_v55 = vld [vmem:[#allocation7 + $0x30] sm:$0xff] }
 0x404   :  { %v8206_v58 = vpack.c.bf16 %v3149_v55, %v3147_v53  ;;  %v6407_v53 = vld [vmem:[%s8947_s6 + $0x3a0] ss:$8 sps:$4 sm:$0xff]   ;;  %v8260_v55 = vpack.c.bf16 %v3170_v27, %v3168_v60  ;;  %v6452_v60 = vld [vmem:[%s8947_s6 + $0x490] ss:$8 sps:$4 sm:$0xff]   ;;  %v6457_v27 = vld [vmem:[%s8947_s6 + $0x4a4] ss:$8 sps:$4 sm:$0xff]  }
 0x406   :  { %2921 = vmatpush1.bf16.msra.mxu1 %v6359_v46  ;;  %v3152_v46 = vld [vmem:[#allocation7 + $0x48] sm:$0xff]  ;;  %5778 = vmatpush1.bf16.msra.mxu0 %v8206_v58 }
 0x407   :  { %2922 = vmatprep.subr.bf16.mxu1 %v6364_v61  ;;  %v3154_v61 = vld [vmem:[#allocation7 + $0x58] sm:$0xff] }
 0x40a   :  { %2923 = vmatpush1.bf16.msra.mxu1 %v6362_v56  ;;  %v3151_v56 = vld [vmem:[#allocation7 + $0x40] sm:$0xff] }
 0x40b   :  { %2924 = vmatprep.subr.bf16.mxu1 %v6367_v7  ;;  %v3153_v7 = vld [vmem:[#allocation7 + $0x50] sm:$0xff] }
 0x40e   :  { %2925 = vmatpush1.bf16.msra.mxu1 %v6365_v41  ;;  %v6400_v41 = vld [vmem:[%s8947_s6 + $0x374] ss:$8 sps:$4 sm:$0xff]  }
 0x40f   :  { %2926 = vmatprep.subr.bf16.mxu1 %v6370_v3  ;;  %v3156_v3 = vld [vmem:[#allocation7 + $0x68] sm:$0xff] }
 0x412   :  { %2927 = vmatpush1.bf16.msra.mxu1 %v6368_v31  ;;  %v3158_v31 = vld [vmem:[#allocation7 + $0x78] sm:$0xff] }
 0x413   :  { %2928 = vmatprep.subr.bf16.mxu1 %v6373_v15  ;;  %v8218_v15 = vpack.c.bf16 %v3153_v7, %v3151_v56  ;;  %v6410_v7 = vld [vmem:[%s8947_s6 + $0x3b0] ss:$8 sps:$4 sm:$0xff]  }
 0x416   :  { %2929 = vmatpush1.bf16.msra.mxu1 %v6371_v40  ;;  %v6398_v40 = vld [vmem:[%s8947_s6 + $0x370] ss:$8 sps:$4 sm:$0xff]  }
 0x417   :  { %2930 = vmatprep.subr.bf16.mxu1 %v6376_v25  ;;  %v8224_v25 = vpack.c.bf16 %v3158_v31, %v3156_v3  ;;  %v6413_v3 = vld [vmem:[%s8947_s6 + $0x3c0] ss:$8 sps:$4 sm:$0xff]   ;;  %v6418_v31 = vld [vmem:[%s8947_s6 + $0x3d4] ss:$8 sps:$4 sm:$0xff]  }
 0x41a   :  { %2931 = vmatpush1.bf16.msra.mxu1 %v6374_v50  ;;  %v3155_v50 = vld [vmem:[#allocation7 + $0x60] sm:$0xff] }
 0x41b   :  { %2961 = vmatprep.subr.bf16.mxu1 %v6379_v38  ;;  %v3157_v38 = vld [vmem:[#allocation7 + $0x70] sm:$0xff] }
 0x41d   :  { %2933 = vmatmul.mubr.bf16.vlgmr.msra.gmra.mrb[4].mxu1 %v1782_v9  ;;  %v6386_v9 = vld [vmem:[%s8947_s6 + $0x330] ss:$8 sps:$4 sm:$0xff]  }
 0x41e   :  { %2942 = vmatprep.mubr.bf16.mxu1 %v1791_v35  ;;  %2962 = vmatpush1.bf16.msra.mxu1 %v6377_v48  ;;  %v6391_v35 = vld [vmem:[%s8947_s6 + $0x344] ss:$8 sps:$4 sm:$0xff]  }
 0x41f   :  { %2963 = vmatprep.subr.bf16.mxu1 %v6382_v62  ;;  %v6403_v48 = vld [vmem:[%s8947_s6 + $0x384] ss:$8 sps:$4 sm:$0xff]  }
 0x420   :  { %v3160_v62 = vld [vmem:[#allocation7 + $0x88] sm:$0xff] }
 0x422   :  { %2964 = vmatpush1.bf16.msra.mxu1 %v6380_v18  ;;  %v3162_v18 = vld [vmem:[#allocation7 + $0x98] sm:$0xff] }
 0x423   :  { %2965 = vmatprep.subr.bf16.mxu1 %v6385_v12  ;;  %v8230_v12 = vpack.c.bf16 %v3157_v38, %v3155_v50  ;;  %v6421_v50 = vld [vmem:[%s8947_s6 + $0x3e4] ss:$8 sps:$4 sm:$0xff]   ;;  %v6419_v38 = vld [vmem:[%s8947_s6 + $0x3e0] ss:$8 sps:$4 sm:$0xff]  }
 0x425   :  { %2943 = vmatmul.mubr.bf16.gmra.mrb[8].mxu1 %v1790_v21  ;;  %v6394_v21 = vld [vmem:[%s8947_s6 + $0x354] ss:$8 sps:$4 sm:$0xff]  }
 0x426   :  { %2952 = vmatprep.mubr.bf16.mxu1 %v1801_v10  ;;  %2966 = vmatpush1.bf16.msra.mxu1 %v6383_v45  ;;  %v6401_v45 = vld [vmem:[%s8947_s6 + $0x380] ss:$8 sps:$4 sm:$0xff]  }
 0x427   :  { %2967 = vmatprep.subr.bf16.mxu1 %v6388_v36  ;;  %v8236_v36 = vpack.c.bf16 %v3162_v18, %v3160_v62  ;;  %v3159_v10 = vld [vmem:[#allocation7 + $0x80] sm:$0xff]  ;;  %v6422_v62 = vld [vmem:[%s8947_s6 + $0x3f0] ss:$8 sps:$4 sm:$0xff]  }
 0x428   :  { %v6427_v18 = vld [vmem:[%s8947_s6 + $0x404] ss:$8 sps:$4 sm:$0xff]  }
 0x42a   :  { %2968 = vmatpush1.bf16.msra.mxu1 %v6386_v9  ;;  %v3161_v9 = vld [vmem:[#allocation7 + $0x90] sm:$0xff] }
 0x42b   :  { %2969 = vmatprep.subr.bf16.mxu1 %v6391_v35  ;;  %v6406_v35 = vld [vmem:[%s8947_s6 + $0x394] ss:$8 sps:$4 sm:$0xff]  }
 0x42d   :  { %2953 = vmatmul.mubr.bf16.gmra.mrb[12].mxu1 %v1800_v33  ;;  %v3166_v33 = vld [vmem:[#allocation7 + $0xb8] sm:$0xff] }
 0x42e   :  { %2970 = vmatpush1.bf16.msra.mxu1 %v6389_v24  ;;  %2993 = vmatprep.mubr.bf16.mxu1 %v1785_v23  ;;  %v8212_v23 = vpack.c.bf16 %v3154_v61, %v3152_v46  ;;  %v3164_v24 = vld [vmem:[#allocation7 + $0xa8] sm:$0xff]  ;;  %v3167_v46 = vld [vmem:[#allocation7 + $0xc0] sm:$0xff]  ;;  %v3169_v61 = vld [vmem:[#allocation7 + $0xd0] sm:$0xff] }
 0x42f   :  { %2971 = vmatprep.subr.bf16.mxu1 %v6394_v21  ;;  %v8242_v21 = vpack.c.bf16 %v3161_v9, %v3159_v10  ;;  %v8266_v56 = vpack.c.bf16 %v3169_v61, %v3167_v46  ;;  %v6430_v10 = vld [vmem:[%s8947_s6 + $0x414] ss:$8 sps:$4 sm:$0xff]   ;;  %v6433_v9 = vld [vmem:[%s8947_s6 + $0x424] ss:$8 sps:$4 sm:$0xff]   ;;  %v6458_v61 = vld [vmem:[%s8947_s6 + $0x4b0] ss:$8 sps:$4 sm:$0xff]  }
 0x430   :  { %5780 = vmatprep.subr.bf16.mxu0 %v8212_v23  ;;  %v6460_v46 = vld [vmem:[%s8947_s6 + $0x4b4] ss:$8 sps:$4 sm:$0xff]  }
 0x431   :  { %5782 = vmatpush1.bf16.msra.mxu0 %v8218_v15 }
 0x432   :  { %2972 = vmatpush1.bf16.msra.mxu1 %v6392_v63  ;;  %5784 = vmatprep.subr.bf16.mxu0 %v8224_v25  ;;  %v6404_v63 = vld [vmem:[%s8947_s6 + $0x390] ss:$8 sps:$4 sm:$0xff]  }
 0x433   :  { %2973 = vmatprep.subr.bf16.mxu1 %v6397_v52  ;;  %v8248_v52 = vpack.c.bf16 %v3166_v33, %v3164_v24  ;;  %v6443_v33 = vld [vmem:[%s8947_s6 + $0x460] ss:$8 sps:$4 sm:$0xff]  }
 0x435   :  { %5786 = vmatpush1.bf16.msra.mxu0 %v8230_v12 }
 0x436   :  { %2974 = vmatpush1.bf16.msra.mxu1 %v6395_v20  ;;  %5788 = vmatprep.subr.bf16.mxu0 %v8236_v36  ;;  %v6412_v20 = vld [vmem:[%s8947_s6 + $0x3b4] ss:$8 sps:$4 sm:$0xff]  }
 0x437   :  { %2975 = vmatprep.subr.bf16.mxu1 %v6400_v41  ;;  %v6415_v41 = vld [vmem:[%s8947_s6 + $0x3c4] ss:$8 sps:$4 sm:$0xff]  }
 0x439   :  { %5790 = vmatpush1.bf16.msra.mxu0 %v8242_v21 }
 0x43a   :  { %2976 = vmatpush1.bf16.msra.mxu1 %v6398_v40  ;;  %5792 = vmatprep.subr.bf16.mxu0 %v8248_v52  ;;  %v6416_v40 = vld [vmem:[%s8947_s6 + $0x3d0] ss:$8 sps:$4 sm:$0xff]  }
 0x43b   :  { %2977 = vmatprep.subr.bf16.mxu1 %v6403_v48  ;;  %v6424_v48 = vld [vmem:[%s8947_s6 + $0x3f4] ss:$8 sps:$4 sm:$0xff]  }
 0x43d   :  { %5794 = vmatpush1.bf16.msra.mxu0 %v8254_v1 }
 0x43e   :  { %2978 = vmatpush1.bf16.msra.mxu1 %v6401_v45  ;;  %5796 = vmatprep.subr.bf16.mxu0 %v8260_v55  ;;  %v6425_v45 = vld [vmem:[%s8947_s6 + $0x400] ss:$8 sps:$4 sm:$0xff]  }
 0x43f   :  { %2979 = vmatprep.subr.bf16.mxu1 %v6406_v35  ;;  %v6658_v35 = vpop.eup %6657 }
 0x440   :  { %v1803_v54 = vpack.c.bf16 %v6658_v35, %v6658_v35  ;;  %v6660_v13 = vpop.eup %6659  ;;  %v3180_v35 = vld [vmem:[#allocation7 + $0x128] sm:$0xff] }
 0x441   :  { %5798 = vmatpush1.bf16.msra.mxu0 %v8266_v56  ;;  %v1802_v24 = vpack.c.bf16 %v6660_v13, %v6660_v13  ;;  %v3184_v13 = vld [vmem:[#allocation7 + $0x148] sm:$0xff] }
 0x442   :  { %2980 = vmatpush1.bf16.msra.mxu1 %v6404_v63  ;;  %v6448_v63 = vld [vmem:[%s8947_s6 + $0x474] ss:$8 sps:$4 sm:$0xff]  }
 0x443   :  { %2981 = vmatprep.subr.bf16.mxu1 %v6409_v44  ;;  %v6454_v44 = vld [vmem:[%s8947_s6 + $0x494] ss:$8 sps:$4 sm:$0xff]  }
 0x446   :  { %2982 = vmatpush1.bf16.msra.mxu1 %v6407_v53  ;;  %v6455_v53 = vld [vmem:[%s8947_s6 + $0x4a0] ss:$8 sps:$4 sm:$0xff]  }
 0x447   :  { %2983 = vmatprep.subr.bf16.mxu1 %v6412_v20  ;;  %v6463_v20 = vld [vmem:[%s8947_s6 + $0x4c4] ss:$8 sps:$4 sm:$0xff]  }
 0x44a   :  { %2984 = vmatpush1.bf16.msra.mxu1 %v6410_v7  ;;  %v6461_v7 = vld [vmem:[%s8947_s6 + $0x4c0] ss:$8 sps:$4 sm:$0xff]  }
 0x44b   :  { %2985 = vmatprep.subr.bf16.mxu1 %v6415_v41  ;;  %v6466_v41 = vld [vmem:[%s8947_s6 + $0x4d4] ss:$8 sps:$4 sm:$0xff]  }
 0x44e   :  { %2986 = vmatpush1.bf16.msra.mxu1 %v6413_v3  ;;  %v6464_v3 = vld [vmem:[%s8947_s6 + $0x4d0] ss:$8 sps:$4 sm:$0xff]  }
 0x44f   :  { %2987 = vmatprep.subr.bf16.mxu1 %v6418_v31  ;;  %v6469_v31 = vld [vmem:[%s8947_s6 + $0x4e4] ss:$8 sps:$4 sm:$0xff]  }
 0x452   :  { %2988 = vmatpush1.bf16.msra.mxu1 %v6416_v40  ;;  %v6467_v40 = vld [vmem:[%s8947_s6 + $0x4e0] ss:$8 sps:$4 sm:$0xff]  }
 0x453   :  { %2989 = vmatprep.subr.bf16.mxu1 %v6421_v50  ;;  %v6472_v50 = vld [vmem:[%s8947_s6 + $0x4f4] ss:$8 sps:$4 sm:$0xff]  }
 0x456   :  { %2990 = vmatpush1.bf16.msra.mxu1 %v6419_v38  ;;  %v6470_v38 = vld [vmem:[%s8947_s6 + $0x4f0] ss:$8 sps:$4 sm:$0xff]  }
 0x457   :  { %2991 = vmatprep.subr.bf16.mxu1 %v6424_v48  ;;  %v6662_v48 = vpop.eup %6661 }
 0x45a   :  { %2992 = vmatpush1.bf16.msra.mxu1 %v6422_v62  ;;  %v1805_v62 = vpack.c.bf16 %v6662_v48, %v6662_v48 }
 0x45b   :  { %3022 = vmatprep.subr.bf16.mxu1 %v6427_v18  ;;  %v6664_v18 = vpop.eup %6663 }
 0x45d   :  { %2994 = vmatmul.mubr.bf16.vlgmr.msra.gmra.mrb[4].mxu1 %v1784_v51  ;;  %v6439_v51 = vld [vmem:[%s8947_s6 + $0x444] ss:$8 sps:$4 sm:$0xff]  }
 0x45e   :  { %3003 = vmatprep.mubr.bf16.mxu1 %v1793_v34  ;;  %3023 = vmatpush1.bf16.msra.mxu1 %v6425_v45  ;;  %v6437_v34 = vld [vmem:[%s8947_s6 + $0x440] ss:$8 sps:$4 sm:$0xff]   ;;  %v1804_v45 = vpack.c.bf16 %v6664_v18, %v6664_v18 }
 0x45f   :  { %3024 = vmatprep.subr.bf16.mxu1 %v6430_v10  ;;  %v3174_v10 = vld [vmem:[#allocation7 + $0xf8] sm:$0xff]  ;;  %v3199_v18 = vld [vmem:[#allocation7 + $0x1c0] sm:$0xff] }
 0x462   :  { %3025 = vmatpush1.bf16.msra.mxu1 %v6428_v42  ;;  %v8414_v42 = vpack.c.bf16 %v3174_v10, %v3172_v30  ;;  %v3204_v30 = vld [vmem:[#allocation7 + $0x1e8] sm:$0xff]  ;;  %v3206_v10 = vld [vmem:[#allocation7 + $0x1f8] sm:$0xff] }
 0x463   :  { %3026 = vmatprep.subr.bf16.mxu1 %v6433_v9  ;;  %v3173_v9 = vld [vmem:[#allocation7 + $0xf0] sm:$0xff] }
 0x464   :  { %5800 = vmatprep.subr.bf16.mxu0 %v8414_v42 }
 0x465   :  { %3004 = vmatmul.mubr.bf16.gmra.mrb[8].mxu1 %v1792_v14  ;;  %v6445_v14 = vld [vmem:[%s8947_s6 + $0x464] ss:$8 sps:$4 sm:$0xff]  }
 0x466   :  { %3013 = vmatprep.mubr.bf16.mxu1 %v1803_v54  ;;  %3027 = vmatpush1.bf16.msra.mxu1 %v6431_v6  ;;  %v3182_v6 = vld [vmem:[#allocation7 + $0x138] sm:$0xff]  ;;  %v3179_v54 = vld [vmem:[#allocation7 + $0x120] sm:$0xff] }
 0x467   :  { %3028 = vmatprep.subr.bf16.mxu1 %v6436_v59  ;;  %v8426_v59 = vpack.c.bf16 %v3182_v6, %v3180_v35 }
 0x46a   :  { %3029 = vmatpush1.bf16.msra.mxu1 %v6434_v0  ;;  %v3181_v0 = vld [vmem:[#allocation7 + $0x130] sm:$0xff] }
 0x46b   :  { %3030 = vmatprep.subr.bf16.mxu1 %v6439_v51  ;;  %v8428_v51 = vpack.c.bf16 %v3181_v0, %v3179_v54 }
 0x46d   :  { %3014 = vmatmul.mubr.bf16.gmra.mrb[12].mxu1 %v1802_v24  ;;  %v3183_v24 = vld [vmem:[#allocation7 + $0x140] sm:$0xff] }
 0x46e   :  { %3031 = vmatpush1.bf16.msra.mxu1 %v6437_v34  ;;  %3054 = vmatprep.mubr.bf16.mxu1 %v7879_v4  ;;  %v6446_v4 = vld [vmem:[%s8947_s6 + $0x470] ss:$8 sps:$4 sm:$0xff]  }
 0x46f   :  { %3032 = vmatprep.subr.bf16.mxu1 %v6442_v8  ;;  %v3186_v34 = vld [vmem:[#allocation7 + $0x158] sm:$0xff] }
 0x470   :  { %v8432_v8 = vpack.c.bf16 %v3186_v34, %v3184_v13 }
 0x472   :  { %3033 = vmatpush1.bf16.msra.mxu1 %v6440_v19  ;;  %v3185_v19 = vld [vmem:[#allocation7 + $0x150] sm:$0xff] }
 0x473   :  { %3034 = vmatprep.subr.bf16.mxu1 %v6445_v14  ;;  %v8434_v14 = vpack.c.bf16 %v3185_v19, %v3183_v24 }
 0x476   :  { %3035 = vmatpush1.bf16.msra.mxu1 %v6443_v33  ;;  %v3188_v33 = vld [vmem:[#allocation7 + $0x168] sm:$0xff] }
 0x477   :  { %3036 = vmatprep.subr.bf16.mxu1 %v6448_v63  ;;  %v3190_v63 = vld [vmem:[#allocation7 + $0x178] sm:$0xff] }
 0x47a   :  { %3037 = vmatpush1.bf16.msra.mxu1 %v6446_v4  ;;  %v3187_v4 = vld [vmem:[#allocation7 + $0x160] sm:$0xff] }
 0x47b   :  { %3038 = vmatprep.subr.bf16.mxu1 %v6451_v39  ;;  %v8438_v39 = vpack.c.bf16 %v3190_v63, %v3188_v33 }
 0x47e   :  { %3039 = vmatpush1.bf16.msra.mxu1 %v6449_v29  ;;  %v3189_v29 = vld [vmem:[#allocation7 + $0x170] sm:$0xff] }
 0x47f   :  { %3040 = vmatprep.subr.bf16.mxu1 %v6454_v44  ;;  %v3192_v44 = vld [vmem:[#allocation7 + $0x188] sm:$0xff] }
 0x482   :  { %3041 = vmatpush1.bf16.msra.mxu1 %v6452_v60  ;;  %v3194_v60 = vld [vmem:[#allocation7 + $0x198] sm:$0xff] }
 0x483   :  { %3042 = vmatprep.subr.bf16.mxu1 %v6457_v27  ;;  %v8440_v27 = vpack.c.bf16 %v3189_v29, %v3187_v4 }
 0x486   :  { %3043 = vmatpush1.bf16.msra.mxu1 %v6455_v53  ;;  %v8442_v53 = vpack.c.bf16 %v3194_v60, %v3192_v44 }
 0x487   :  { %3044 = vmatprep.subr.bf16.mxu1 %v6460_v46  ;;  %v3191_v46 = vld [vmem:[#allocation7 + $0x180] sm:$0xff] }
 0x48a   :  { %3045 = vmatpush1.bf16.msra.mxu1 %v6458_v61  ;;  %v3193_v61 = vld [vmem:[#allocation7 + $0x190] sm:$0xff] }
 0x48b   :  { %3046 = vmatprep.subr.bf16.mxu1 %v6463_v20  ;;  %v3196_v20 = vld [vmem:[#allocation7 + $0x1a8] sm:$0xff] }
 0x48e   :  { %3047 = vmatpush1.bf16.msra.mxu1 %v6461_v7  ;;  %v3198_v7 = vld [vmem:[#allocation7 + $0x1b8] sm:$0xff] }
 0x48f   :  { %3048 = vmatprep.subr.bf16.mxu1 %v6466_v41  ;;  %v8446_v41 = vpack.c.bf16 %v3193_v61, %v3191_v46  ;;  %v9140_v61 = vld [vmem:[#allocation40_spill] sm:$0xff] }
 0x492   :  { %3049 = vmatpush1.bf16.msra.mxu1 %v6464_v3  ;;  %v8449_v3 = vpack.c.bf16 %v3198_v7, %v3196_v20 }
 0x493   :  { %3050 = vmatprep.subr.bf16.mxu1 %v6469_v31  ;;  %v3195_v31 = vld [vmem:[#allocation7 + $0x1a0] sm:$0xff] }
 0x496   :  { %3051 = vmatpush1.bf16.msra.mxu1 %v6467_v40  ;;  %v3197_v40 = vld [vmem:[#allocation7 + $0x1b0] sm:$0xff] }
 0x497   :  { %3052 = vmatprep.subr.bf16.mxu1 %v6472_v50  ;;  %v3200_v50 = vld [vmem:[#allocation7 + $0x1c8] sm:$0xff]  ;;  %v8452_v48 = vpack.c.bf16 %v3197_v40, %v3195_v31 }
 0x49a   :  { %3053 = vmatpush1.bf16.msra.mxu1 %v6470_v38  ;;  %v3202_v38 = vld [vmem:[#allocation7 + $0x1d8] sm:$0xff] }
 0x49d   :  { %3055 = vmatmul.mubr.bf16.vlgmr.msra.gmra.mrb[4].mxu1 %v7896_v37  ;;  %v3171_v37 = vld [vmem:[#allocation7 + $0xe0] sm:$0xff] }
 0x49e   :  { %3064 = vmatprep.mubr.bf16.mxu1 %v1795_v43  ;;  %v8416_v2 = vpack.c.bf16 %v3173_v9, %v3171_v37  ;;  %v3177_v43 = vld [vmem:[#allocation7 + $0x110] sm:$0xff]  ;;  %v8461_v9 = vpack.c.bf16 %v3206_v10, %v3204_v30 }
 0x4a0   :  { %5802 = vmatpush1.bf16.msra.mxu0 %v8416_v2  ;;  %9135 = vst [vmem:[#allocation58_spill] sm:$0xff] %v8461_v9 }
 0x4a1   :  { %5804 = vmatprep.subr.bf16.mxu0 %v8420_v28 }
 0x4a5   :  { %3065 = vmatmul.mubr.bf16.gmra.mrb[8].mxu1 %v1794_v57  ;;  %v8422_v57 = vpack.c.bf16 %v3177_v43, %v3175_v49  ;;  %v8464_v49 = vpack.c.bf16 %v3205_v17, %v3203_v11  ;;  %v1966_v43 = vld [vmem:[%s8948_s7] sm:$0x3] }
 0x4a6   :  { %3074 = vmatprep.mubr.bf16.mxu1 %v1805_v62  ;;  %v8455_v62 = vpack.c.bf16 %v3202_v38, %v3200_v50  ;;  %v1975_v54 = vrot.slane %v1966_v43, %v9120_v16  ;;  %v1971_v13 = vrot.slane %v1966_v43, %v9119_v22  ;;  %v9142_v50 = vld [vmem:[#allocation45_spill] sm:$0xff]  ;;  %v9145_v16 = vld [vmem:[#allocation48_spill] sm:$0xff] }
 0x4a7   :  { %5806 = vmatpush1.bf16.msra.mxu0 %v8422_v57  ;;  %9136 = vst [vmem:[#allocation56_spill] sm:$0xff] %v8464_v49 }
 0x4a8   :  { %5808 = vmatprep.subr.bf16.mxu0 %v8426_v59 }
 0x4ab   :  { %5810 = vmatpush1.bf16.msra.mxu0 %v8428_v51 }
 0x4ac   :  { %5812 = vmatprep.subr.bf16.mxu0 %v8432_v8 }
 0x4ad   :  { %3075 = vmatmul.mubr.bf16.gmra.mrb[12].mxu1 %v1804_v45  ;;  %v3201_v45 = vld [vmem:[#allocation7 + $0x1d0] sm:$0xff] }
 0x4ae   :  { %v8458_v37 = vpack.c.bf16 %v3201_v45, %v3199_v18 }
 0x4af   :  { %5814 = vmatpush1.bf16.msra.mxu0 %v8434_v14 }
 0x4b0   :  { %5816 = vmatprep.subr.bf16.mxu0 %v8438_v39 }
 0x4b3   :  { %5818 = vmatpush1.bf16.msra.mxu0 %v8440_v27 }
 0x4b4   :  { %5820 = vmatprep.subr.bf16.mxu0 %v8442_v53 }
 0x4b7   :  { %5822 = vmatpush1.bf16.msra.mxu0 %v8446_v41 }
 0x4b8   :  { %5824 = vmatprep.subr.bf16.mxu0 %v8449_v3 }
 0x4bb   :  { %5826 = vmatpush1.bf16.msra.mxu0 %v8452_v48 }
 0x4bc   :  { %5828 = vmatprep.subr.bf16.mxu0 %v8455_v62 }
 0x4bf   :  { %5830 = vmatpush1.bf16.msra.mxu0 %v8458_v37 }
 0x4c0   :  { %5832 = vmatprep.subr.bf16.mxu0 %v8461_v9 }
 0x4c3   :  { %5834 = vmatpush1.bf16.msra.mxu0 %v8464_v49 }
 0x4c4   :  { %5836 = vmatprep.subr.bf16.mxu0 %v8198_v32  ;;  %v9139_v32 = vld [vmem:[#allocation42_spill] sm:$0xff] }
 0x570   :  { %v3056_v35 = vpop.f32.mrb[4].mxu1 }
 0x571   :  { %v3058_v6 = vpop.f32.mrb[5].mxu1  ;;  %v8480_v63 = vadd.f32 %v3056_v35, %v1971_v13 }
 0x572   :  { %v3060_v0 = vpop.f32.mrb[6].mxu1  ;;  %v8478_v33 = vadd.f32 %v3058_v6, %v1975_v54 }
 0x573   :  { %v3062_v34 = vpop.f32.mrb[7].mxu1  ;;  %v8476_v19 = vadd.f32 %v3060_v0, %v1971_v13  ;;  %v8496_v40 = vmul.f32 %v8480_v63, %v9140_v61  ;;  %v9144_v0 = vld [vmem:[#allocation46_spill] sm:$0xff] }
 0x574   :  { %v8474_v24 = vadd.f32 %v3062_v34, %v1975_v54  ;;  %9138 = vst [vmem:[#allocation59_spill] sm:$0xff] %v8478_v33  ;;  %v3084_v20 = vmul.f32 %v8478_v33, %v9140_v61 }
 0x575   :  { %v8486_v44 = vmul.f32 %v8476_v19, %v9139_v32 }
 0x576   :  { %9137 = vst [vmem:[#allocation20_spill] sm:$0xff] %v8474_v24  ;;  %v3086_v4 = vmul.f32 %v8474_v24, %v9139_v32  ;;  %v3114_v43 = vmul.f32 %v8478_v33, %v3084_v20 }
 0x577   :  { %v3093_v17 = vadd.f32 %v8486_v44, %v8496_v40 }
 0x578   :  { %v3066_v29 = vpop.f32.mrb[8].mxu1  ;;  %v3116_v30 = vmul.f32 %v8474_v24, %v3086_v4  ;;  %v3103_v35 = vadd.f32 %v3086_v4, %v3084_v20 }
 0x579   :  { %v8488_v60 = vadd.f32 %v3066_v29, %v1971_v13  ;;  %v3068_v46 = vpop.f32.mrb[9].mxu1 }
 0x57a   :  { %v8492_v7 = vadd.f32 %v3068_v46, %v1975_v54  ;;  %v3070_v31 = vpop.f32.mrb[10].mxu1 }
 0x57b   :  { %v8500_v38 = vmul.f32 %v8488_v60, %v9142_v50  ;;  %v8502_v18 = vadd.f32 %v3070_v31, %v1971_v13  ;;  %v3072_v45 = vpop.f32.mrb[11].mxu1  ;;  %v3133_v31 = vadd.f32 %v3116_v30, %v3114_v43 }
 0x57c   :  { %9141 = vst [vmem:[#allocation21_spill] sm:$0xff] %v8492_v7  ;;  %v3088_v10 = vmul.f32 %v8492_v7, %v9142_v50  ;;  %v8507_v11 = vadd.f32 %v3072_v45, %v1975_v54 }
 0x57d   :  { %v3094_v29 = vadd.f32 %v3093_v17, %v8500_v38  ;;  %v3089_v46 = vmul.f32 %v8502_v18, %v9144_v0 }
 0x57e   :  { %9143 = vst [vmem:[#allocation22_spill] sm:$0xff] %v8507_v11  ;;  %v3118_v6 = vmul.f32 %v8492_v7, %v3088_v10  ;;  %v3090_v34 = vmul.f32 %v8507_v11, %v9144_v0  ;;  %v3104_v50 = vadd.f32 %v3103_v35, %v3088_v10 }
 0x57f   :  { %v3095_v7 = vadd.f32 %v3094_v29, %v3089_v46 }
 0x580   :  { %v3076_v45 = vpop.f32.mrb[12].mxu1  ;;  %v3134_v24 = vadd.f32 %v3133_v31, %v3118_v6  ;;  %v3120_v33 = vmul.f32 %v8507_v11, %v3090_v34  ;;  %v3105_v26 = vadd.f32 %v3104_v50, %v3090_v34 }
 0x581   :  { %v8518_v61 = vadd.f32 %v3076_v45, %v1971_v13  ;;  %v3078_v32 = vpop.f32.mrb[13].mxu1 }
 0x582   :  { %v8521_v4 = vadd.f32 %v3078_v32, %v1975_v54  ;;  %v3080_v20 = vpop.f32.mrb[14].mxu1  ;;  %v3135_v43 = vadd.f32 %v3134_v24, %v3120_v33 }
 0x583   :  { %v3091_v22 = vmul.f32 %v8518_v61, %v9145_v16  ;;  %v3081_v17 = vpop.f32.mrb[15].mxu1 }
 0x584   :  { %v3092_v30 = vmul.f32 %v8521_v4, %v9145_v16 }
 0x585   :  { %v3096_v10 = vadd.f32 %v3095_v7, %v3091_v22 }
 0x586   :  { %v3106_v13 = vadd.f32 %v3105_v26, %v3092_v30  ;;  %v3122_v35 = vmul.f32 %v8521_v4, %v3092_v30 }
 0x587   :  { %v3097_v6 = vrot.slane %v3096_v10, 4 }
 0x588   :  { %v3107_v0 = vrot.slane %v3106_v13, 4  ;;  %v3136_v31 = vadd.f32 %v3135_v43, %v3122_v35 }
 0x589   :  { %v3098_v54 = vadd.f32 %v3097_v6, %v3096_v10 }
 0x58a   :  { %v3137_v32 = vrot.slane %v3136_v31, 4  ;;  %v3108_v45 = vadd.f32 %v3107_v0, %v3106_v13 }
 0x58b   :  { %v3099_v29 = vrot.slane %v3098_v54, 2 }
 0x58c   :  { %v3109_v20 = vrot.slane %v3108_v45, 2  ;;  %v3138_v11 = vadd.f32 %v3137_v32, %v3136_v31 }
 0x58d   :  { %v3100_v49 = vadd.f32 %v3099_v29, %v3098_v54 }
 0x58e   :  { %v3110_v17 = vadd.f32 %v3109_v20, %v3108_v45  ;;  %v3139_v50 = vrot.slane %v3138_v11, 2 }
 0x58f   :  { %v3101_v34 = vrot.slane %v3100_v49, 1 }
 0x590   :  { %v3111_v9 = vrot.slane %v3110_v17, 1  ;;  %v3140_v16 = vadd.f32 %v3139_v50, %v3138_v11 }
 0x591   :  { %v3102_v26 = vadd.f32 %v3101_v34, %v3100_v49  ;;  %v8608_v49 = vld [vmem:[#allocation8 + $0x178] sm:$0xff]  }
 0x592   :  { %v3112_v7 = vadd.f32 %v3111_v9, %v3110_v17  ;;  %v3141_v24 = vrot.slane %v3140_v16, 1  ;;  %v8605_v9 = vld [vmem:[#allocation8 + $0x130] sm:$0xff]  }
 0x594   :  { %3271 = vmatprep.mubr.f32.mxu0 %v3112_v7  ;;  %v3142_v33 = vadd.f32 %v3141_v24, %v3140_v16  ;;  %v9148_v16 = vld [vmem:[#allocation19_spill] sm:$0xff]  ;;  %v3359_v24 = vld [vmem:[%s8949_s8] sm:$0x3] }
 0x595   :  { %3272 = vmatmul.mubr.f32.vlgmr.msra.gmra.mrb[28].mxu0 %v3102_v26 }
 0x596   :  { %5838 = vmatpush1.bf16.msra.mxu0 %v8200_v47  ;;  %3344 = vmatprep.mubr.f32.mxu0 %v3142_v33  ;;  %v3115_v47 = vmul.f32 %v8476_v19, %v8486_v44  ;;  %v8611_v44 = vld [vmem:[#allocation8 + $0x138] sm:$0xff]  }
 0x597   :  { %5840 = vmatprep.subr.bf16.mxu0 %v8202_v5  ;;  %v3113_v5 = vmul.f32 %v8480_v63, %v8496_v40  ;;  %v8614_v40 = vld [vmem:[#allocation8 + $0xc0] sm:$0xff]  }
 0x59a   :  { %5842 = vmatpush1.bf16.msra.mxu0 %v8206_v58  ;;  %v3117_v58 = vmul.f32 %v8488_v60, %v8500_v38 }
 0x59b   :  { %5844 = vmatprep.subr.bf16.mxu0 %v8212_v23  ;;  %v3123_v23 = vadd.f32 %v3115_v47, %v3113_v5  ;;  %v9149_v47 = vld [vmem:[#allocation39_spill] sm:$0xff] }
 0x59e   :  { %5846 = vmatpush1.bf16.msra.mxu0 %v8218_v15  ;;  %v3124_v15 = vadd.f32 %v3123_v23, %v3117_v58  ;;  %v9150_v58 = vld [vmem:[#allocation38_spill] sm:$0xff] }
 0x59f   :  { %5848 = vmatprep.subr.bf16.mxu0 %v8224_v25  ;;  %v3119_v25 = vmul.f32 %v8502_v18, %v3089_v46 }
 0x5a2   :  { %5850 = vmatpush1.bf16.msra.mxu0 %v8230_v12  ;;  %v3121_v12 = vmul.f32 %v8518_v61, %v3091_v22 }
 0x5a3   :  { %5852 = vmatprep.subr.bf16.mxu0 %v8236_v36  ;;  %v3125_v36 = vadd.f32 %v3124_v15, %v3119_v25 }
 0x5a6   :  { %5854 = vmatpush1.bf16.msra.mxu0 %v8242_v21  ;;  %v3126_v21 = vadd.f32 %v3125_v36, %v3121_v12 }
 0x5a7   :  { %5856 = vmatprep.subr.bf16.mxu0 %v8248_v52 }
 0x5a8   :  { %v3127_v52 = vrot.slane %v3126_v21, 4 }
 0x5aa   :  { %5858 = vmatpush1.bf16.msra.mxu0 %v8254_v1  ;;  %v3128_v1 = vadd.f32 %v3127_v52, %v3126_v21  ;;  %v3383_v21 = vld [vmem:[%s8950_s9] sm:$0x3] }
 0x5ab   :  { %5860 = vmatprep.subr.bf16.mxu0 %v8260_v55 }
 0x5ac   :  { %v3129_v22 = vrot.slane %v3128_v1, 2 }
 0x5ae   :  { %5862 = vmatpush1.bf16.msra.mxu0 %v8266_v56  ;;  %v3130_v55 = vadd.f32 %v3129_v22, %v3128_v1  ;;  %v9146_v56 = vld [vmem:[#allocation58_spill] sm:$0xff]  ;;  %v9151_v22 = vld [vmem:[#allocation20_spill] sm:$0xff] }
 0x5af   :  { %5864 = vmatprep.subr.bf16.mxu0 %v8414_v42 }
 0x5b0   :  { %v3131_v42 = vrot.slane %v3130_v55, 1 }
 0x5b2   :  { %5866 = vmatpush1.bf16.msra.mxu0 %v8416_v2  ;;  %v9147_v2 = vld [vmem:[#allocation56_spill] sm:$0xff] }
 0x5b3   :  { %5868 = vmatprep.subr.bf16.mxu0 %v8420_v28  ;;  %v3132_v28 = vadd.f32 %v3131_v42, %v3130_v55  ;;  %v9152_v42 = vld [vmem:[#allocation59_spill] sm:$0xff] }
 0x5b6   :  { %5870 = vmatpush1.bf16.msra.mxu0 %v8422_v57  ;;  %v8567_v57 = vld [vmem:[#allocation8 + $0x140] sm:$0xff]  }
 0x5b7   :  { %5872 = vmatprep.subr.bf16.mxu0 %v8426_v59  ;;  %v8569_v59 = vld [vmem:[#allocation8 + $0x100] sm:$0xff]  }
 0x5ba   :  { %5874 = vmatpush1.bf16.msra.mxu0 %v8428_v51  ;;  %v8571_v51 = vld [vmem:[#allocation8 + $0x148] sm:$0xff]  }
 0x5bb   :  { %5876 = vmatprep.subr.bf16.mxu0 %v8432_v8  ;;  %v8575_v8 = vld [vmem:[#allocation8 + $0x108] sm:$0xff]  }
 0x5be   :  { %5878 = vmatpush1.bf16.msra.mxu0 %v8434_v14  ;;  %v8578_v14 = vld [vmem:[#allocation8 + $0x150] sm:$0xff]  }
 0x5bf   :  { %5880 = vmatprep.subr.bf16.mxu0 %v8438_v39  ;;  %v8581_v39 = vld [vmem:[#allocation8 + $0x110] sm:$0xff]  }
 0x5c2   :  { %5882 = vmatpush1.bf16.msra.mxu0 %v8440_v27  ;;  %v8584_v27 = vld [vmem:[#allocation8 + $0x158] sm:$0xff]  }
 0x5c3   :  { %5884 = vmatprep.subr.bf16.mxu0 %v8442_v53  ;;  %v8587_v53 = vld [vmem:[#allocation8 + $0x118] sm:$0xff]  }
 0x5c6   :  { %5886 = vmatpush1.bf16.msra.mxu0 %v8446_v41  ;;  %v8590_v41 = vld [vmem:[#allocation8 + $0x160] sm:$0xff]  }
 0x5c7   :  { %5888 = vmatprep.subr.bf16.mxu0 %v8449_v3  ;;  %v8593_v3 = vld [vmem:[#allocation8 + $0x120] sm:$0xff]  }
 0x5ca   :  { %5890 = vmatpush1.bf16.msra.mxu0 %v8452_v48  ;;  %v8596_v48 = vld [vmem:[#allocation8 + $0x168] sm:$0xff]  }
 0x5cb   :  { %5892 = vmatprep.subr.bf16.mxu0 %v8455_v62  ;;  %v8599_v62 = vld [vmem:[#allocation8 + $0x128] sm:$0xff]  }
 0x5ce   :  { %5894 = vmatpush1.bf16.msra.mxu0 %v8458_v37  ;;  %v8602_v37 = vld [vmem:[#allocation8 + $0x170] sm:$0xff]  }
 0x5cf   :  { %5896 = vmatprep.subr.bf16.mxu0 %v9146_v56 }
 0x5d2   :  { %5898 = vmatpush1.bf16.msra.mxu0 %v9147_v2 }
 0x5d3   :  { %5363 = vmatprep.subr.bf16.mxu0 %v8567_v57 }
 0x5d5   :  { %3345 = vmatmul.mubr.f32.vlgmr.msra.gmra.mrb[30].mxu0 %v3132_v28 }
 0x5d6   :  { %5364 = vmatpush3.bf16.msra.mxu0 %v8569_v59 }
 0x5d7   :  { %5365 = vmatprep.subr.bf16.mxu0 %v8571_v51 }
 0x5da   :  { %5366 = vmatpush3.bf16.msra.mxu0 %v8575_v8 }
 0x5db   :  { %5367 = vmatprep.subr.bf16.mxu0 %v8578_v14 }
 0x5de   :  { %5368 = vmatpush3.bf16.msra.mxu0 %v8581_v39 }
 0x5df   :  { %5369 = vmatprep.subr.bf16.mxu0 %v8584_v27 }
 0x5e2   :  { %5370 = vmatpush3.bf16.msra.mxu0 %v8587_v53 }
 0x5e3   :  { %5371 = vmatprep.subr.bf16.mxu0 %v8590_v41 }
 0x5e6   :  { %5372 = vmatpush3.bf16.msra.mxu0 %v8593_v3 }
 0x5e7   :  { %5373 = vmatprep.subr.bf16.mxu0 %v8596_v48 }
 0x5ea   :  { %5374 = vmatpush3.bf16.msra.mxu0 %v8599_v62 }
 0x5eb   :  { %5375 = vmatprep.subr.bf16.mxu0 %v8602_v37 }
 0x5ee   :  { %5376 = vmatpush3.bf16.msra.mxu0 %v8605_v9 }
 0x5ef   :  { %5377 = vmatprep.subr.bf16.mxu0 %v8608_v49 }
 0x5f2   :  { %5378 = vmatpush3.bf16.msra.mxu0 %v8611_v44 }
 0x5f3   :  { %5385 = vmatprep.subr.bf16.mxu0 %v8614_v40 }
 0x668   :  { %v3273_v38 = vpop.f32.mrb[28].mxu0 }
 0x669   :  { %v3275_v11 = vpop.f32.mrb[29].mxu0  ;;  %v3278_v46 = vmul.f32 0.02, %v3273_v38 }
 0x66a   :  { %v3279_v30 = vmul.f32 0.02, %v3275_v11 }
 0x66b   :  { %v3353_v43 = vmul.f32 %v3278_v46, %v3278_v46 }
 0x66c   :  { %v3354_v6 = vmul.f32 %v3279_v30, %v3279_v30 }
 0x6a8   :  { %v3346_v10 = vpop.f32.mrb[30].mxu0 }
 0x6a9   :  { %v3351_v13 = vmul.f32 0.02, %v3346_v10  ;;  %v3348_v35 = vpop.f32.mrb[31].mxu0 }
 0x6aa   :  { %v3352_v0 = vmul.f32 0.02, %v3348_v35 }
 0x6ab   :  { %v3355_v31 = vsub.f32 %v3351_v13, %v3353_v43  ;;  %v9154_v43 = vld [vmem:[#allocation22_spill] sm:$0xff] }
 0x6ac   :  { %v3356_v54 = vsub.f32 %v3352_v0, %v3354_v6 }
 0x6ad   :  { %v3357_v32 = vmax.f32 %v3355_v31, 0.0 }
 0x6ae   :  { %v3358_v45 = vmax.f32 %v3356_v54, 0.0 }
 0x6af   :  { %v3360_v29 = vadd.f32 1e-05, %v3357_v32 }
 0x6b0   :  { %v3361_v20 = vadd.f32 1e-05, %v3358_v45 }
 0x6b1   :  { %6665 = vrsqrt.f32 %v3360_v29 }
 0x6b2   :  { %6667 = vrsqrt.f32 %v3361_v20 }
 0x6bb   :  { %v6666_v17 = vpop.eup %6665 }
 0x6bc   :  { %v6668_v50 = vpop.eup %6667 }
 0x6bd   :  { %v3366_v34 = vcombine.low %v6666_v17, %v6668_v50  ;;  %v8654_v50 = vld [vmem:[#allocation8 + $0x80] sm:$0xff]  }
 0x6bf   :  { %v3373_v7 = vrot.slane %v3366_v34, %v9148_v16 }
 0x6c1   :  { %v3380_v26 = vrot.slane %v3373_v7, %v9148_v16  ;;  %v8658_v7 = vld [vmem:[#allocation8 + $0xc8] sm:$0xff]  }
 0x6c3   :  { %v3382_v33 = vmul.f32 %v3380_v26, %v3359_v24  ;;  %v8663_v26 = vld [vmem:[#allocation8 + $0x88] sm:$0xff]  }
 0x6c5   :  { %v3388_v5 = vrot.slane %v3382_v33, %v9149_v47  ;;  %v3392_v23 = vrot.slane %v3382_v33, %v9150_v58  ;;  %v8666_v33 = vld [vmem:[#allocation8 + $0xd0] sm:$0xff]  }
 0x6c7   :  { %v3395_v15 = vmul.f32 %v3388_v5, %v3278_v46  ;;  %v3396_v25 = vmul.f32 %v3392_v23, %v3279_v30  ;;  %v3419_v55 = vmul.f32 %v9151_v22, %v3392_v23  ;;  %v3418_v56 = vmul.f32 %v8476_v19, %v3388_v5  ;;  %v9153_v46 = vld [vmem:[#allocation21_spill] sm:$0xff] }
 0x6c8   :  { %v3417_v2 = vmul.f32 %v9152_v42, %v3392_v23  ;;  %v3416_v28 = vmul.f32 %v8480_v63, %v3388_v5  ;;  %v3421_v30 = vmul.f32 %v9153_v46, %v3392_v23  ;;  %v3420_v10 = vmul.f32 %v8488_v60, %v3388_v5  ;;  %v8696_v22 = vld [vmem:[#allocation8 + $0xf8] sm:$0xff]   ;;  %v8722_v46 = vld [vmem:[#allocation8] sm:$0xff]  }
 0x6c9   :  { %v3399_v12 = vcombine.low %v3395_v15, %v3396_v25  ;;  %v3423_v13 = vmul.f32 %v9154_v43, %v3392_v23  ;;  %v3422_v35 = vmul.f32 %v8502_v18, %v3388_v5  ;;  %v3425_v6 = vmul.f32 %v8521_v4, %v3392_v23  ;;  %v8672_v23 = vld [vmem:[#allocation8 + $0xd8] sm:$0xff]   ;;  %v8678_v25 = vld [vmem:[#allocation8 + $0xe0] sm:$0xff]   ;;  %v8729_v43 = vld [vmem:[#allocation8 + $0x8] sm:$0xff]  }
 0x6ca   :  { %v3424_v19 = vmul.f32 %v8518_v61, %v3388_v5  ;;  %v8669_v5 = vld [vmem:[#allocation8 + $0x90] sm:$0xff]   ;;  %v8675_v15 = vld [vmem:[#allocation8 + $0x98] sm:$0xff]  }
 0x6cb   :  { %v3406_v36 = vrot.slane %v3399_v12, %v9148_v16  ;;  %v8681_v12 = vld [vmem:[#allocation8 + $0xa0] sm:$0xff]  }
 0x6cd   :  { %v3413_v52 = vrot.slane %v3406_v36, %v9148_v16  ;;  %v8684_v36 = vld [vmem:[#allocation8 + $0xe8] sm:$0xff]  }
 0x6cf   :  { %v3415_v1 = vsub.f32 %v3383_v21, %v3413_v52  ;;  %v8687_v21 = vld [vmem:[#allocation8 + $0xa8] sm:$0xff]   ;;  %v8690_v52 = vld [vmem:[#allocation8 + $0xf0] sm:$0xff]  }
 0x6d1   :  { %v3434_v38 = vrot.slane %v3415_v1, %v9150_v58  ;;  %v3430_v11 = vrot.slane %v3415_v1, %v9149_v47  ;;  %v8693_v1 = vld [vmem:[#allocation8 + $0xb0] sm:$0xff]  }
 0x6d3   :  { %v3440_v0 = vadd.f32 %v3434_v38, %v3419_v55  ;;  %v3439_v31 = vadd.f32 %v3430_v11, %v3418_v56  ;;  %v3438_v54 = vadd.f32 %v3434_v38, %v3417_v2  ;;  %v3437_v63 = vadd.f32 %v3430_v11, %v3416_v28  ;;  %v8699_v55 = vld [vmem:[#allocation8 + $0xb8] sm:$0xff]  }
 0x6d4   :  { %v3442_v32 = vadd.f32 %v3434_v38, %v3421_v30  ;;  %v8642_v45 = vadd.f32 %v3430_v11, %v3420_v10  ;;  %v8644_v29 = vadd.f32 %v3434_v38, %v3423_v13  ;;  %v8646_v20 = vadd.f32 %v3430_v11, %v3422_v35  ;;  %v8725_v10 = vld [vmem:[#allocation8 + $0x48] sm:$0xff]   ;;  %v8732_v13 = vld [vmem:[#allocation8 + $0x50] sm:$0xff]  }
 0x6d5   :  { %6669 = vtanh.f32 %v3440_v0  ;;  %v8648_v60 = vadd.f32 %v3434_v38, %v3425_v6  ;;  %v8650_v17 = vadd.f32 %v3430_v11, %v3424_v19  ;;  %v8719_v38 = vld [vmem:[#allocation8 + $0x40] sm:$0xff]   ;;  %v8735_v35 = vld [vmem:[#allocation8 + $0x10] sm:$0xff]   ;;  %v8738_v6 = vld [vmem:[#allocation8 + $0x58] sm:$0xff]  }
 0x6d6   :  { %6671 = vtanh.f32 %v3439_v31  ;;  %v8741_v19 = vld [vmem:[#allocation8 + $0x18] sm:$0xff]   ;;  %v8744_v0 = vld [vmem:[#allocation8 + $0x60] sm:$0xff]  }
 0x6d7   :  { %6673 = vtanh.f32 %v3438_v54  ;;  %v8747_v31 = vld [vmem:[#allocation8 + $0x20] sm:$0xff]   ;;  %v8750_v54 = vld [vmem:[#allocation8 + $0x68] sm:$0xff]  }
 0x6d8   :  { %6675 = vtanh.f32 %v3437_v63  ;;  %v8753_v63 = vld [vmem:[#allocation8 + $0x28] sm:$0xff]  }
 0x6d9   :  { %6677 = vtanh.f32 %v3442_v32  ;;  %v8756_v32 = vld [vmem:[#allocation8 + $0x70] sm:$0xff]  }
 0x6da   :  { %6679 = vtanh.f32 %v8642_v45  ;;  %v8760_v45 = vld [vmem:[#allocation8 + $0x30] sm:$0xff]  }
 0x6db   :  { %6681 = vtanh.f32 %v8644_v29 }
 0x6dc   :  { %6683 = vtanh.f32 %v8646_v20  ;;  %v4167_v20 = vld [vmem:[#allocation10 + $0x8] sm:$0xff] }
 0x6dd   :  { %6685 = vtanh.f32 %v8648_v60  ;;  %v4168_v60 = vld [vmem:[#allocation10 + $0x10] sm:$0xff] }
 0x6de   :  { %6687 = vtanh.f32 %v8650_v17 }
 0x6df   :  { %v6670_v18 = vpop.eup %6669 }
 0x6e0   :  { %v6672_v61 = vpop.eup %6671  ;;  %v8652_v4 = vpack.c.bf16 %v6670_v18, %v6670_v18  ;;  %v8763_v18 = vld [vmem:[#allocation8 + $0x78] sm:$0xff]  }
 0x6e1   :  { %v6674_v34 = vpop.eup %6673  ;;  %v8656_v16 = vpack.c.bf16 %v6672_v61, %v6672_v61  ;;  %v8766_v61 = vld [vmem:[#allocation8 + $0x38] sm:$0xff]  }
 0x6e2   :  { %3655 = vmatprep.mubr.bf16.mxu0 %v8652_v4  ;;  %v3458_v24 = vpack.c.bf16 %v6674_v34, %v6674_v34  ;;  %v6676_v56 = vpop.eup %6675 }
 0x6e3   :  { %3656 = vmatmul.mubr.bf16.vlgmr.msra.gmra.mrb[32].mxu0 %v8656_v16  ;;  %v6678_v42 = vpop.eup %6677  ;;  %v3457_v2 = vpack.c.bf16 %v6676_v56, %v6676_v56 }
 0x6e4   :  { %5386 = vmatpush3.bf16.msra.mxu0 %v8654_v50  ;;  %3791 = vmatprep.mubr.bf16.mxu0 %v3458_v24  ;;  %v3832_v28 = vpack.c.bf16 %v6678_v42, %v6678_v42  ;;  %v6680_v11 = vpop.eup %6679  ;;  %v4176_v42 = vld [vmem:[#allocation10 + $0x50] sm:$0xff] }
 0x6e5   :  { %5387 = vmatprep.subr.bf16.mxu0 %v8658_v7  ;;  %v3831_v30 = vpack.c.bf16 %v6680_v11, %v6680_v11  ;;  %v4179_v11 = vld [vmem:[#allocation10 + $0x68] sm:$0xff] }
 0x6e8   :  { %5388 = vmatpush3.bf16.msra.mxu0 %v8663_v26 }
 0x6e9   :  { %5389 = vmatprep.subr.bf16.mxu0 %v8666_v33 }
 0x6ec   :  { %5390 = vmatpush3.bf16.msra.mxu0 %v8669_v5 }
 0x6ed   :  { %5391 = vmatprep.subr.bf16.mxu0 %v8672_v23 }
 0x6f0   :  { %5392 = vmatpush3.bf16.msra.mxu0 %v8675_v15 }
 0x6f1   :  { %5393 = vmatprep.subr.bf16.mxu0 %v8678_v25 }
 0x6f4   :  { %5394 = vmatpush3.bf16.msra.mxu0 %v8681_v12 }
 0x6f5   :  { %5395 = vmatprep.subr.bf16.mxu0 %v8684_v36 }
 0x6f8   :  { %5396 = vmatpush3.bf16.msra.mxu0 %v8687_v21 }
 0x6f9   :  { %5397 = vmatprep.subr.bf16.mxu0 %v8690_v52 }
 0x6fc   :  { %5398 = vmatpush3.bf16.msra.mxu0 %v8693_v1 }
 0x6fd   :  { %5399 = vmatprep.subr.bf16.mxu0 %v8696_v22 }
 0x700   :  { %5400 = vmatpush3.bf16.msra.mxu0 %v8699_v55 }
 0x701   :  { %5407 = vmatprep.subr.bf16.mxu0 %v8614_v40 }
 0x703   :  { %3792 = vmatmul.mubr.bf16.vlgmr.msra.gmra.mrb[36].mxu0 %v3457_v2  ;;  %v4177_v2 = vld [vmem:[#allocation10 + $0x58] sm:$0xff] }
 0x704   :  { %5408 = vmatpush3.bf16.msra.mxu0 %v8654_v50  ;;  %3865 = vmatprep.mubr.bf16.mxu0 %v3832_v28  ;;  %v5915_v28 = vpack.c.bf16 %v4177_v2, %v4176_v42  ;;  %v6526_v42 = vld [vmem:[#allocation11 + $0x14] ss:$8 sps:$4 sm:$0xff]  }
 0x705   :  { %5409 = vmatprep.subr.bf16.mxu0 %v8658_v7 }
 0x708   :  { %5410 = vmatpush3.bf16.msra.mxu0 %v8663_v26 }
 0x709   :  { %5411 = vmatprep.subr.bf16.mxu0 %v8666_v33 }
 0x70c   :  { %5412 = vmatpush3.bf16.msra.mxu0 %v8669_v5 }
 0x70d   :  { %5413 = vmatprep.subr.bf16.mxu0 %v8672_v23 }
 0x710   :  { %5414 = vmatpush3.bf16.msra.mxu0 %v8675_v15 }
 0x711   :  { %5415 = vmatprep.subr.bf16.mxu0 %v8678_v25 }
 0x714   :  { %5416 = vmatpush3.bf16.msra.mxu0 %v8681_v12 }
 0x715   :  { %5417 = vmatprep.subr.bf16.mxu0 %v8684_v36 }
 0x718   :  { %5418 = vmatpush3.bf16.msra.mxu0 %v8687_v21 }
 0x719   :  { %5419 = vmatprep.subr.bf16.mxu0 %v8690_v52 }
 0x71c   :  { %5420 = vmatpush3.bf16.msra.mxu0 %v8693_v1 }
 0x71d   :  { %5421 = vmatprep.subr.bf16.mxu0 %v8696_v22 }
 0x720   :  { %5422 = vmatpush3.bf16.msra.mxu0 %v8699_v55 }
 0x721   :  { %5429 = vmatprep.subr.bf16.mxu0 %v8719_v38 }
 0x723   :  { %3866 = vmatmul.mubr.bf16.vlgmr.msra.gmra.mrb[40].mxu0 %v3831_v30 }
 0x724   :  { %5430 = vmatpush3.bf16.msra.mxu0 %v8722_v46  ;;  %4001 = vmatprep.mubr.bf16.mxu0 %v8652_v4  ;;  %v6682_v4 = vpop.eup %6681 }
 0x725   :  { %5431 = vmatprep.subr.bf16.mxu0 %v8725_v10  ;;  %v4010_v29 = vpack.c.bf16 %v6682_v4, %v6682_v4 }
 0x728   :  { %5432 = vmatpush3.bf16.msra.mxu0 %v8729_v43 }
 0x729   :  { %5433 = vmatprep.subr.bf16.mxu0 %v8732_v13 }
 0x72c   :  { %5434 = vmatpush3.bf16.msra.mxu0 %v8735_v35 }
 0x72d   :  { %5435 = vmatprep.subr.bf16.mxu0 %v8738_v6 }
 0x730   :  { %5436 = vmatpush3.bf16.msra.mxu0 %v8741_v19 }
 0x731   :  { %5437 = vmatprep.subr.bf16.mxu0 %v8744_v0 }
 0x734   :  { %5438 = vmatpush3.bf16.msra.mxu0 %v8747_v31 }
 0x735   :  { %5439 = vmatprep.subr.bf16.mxu0 %v8750_v54 }
 0x738   :  { %5440 = vmatpush3.bf16.msra.mxu0 %v8753_v63 }
 0x739   :  { %5441 = vmatprep.subr.bf16.mxu0 %v8756_v32 }
 0x73c   :  { %5442 = vmatpush3.bf16.msra.mxu0 %v8760_v45 }
 0x73d   :  { %5443 = vmatprep.subr.bf16.mxu0 %v8763_v18 }
 0x740   :  { %5444 = vmatpush3.bf16.msra.mxu0 %v8766_v61 }
 0x741   :  { %5451 = vmatprep.subr.bf16.mxu0 %v8567_v57  ;;  %v6684_v57 = vpop.eup %6683 }
 0x743   :  { %4002 = vmatmul.mubr.bf16.vlgmr.msra.gmra.mrb[44].mxu0 %v8656_v16  ;;  %v4169_v16 = vld [vmem:[#allocation10 + $0x18] sm:$0xff] }
 0x744   :  { %5452 = vmatpush3.bf16.msra.mxu0 %v8569_v59  ;;  %4043 = vmatprep.mubr.bf16.mxu0 %v4010_v29  ;;  %v6686_v59 = vpop.eup %6685 }
 0x745   :  { %5453 = vmatprep.subr.bf16.mxu0 %v8571_v51  ;;  %v4009_v51 = vpack.c.bf16 %v6684_v57, %v6684_v57 }
 0x748   :  { %5454 = vmatpush3.bf16.msra.mxu0 %v8575_v8  ;;  %v4053_v8 = vpack.c.bf16 %v6686_v59, %v6686_v59 }
 0x749   :  { %5455 = vmatprep.subr.bf16.mxu0 %v8578_v14  ;;  %v6688_v14 = vpop.eup %6687 }
 0x74c   :  { %5456 = vmatpush3.bf16.msra.mxu0 %v8581_v39  ;;  %v4052_v39 = vpack.c.bf16 %v6688_v14, %v6688_v14  ;;  %v5297_v14 = vld [vmem:[%s8953_s12] ss:$0 sm:$0xff] }
 0x74d   :  { %5457 = vmatprep.subr.bf16.mxu0 %v8584_v27 }
 0x750   :  { %5458 = vmatpush3.bf16.msra.mxu0 %v8587_v53 }
 0x751   :  { %5459 = vmatprep.subr.bf16.mxu0 %v8590_v41 }
 0x754   :  { %5460 = vmatpush3.bf16.msra.mxu0 %v8593_v3 }
 0x755   :  { %5461 = vmatprep.subr.bf16.mxu0 %v8596_v48 }
 0x758   :  { %5462 = vmatpush3.bf16.msra.mxu0 %v8599_v62 }
 0x759   :  { %5463 = vmatprep.subr.bf16.mxu0 %v8602_v37 }
 0x75c   :  { %5464 = vmatpush3.bf16.msra.mxu0 %v8605_v9 }
 0x75d   :  { %5465 = vmatprep.subr.bf16.mxu0 %v8608_v49 }
 0x760   :  { %5466 = vmatpush3.bf16.msra.mxu0 %v8611_v44 }
 0x761   :  { %5473 = vmatprep.subr.bf16.mxu0 %v8614_v40  ;;  %v4166_v40 = vld [vmem:[#allocation10] sm:$0xff] }
 0x762   :  { %v5900_v34 = vpack.c.bf16 %v4167_v20, %v4166_v40 }
 0x763   :  { %4044 = vmatmul.mubr.bf16.vlgmr.msra.gmra.mrb[48].mxu0 %v4009_v51 }
 0x764   :  { %5474 = vmatpush3.bf16.msra.mxu0 %v8654_v50  ;;  %4086 = vmatprep.mubr.bf16.mxu0 %v4053_v8  ;;  %v6880_v50 = vmov 0.0|0.0  }
 0x765   :  { %5475 = vmatprep.subr.bf16.mxu0 %v8658_v7  ;;  %5899 = vmatprep.subr.bf16.mxu1 %v6880_v50  ;;  %v5903_v7 = vpack.c.bf16 %v4169_v16, %v4168_v60 }
 0x766   :  { %5901 = vmatpush3.bf16.msra.mxu1 %v5900_v34 }
 0x767   :  { %5902 = vmatprep.subr.bf16.mxu1 %v6880_v50 }
 0x768   :  { %5476 = vmatpush3.bf16.msra.mxu0 %v8663_v26 }
 0x769   :  { %5477 = vmatprep.subr.bf16.mxu0 %v8666_v33 }
 0x76a   :  { %5904 = vmatpush3.bf16.msra.mxu1 %v5903_v7 }
 0x76b   :  { %5905 = vmatprep.subr.bf16.mxu1 %v6880_v50 }
 0x76c   :  { %5478 = vmatpush3.bf16.msra.mxu0 %v8669_v5 }
 0x76d   :  { %5479 = vmatprep.subr.bf16.mxu0 %v8672_v23 }
 0x770   :  { %5480 = vmatpush3.bf16.msra.mxu0 %v8675_v15  ;;  %v4170_v15 = vld [vmem:[#allocation10 + $0x20] sm:$0xff] }
 0x771   :  { %5481 = vmatprep.subr.bf16.mxu0 %v8678_v25  ;;  %v4171_v25 = vld [vmem:[#allocation10 + $0x28] sm:$0xff] }
 0x774   :  { %5482 = vmatpush3.bf16.msra.mxu0 %v8681_v12  ;;  %v4172_v12 = vld [vmem:[#allocation10 + $0x30] sm:$0xff] }
 0x775   :  { %5483 = vmatprep.subr.bf16.mxu0 %v8684_v36  ;;  %v5906_v36 = vpack.c.bf16 %v4171_v25, %v4170_v15 }
 0x777   :  { %5907 = vmatpush3.bf16.msra.mxu1 %v5906_v36 }
 0x778   :  { %5484 = vmatpush3.bf16.msra.mxu0 %v8687_v21  ;;  %v4173_v21 = vld [vmem:[#allocation10 + $0x38] sm:$0xff]  ;;  %5908 = vmatprep.subr.bf16.mxu1 %v6880_v50 }
 0x779   :  { %5485 = vmatprep.subr.bf16.mxu0 %v8690_v52  ;;  %v9155_v52 = vmov 0.0  }
 0x77a   :  { %5605 = vmatprep.mubr.msk.f32.mxu1 %vm6881_vm14, %v9155_v52 }
 0x77c   :  { %5486 = vmatpush3.bf16.msra.mxu0 %v8693_v1  ;;  %v5909_v1 = vpack.c.bf16 %v4173_v21, %v4172_v12 }
 0x77d   :  { %5487 = vmatprep.subr.bf16.mxu0 %v8696_v22  ;;  %v4174_v22 = vld [vmem:[#allocation10 + $0x40] sm:$0xff] }
 0x77e   :  { %5910 = vmatpush3.bf16.msra.mxu1 %v5909_v1 }
 0x77f   :  { %5911 = vmatprep.subr.bf16.mxu1 %v6880_v50 }
 0x780   :  { %5488 = vmatpush3.bf16.msra.mxu0 %v8699_v55  ;;  %v4175_v55 = vld [vmem:[#allocation10 + $0x48] sm:$0xff] }
 0x781   :  { %5495 = vmatprep.subr.bf16.mxu0 %v8719_v38  ;;  %v5912_v56 = vpack.c.bf16 %v4175_v55, %v4174_v22  ;;  %v4178_v38 = vld [vmem:[#allocation10 + $0x60] sm:$0xff] }
 0x782   :  { %v6521_v22 = vld [vmem:[#allocation11] ss:$8 sps:$4 sm:$0xff]  }
 0x783   :  { %4087 = vmatmul.mubr.bf16.vlgmr.msra.gmra.mrb[52].mxu0 %v4052_v39  ;;  %5913 = vmatpush3.bf16.msra.mxu1 %v5912_v56 }
 0x784   :  { %5496 = vmatpush3.bf16.msra.mxu0 %v8722_v46  ;;  %4126 = vmatprep.mubr.bf16.mxu0 %v4010_v29  ;;  %v5918_v46 = vpack.c.bf16 %v4179_v11, %v4178_v38  ;;  %v6529_v38 = vld [vmem:[#allocation11 + $0x24] ss:$8 sps:$4 sm:$0xff]   ;;  %v6527_v11 = vld [vmem:[#allocation11 + $0x20] ss:$8 sps:$4 sm:$0xff]  }
 0x785   :  { %5497 = vmatprep.subr.bf16.mxu0 %v8725_v10  ;;  %5914 = vmatprep.subr.bf16.mxu1 %v6880_v50  ;;  %v4180_v10 = vld [vmem:[#allocation10 + $0x70] sm:$0xff] }
 0x787   :  { %5916 = vmatpush3.bf16.msra.mxu1 %v5915_v28 }
 0x788   :  { %5498 = vmatpush3.bf16.msra.mxu0 %v8729_v43  ;;  %5917 = vmatprep.subr.bf16.mxu1 %v6880_v50  ;;  %v4181_v43 = vld [vmem:[#allocation10 + $0x78] sm:$0xff] }
 0x789   :  { %5499 = vmatprep.subr.bf16.mxu0 %v8732_v13 }
 0x78b   :  { %5919 = vmatpush3.bf16.msra.mxu1 %v5918_v46 }
 0x78c   :  { %5500 = vmatpush3.bf16.msra.mxu0 %v8735_v35  ;;  %5920 = vmatprep.subr.bf16.mxu1 %v6880_v50 }
 0x78d   :  { %5501 = vmatprep.subr.bf16.mxu0 %v8738_v6 }
 0x790   :  { %5502 = vmatpush3.bf16.msra.mxu0 %v8741_v19 }
 0x791   :  { %5503 = vmatprep.subr.bf16.mxu0 %v8744_v0  ;;  %v5921_v0 = vpack.c.bf16 %v4181_v43, %v4180_v10  ;;  %v6535_v10 = vld [vmem:[#allocation11 + $0x44] ss:$8 sps:$4 sm:$0xff]   ;;  %v6533_v43 = vld [vmem:[#allocation11 + $0x40] ss:$8 sps:$4 sm:$0xff]  }
 0x793   :  { %5922 = vmatpush3.bf16.msra.mxu1 %v5921_v0 }
 0x794   :  { %5504 = vmatpush3.bf16.msra.mxu0 %v8747_v31 }
 0x795   :  { %5505 = vmatprep.subr.bf16.mxu0 %v8750_v54  ;;  %v6523_v54 = vld [vmem:[#allocation11 + $0x4] ss:$8 sps:$4 sm:$0xff]  }
 0x796   :  { %4658 = vmatprep.subr.bf16.mxu1 %v6523_v54  ;;  %v6547_v54 = vld [vmem:[#allocation11 + $0x84] ss:$8 sps:$4 sm:$0xff]  }
 0x798   :  { %5506 = vmatpush3.bf16.msra.mxu0 %v8753_v63 }
 0x799   :  { %5507 = vmatprep.subr.bf16.mxu0 %v8756_v32 }
 0x79c   :  { %5508 = vmatpush3.bf16.msra.mxu0 %v8760_v45 }
 0x79d   :  { %5509 = vmatprep.subr.bf16.mxu0 %v8763_v18 }
 0x7a0   :  { %5510 = vmatpush3.bf16.msra.mxu0 %v8766_v61 }
 0x7a1   :  { %5923 = vmatprep.subr.bf16.mxu0 %v6880_v50 }
 0x7a3   :  { %4127 = vmatmul.mubr.bf16.vlgmr.msra.gmra.mrb[56].mxu0 %v4009_v51 }
 0x7a4   :  { %5925 = vmatpush3.bf16.msra.mxu0 %v5900_v34  ;;  %5640 = vmatprep.mubr.msk.f32.mxu0 %vm6881_vm14, %v9155_v52  ;;  %v9158_v34 = vld [vmem:[#allocation45_spill] sm:$0xff] }
 0x7a5   :  { %5926 = vmatprep.subr.bf16.mxu0 %v6880_v50 }
 0x7a8   :  { %5928 = vmatpush3.bf16.msra.mxu0 %v5903_v7 }
 0x7a9   :  { %5929 = vmatprep.subr.bf16.mxu0 %v6880_v50 }
 0x7ac   :  { %5931 = vmatpush3.bf16.msra.mxu0 %v5906_v36 }
 0x7ad   :  { %5932 = vmatprep.subr.bf16.mxu0 %v6880_v50 }
 0x7b0   :  { %5934 = vmatpush3.bf16.msra.mxu0 %v5909_v1 }
 0x7b1   :  { %5935 = vmatprep.subr.bf16.mxu0 %v6880_v50 }
 0x7b4   :  { %5937 = vmatpush3.bf16.msra.mxu0 %v5912_v56 }
 0x7b5   :  { %5938 = vmatprep.subr.bf16.mxu0 %v6880_v50 }
 0x7b6   :  { %v5379_v27 = vpop.f32.mrb[32].mxu0 }
 0x7b7   :  { %v5380_v53 = vpop.f32.mrb[33].mxu0 }
 0x7b8   :  { %v5381_v41 = vadd.f32 %v5380_v53, %v5379_v27  ;;  %v5382_v3 = vpop.f32.mrb[34].mxu0  ;;  %5940 = vmatpush3.bf16.msra.mxu0 %v5915_v28  ;;  %v6524_v28 = vld [vmem:[#allocation11 + $0x10] ss:$8 sps:$4 sm:$0xff]  }
 0x7b9   :  { %v5383_v48 = vpop.f32.mrb[35].mxu0  ;;  %5941 = vmatprep.subr.bf16.mxu0 %v6880_v50  ;;  %v9156_v3 = vld [vmem:[#allocation42_spill] sm:$0xff] }
 0x7bc   :  { %5943 = vmatpush3.bf16.msra.mxu0 %v5918_v46  ;;  %v6532_v46 = vld [vmem:[#allocation11 + $0x34] ss:$8 sps:$4 sm:$0xff]  }
 0x7bd   :  { %5944 = vmatprep.subr.bf16.mxu0 %v6880_v50 }
 0x7c0   :  { %5946 = vmatpush3.bf16.msra.mxu0 %v5921_v0  ;;  %v6544_v0 = vld [vmem:[#allocation11 + $0x74] ss:$8 sps:$4 sm:$0xff]  }
 0x7d6   :  { %v5401_v62 = vpop.f32.mrb[36].mxu0 }
 0x7d7   :  { %v5402_v37 = vpop.f32.mrb[37].mxu0 }
 0x7d8   :  { %v5403_v9 = vadd.f32 %v5402_v37, %v5401_v62  ;;  %v5404_v49 = vpop.f32.mrb[38].mxu0 }
 0x7d9   :  { %v5405_v44 = vpop.f32.mrb[39].mxu0  ;;  %v9157_v49 = vld [vmem:[#allocation40_spill] sm:$0xff] }
 0x7da   :  { %v8822_v17 = vadd.f32 %v5403_v9, %v5381_v41 }
 0x7dc   :  { %v8848_v27 = vadd.f32 %v5297_v14, %v8822_v17 }
 0x7de   :  { %v4144_v44 = vmul.f32 %v9157_v49, %v8848_v27  ;;  %v6596_v49 = vld [vmem:[%s8959_s18 + $0x8] sm:$0xff]  }
 0x7e0   :  { %v4155_v50 = vmul.f32 %v4144_v44, %v8848_v27 }
 0x7f6   :  { %v5423_v24 = vpop.f32.mrb[40].mxu0 }
 0x7f7   :  { %v5424_v26 = vpop.f32.mrb[41].mxu0 }
 0x7f8   :  { %v5425_v33 = vadd.f32 %v5424_v26, %v5423_v24  ;;  %v5426_v5 = vpop.f32.mrb[42].mxu0 }
 0x7f9   :  { %v5427_v23 = vpop.f32.mrb[43].mxu0 }
 0x816   :  { %v5445_v30 = vpop.f32.mrb[44].mxu0 }
 0x817   :  { %v5446_v13 = vpop.f32.mrb[45].mxu0 }
 0x818   :  { %v5447_v35 = vadd.f32 %v5446_v13, %v5445_v30  ;;  %v5448_v6 = vpop.f32.mrb[46].mxu0  ;;  %v6530_v30 = vld [vmem:[#allocation11 + $0x30] ss:$8 sps:$4 sm:$0xff]  }
 0x819   :  { %v5449_v19 = vpop.f32.mrb[47].mxu0  ;;  %v6536_v13 = vld [vmem:[#allocation11 + $0x50] ss:$8 sps:$4 sm:$0xff]   ;;  %v6539_v6 = vld [vmem:[#allocation11 + $0x60] ss:$8 sps:$4 sm:$0xff]  }
 0x81a   :  { %v4004_v31 = vadd.f32 %v5447_v35, %v5425_v33  ;;  %v6538_v35 = vld [vmem:[#allocation11 + $0x54] ss:$8 sps:$4 sm:$0xff]   ;;  %v6541_v19 = vld [vmem:[#allocation11 + $0x64] ss:$8 sps:$4 sm:$0xff]  }
 0x836   :  { %v5467_v63 = vpop.f32.mrb[48].mxu0 }
 0x837   :  { %v5468_v32 = vpop.f32.mrb[49].mxu0 }
 0x838   :  { %v5469_v45 = vadd.f32 %v5468_v32, %v5467_v63  ;;  %v5470_v18 = vpop.f32.mrb[50].mxu0  ;;  %v6545_v63 = vld [vmem:[#allocation11 + $0x80] ss:$8 sps:$4 sm:$0xff]   ;;  %v6550_v32 = vld [vmem:[#allocation11 + $0x94] ss:$8 sps:$4 sm:$0xff]  }
 0x839   :  { %v5471_v61 = vpop.f32.mrb[51].mxu0  ;;  %v6553_v18 = vld [vmem:[#allocation11 + $0xa4] ss:$8 sps:$4 sm:$0xff]  }
 0x83a   :  { %v4051_v4 = vadd.f32 %v5469_v45, %v4004_v31  ;;  %v6542_v31 = vld [vmem:[#allocation11 + $0x70] ss:$8 sps:$4 sm:$0xff]   ;;  %v6551_v61 = vld [vmem:[#allocation11 + $0xa0] ss:$8 sps:$4 sm:$0xff]  }
 0x83b   :  { %v6548_v45 = vld [vmem:[#allocation11 + $0x90] ss:$8 sps:$4 sm:$0xff]  }
 0x83c   :  { %v8845_v39 = vadd.f32 %v5297_v14, %v4051_v4  ;;  %v6556_v4 = vld [vmem:[#allocation11 + $0xb4] ss:$8 sps:$4 sm:$0xff]  }
 0x83e   :  { %v4145_v48 = vmul.f32 %v9156_v3, %v8845_v39  ;;  %v6566_v3 = vld [vmem:[#allocation11 + $0xf0] ss:$8 sps:$4 sm:$0xff]  }
 0x840   :  { %v4156_v20 = vmul.f32 %v4145_v48, %v8845_v39  ;;  %v4147_v17 = vadd.f32 %v4145_v48, %v4144_v44  ;;  %v6571_v48 = vld [vmem:[#allocation11 + $0x104] ss:$8 sps:$4 sm:$0xff]   ;;  %v6597_v44 = vld [vmem:[%s8959_s18 + $0x50] sm:$0xff]  }
 0x842   :  { %v4158_v7 = vadd.f32 %v4156_v20, %v4155_v50  ;;  %v6599_v20 = vld [vmem:[%s8959_s18 + $0x58] sm:$0xff]  }
 0x843   :  { %v6600_v50 = vld [vmem:[%s8959_s18 + $0x18] sm:$0xff]  }
 0x856   :  { %v5489_v29 = vpop.f32.mrb[52].mxu0 }
 0x857   :  { %v5490_v57 = vpop.f32.mrb[53].mxu0 }
 0x858   :  { %v5491_v59 = vadd.f32 %v5490_v57, %v5489_v29  ;;  %v5492_v51 = vpop.f32.mrb[54].mxu0  ;;  %v6554_v29 = vld [vmem:[#allocation11 + $0xb0] ss:$8 sps:$4 sm:$0xff]   ;;  %v6559_v57 = vld [vmem:[#allocation11 + $0xc4] ss:$8 sps:$4 sm:$0xff]  }
 0x859   :  { %v5493_v8 = vpop.f32.mrb[55].mxu0  ;;  %v6562_v51 = vld [vmem:[#allocation11 + $0xd4] ss:$8 sps:$4 sm:$0xff]  }
 0x85a   :  { %v6560_v8 = vld [vmem:[#allocation11 + $0xd0] ss:$8 sps:$4 sm:$0xff]  }
 0x876   :  { %v5511_v53 = vpop.f32.mrb[56].mxu0 }
 0x877   :  { %v5512_v41 = vpop.f32.mrb[57].mxu0 }
 0x878   :  { %v5513_v62 = vadd.f32 %v5512_v41, %v5511_v53  ;;  %v5514_v37 = vpop.f32.mrb[58].mxu0  ;;  %v6563_v53 = vld [vmem:[#allocation11 + $0xe0] ss:$8 sps:$4 sm:$0xff]   ;;  %v6568_v41 = vld [vmem:[#allocation11 + $0xf4] ss:$8 sps:$4 sm:$0xff]  }
 0x879   :  { %v5515_v9 = vpop.f32.mrb[59].mxu0  ;;  %v6594_v37 = vld [vmem:[%s8959_s18] sm:$0xff]  }
 0x87a   :  { %v4129_v40 = vadd.f32 %v5513_v62, %v5491_v59  ;;  %v6557_v59 = vld [vmem:[#allocation11 + $0xc0] ss:$8 sps:$4 sm:$0xff]  }
 0x87b   :  { %v6593_v62 = vld [vmem:[%s8959_s18 + $0x40] sm:$0xff]   ;;  %v6595_v9 = vld [vmem:[%s8959_s18 + $0x48] sm:$0xff]  }
 0x87c   :  { %v8855_v60 = vadd.f32 %v5297_v14, %v4129_v40  ;;  %v6565_v14 = vld [vmem:[#allocation11 + $0xe4] ss:$8 sps:$4 sm:$0xff]   ;;  %5551 = vmatprep.subr.bf16.mxu0 %v6593_v62  ;;  %v6598_v40 = vld [vmem:[%s8959_s18 + $0x10] sm:$0xff]   ;;  %v4406_v62 = vld [vmem:[%s8958_s17] sm:$0x3] }
 0x87e   :  { %v4146_v16 = vmul.f32 %v9158_v34, %v8855_v60 }
 0x880   :  { %v4148_v24 = vadd.f32 %v4147_v17, %v4146_v16  ;;  %v4157_v26 = vmul.f32 %v4146_v16, %v8855_v60 }
 0x882   :  { %v4149_v33 = vrot.slane %v4148_v24, 4  ;;  %v4159_v5 = vadd.f32 %v4158_v7, %v4157_v26 }
 0x884   :  { %v4150_v23 = vadd.f32 %v4149_v33, %v4148_v24  ;;  %v4160_v15 = vrot.slane %v4159_v5, 4 }
 0x886   :  { %v4151_v25 = vrot.slane %v4150_v23, 2  ;;  %v4161_v12 = vadd.f32 %v4160_v15, %v4159_v5 }
 0x888   :  { %v4152_v36 = vadd.f32 %v4151_v25, %v4150_v23  ;;  %v4162_v21 = vrot.slane %v4161_v12, 2  ;;  %v4327_v25 = vld [vmem:[%s8954_s13] sm:$0x1] }
 0x88a   :  { %v4153_v52 = vrot.slane %v4152_v36, 1  ;;  %v4163_v1 = vadd.f32 %v4162_v21, %v4161_v12  ;;  %v4331_v21 = vld [vmem:[%s8955_s14] sm:$0x1] }
 0x88c   :  { %v4154_v55 = vadd.f32 %v4153_v52, %v4152_v36  ;;  %v4164_v56 = vrot.slane %v4163_v1, 1 }
 0x88e   :  { %5606 = vmatmul.mubr.f32.vlgmr.msra.gmra.mrb[16].mxu1 %v4154_v55  ;;  %v4165_v2 = vadd.f32 %v4164_v56, %v4163_v1 }
 0x88f   :  { %4659 = vmatpush1.bf16.msra.mxu1 %v6521_v22 }
 0x890   :  { %5641 = vmatmul.mubr.f32.vlgmr.msra.gmra.mrb[60].mxu0 %v4165_v2  ;;  %4660 = vmatprep.subr.bf16.mxu1 %v6526_v42 }
 0x891   :  { %5552 = vmatpush3.bf16.msra.mxu0 %v6594_v37  ;;  %v4411_v37 = vrot.slane %v4406_v62, %v9149_v47 }
 0x892   :  { %5553 = vmatprep.subr.bf16.mxu0 %v6595_v9  ;;  %v4415_v9 = vrot.slane %v4406_v62, %v9150_v58 }
 0x893   :  { %4661 = vmatpush1.bf16.msra.mxu1 %v6524_v28 }
 0x894   :  { %4662 = vmatprep.subr.bf16.mxu1 %v6529_v38 }
 0x895   :  { %5554 = vmatpush3.bf16.msra.mxu0 %v6596_v49 }
 0x896   :  { %5555 = vmatprep.subr.bf16.mxu0 %v6597_v44 }
 0x897   :  { %4663 = vmatpush1.bf16.msra.mxu1 %v6527_v11 }
 0x898   :  { %4664 = vmatprep.subr.bf16.mxu1 %v6532_v46 }
 0x899   :  { %5556 = vmatpush3.bf16.msra.mxu0 %v6598_v40 }
 0x89a   :  { %5557 = vmatprep.subr.bf16.mxu0 %v6599_v20 }
 0x89b   :  { %4665 = vmatpush1.bf16.msra.mxu1 %v6530_v30 }
 0x89c   :  { %4666 = vmatprep.subr.bf16.mxu1 %v6535_v10 }
 0x89d   :  { %5558 = vmatpush3.bf16.msra.mxu0 %v6600_v50 }
 0x89f   :  { %4667 = vmatpush1.bf16.msra.mxu1 %v6533_v43  ;;  %v6569_v43 = vld [vmem:[#allocation11 + $0x100] ss:$8 sps:$4 sm:$0xff]  }
 0x8a0   :  { %4668 = vmatprep.subr.bf16.mxu1 %v6538_v35  ;;  %v6574_v35 = vld [vmem:[#allocation11 + $0x114] ss:$8 sps:$4 sm:$0xff]  }
 0x8a3   :  { %4669 = vmatpush1.bf16.msra.mxu1 %v6536_v13 }
 0x8a4   :  { %4670 = vmatprep.subr.bf16.mxu1 %v6541_v19  ;;  %v6580_v19 = vld [vmem:[#allocation11 + $0x134] ss:$8 sps:$4 sm:$0xff]  }
 0x8a7   :  { %4671 = vmatpush1.bf16.msra.mxu1 %v6539_v6  ;;  %v9159_v6 = vmov 0  }
 0x8a8   :  { %4672 = vmatprep.subr.bf16.mxu1 %v6544_v0  ;;  %v6578_v0 = vld [vmem:[#allocation11 + $0x130] ss:$8 sps:$4 sm:$0xff]  }
 0x8ab   :  { %4673 = vmatpush1.bf16.msra.mxu1 %v6542_v31  ;;  %v6583_v31 = vld [vmem:[#allocation11 + $0x144] ss:$8 sps:$4 sm:$0xff]  }
 0x8ac   :  { %4674 = vmatprep.subr.bf16.mxu1 %v6547_v54  ;;  %v6581_v54 = vld [vmem:[#allocation11 + $0x140] ss:$8 sps:$4 sm:$0xff]  }
 0x8af   :  { %4675 = vmatpush1.bf16.msra.mxu1 %v6545_v63  ;;  %v6586_v63 = vld [vmem:[#allocation11 + $0x154] ss:$8 sps:$4 sm:$0xff]  }
 0x8b0   :  { %4676 = vmatprep.subr.bf16.mxu1 %v6550_v32  ;;  %v6584_v32 = vld [vmem:[#allocation11 + $0x150] ss:$8 sps:$4 sm:$0xff]  }
 0x8b3   :  { %4677 = vmatpush1.bf16.msra.mxu1 %v6548_v45  ;;  %v6589_v45 = vld [vmem:[#allocation11 + $0x164] ss:$8 sps:$4 sm:$0xff]  }
 0x8b4   :  { %4678 = vmatprep.subr.bf16.mxu1 %v6553_v18  ;;  %v6587_v18 = vld [vmem:[#allocation11 + $0x160] ss:$8 sps:$4 sm:$0xff]  }
 0x8b7   :  { %4679 = vmatpush1.bf16.msra.mxu1 %v6551_v61  ;;  %v6592_v61 = vld [vmem:[#allocation11 + $0x174] ss:$8 sps:$4 sm:$0xff]  }
 0x8b8   :  { %4680 = vmatprep.subr.bf16.mxu1 %v6556_v4  ;;  %v6590_v4 = vld [vmem:[#allocation11 + $0x170] ss:$8 sps:$4 sm:$0xff]  }
 0x8bb   :  { %4681 = vmatpush1.bf16.msra.mxu1 %v6554_v29 }
 0x8bc   :  { %4682 = vmatprep.subr.bf16.mxu1 %v6559_v57 }
 0x8bf   :  { %4683 = vmatpush1.bf16.msra.mxu1 %v6557_v59  ;;  %v6601_v59 = vld [vmem:[%s8959_s18 + $0x60] sm:$0xff]  }
 0x8c0   :  { %4684 = vmatprep.subr.bf16.mxu1 %v6562_v51  ;;  %v6602_v51 = vld [vmem:[%s8959_s18 + $0x20] sm:$0xff]   ;;  %5559 = vmatprep.subr.bf16.mxu0 %v6601_v59 }
 0x8c1   :  { %5560 = vmatpush3.bf16.msra.mxu0 %v6602_v51 }
 0x8c3   :  { %4685 = vmatpush1.bf16.msra.mxu1 %v6560_v8  ;;  %v6603_v8 = vld [vmem:[%s8959_s18 + $0x68] sm:$0xff]  }
 0x8c4   :  { %4686 = vmatprep.subr.bf16.mxu1 %v6565_v14  ;;  %v6604_v14 = vld [vmem:[%s8959_s18 + $0x28] sm:$0xff]   ;;  %5561 = vmatprep.subr.bf16.mxu0 %v6603_v8 }
 0x8c5   :  { %5562 = vmatpush3.bf16.msra.mxu0 %v6604_v14 }
 0x8c7   :  { %4687 = vmatpush1.bf16.msra.mxu1 %v6563_v53  ;;  %v6605_v53 = vld [vmem:[%s8959_s18 + $0x70] sm:$0xff]  }
 0x8c8   :  { %4688 = vmatprep.subr.bf16.mxu1 %v6568_v41  ;;  %v6606_v41 = vld [vmem:[%s8959_s18 + $0x30] sm:$0xff]   ;;  %5563 = vmatprep.subr.bf16.mxu0 %v6605_v53 }
 0x8c9   :  { %5564 = vmatpush3.bf16.msra.mxu0 %v6606_v41 }
 0x8cb   :  { %4689 = vmatpush1.bf16.msra.mxu1 %v6566_v3  ;;  %v6607_v3 = vld [vmem:[%s8959_s18 + $0x78] sm:$0xff]  }
 0x8cc   :  { %4699 = vmatprep.subr.bf16.mxu1 %v6571_v48  ;;  %v6608_v48 = vld [vmem:[%s8959_s18 + $0x38] sm:$0xff]   ;;  %5565 = vmatprep.subr.bf16.mxu0 %v6607_v3 }
 0x8cd   :  { %5566 = vmatpush3.bf16.msra.mxu0 %v6608_v48 }
 0x961   :  { %v4248_v17 = vpop.f32.mrb[16].mxu1 }
 0x962   :  { %v4252_v34 = vmul.f32 0.055555556, %v4248_v17  ;;  %v5607_v16 = vpop.f32.mrb[17].mxu1 }
 0x963   :  { %v4319_v7 = vpop.f32.mrb[60].mxu0 }
 0x964   :  { %v4324_v24 = vmul.f32 %v4252_v34, %v4252_v34  ;;  %v4323_v26 = vmul.f32 0.055555556, %v4319_v7  ;;  %v5642_v33 = vpop.f32.mrb[61].mxu0 }
 0x966   :  { %v4325_v5 = vsub.f32 %v4323_v26, %v4324_v24 }
 0x968   :  { %v4326_v23 = vmax.f32 %v4325_v5, 0.0 }
 0x96a   :  { %v4328_v15 = vadd.f32 1e-05, %v4326_v23 }
 0x96c   :  { %6689 = vrsqrt.f32 %v4328_v15 }
 0x976   :  { %v6690_v12 = vpop.eup %6689 }
 0x977   :  { %v4330_v36 = vmul.f32 %v6690_v12, %v4327_v25 }
 0x979   :  { %v4332_v52 = vmul.f32 %v4330_v36, %v4252_v34  ;;  %v4338_v1 = vrot.slane %v4330_v36, %v9149_v47 }
 0x97b   :  { %v4333_v22 = vsub.f32 %v4331_v21, %v4332_v52  ;;  %v4341_v55 = vmul.f32 %v4338_v1, %v8845_v39  ;;  %v4340_v42 = vmul.f32 %v4338_v1, %v8848_v27  ;;  %v4342_v2 = vmul.f32 %v4338_v1, %v8855_v60  ;;  %v6572_v39 = vld [vmem:[#allocation11 + $0x110] ss:$8 sps:$4 sm:$0xff]   ;;  %v6577_v27 = vld [vmem:[#allocation11 + $0x124] ss:$8 sps:$4 sm:$0xff]   ;;  %v6575_v60 = vld [vmem:[#allocation11 + $0x120] ss:$8 sps:$4 sm:$0xff]  }
 0x97d   :  { %v4347_v56 = vrot.slane %v4333_v22, %v9149_v47  ;;  %v5346_v47 = vld [vmem:[%s8960_s19] ss:$0 sm:$0xff] }
 0x97f   :  { %v4350_v28 = vadd.f32 %v4347_v56, %v4341_v55  ;;  %v4349_v38 = vadd.f32 %v4347_v56, %v4340_v42  ;;  %v4351_v11 = vadd.f32 %v4347_v56, %v4342_v2 }
 0x981   :  { %6691 = vtanh.f32 %v4350_v28 }
 0x982   :  { %6693 = vtanh.f32 %v4349_v38 }
 0x983   :  { %6695 = vtanh.f32 %v4351_v11 }
 0x98b   :  { %v6692_v46 = vpop.eup %6691 }
 0x98c   :  { %v6694_v30 = vpop.eup %6693  ;;  %v4356_v10 = vpack.c.bf16 %v6692_v46, %v6692_v46 }
 0x98d   :  { %v4355_v13 = vpack.c.bf16 %v6694_v30, %v6694_v30  ;;  %v6696_v29 = vpop.eup %6695 }
 0x98e   :  { %4690 = vmatprep.mubr.bf16.mxu1 %v4356_v10  ;;  %v4357_v57 = vpack.c.bf16 %v6696_v29, %v6696_v29 }
 0x98f   :  { %4691 = vmatmul.mubr.bf16.vlgmr.msra.gmra.mrb[20].mxu1 %v4355_v13 }
 0x990   :  { %4700 = vmatpush1.bf16.msra.mxu1 %v6569_v43  ;;  %4731 = vmatprep.mubr.bf16.mxu1 %v9159_v6 }
 0x991   :  { %4701 = vmatprep.subr.bf16.mxu1 %v6574_v35 }
 0x994   :  { %4702 = vmatpush1.bf16.msra.mxu1 %v6572_v39 }
 0x995   :  { %4703 = vmatprep.subr.bf16.mxu1 %v6577_v27 }
 0x998   :  { %4704 = vmatpush1.bf16.msra.mxu1 %v6575_v60 }
 0x999   :  { %4705 = vmatprep.subr.bf16.mxu1 %v6580_v19 }
 0x99c   :  { %4706 = vmatpush1.bf16.msra.mxu1 %v6578_v0 }
 0x99d   :  { %4707 = vmatprep.subr.bf16.mxu1 %v6583_v31 }
 0x9a0   :  { %4708 = vmatpush1.bf16.msra.mxu1 %v6581_v54 }
 0x9a1   :  { %4709 = vmatprep.subr.bf16.mxu1 %v6586_v63 }
 0x9a4   :  { %4710 = vmatpush1.bf16.msra.mxu1 %v6584_v32 }
 0x9a5   :  { %4711 = vmatprep.subr.bf16.mxu1 %v6589_v45 }
 0x9a8   :  { %4712 = vmatpush1.bf16.msra.mxu1 %v6587_v18 }
 0x9a9   :  { %4713 = vmatprep.subr.bf16.mxu1 %v6592_v61 }
 0x9ac   :  { %4714 = vmatpush1.bf16.msra.mxu1 %v6590_v4 }
 0x9af   :  { %4732 = vmatmul.mubr.bf16.vlgmr.msra.gmra.mrb[20].mxu1 %v4357_v57 }
 0xa82   :  { %v4733_v49 = vpop.f32.mrb[20].mxu1 }
 0xa83   :  { %v5985_v44 = vadd.f32 %v4733_v49, %v4411_v37  ;;  %v4735_v40 = vpop.f32.mrb[21].mxu1 }
 0xa84   :  { %v5986_v20 = vadd.f32 %v4735_v40, %v4415_v9  ;;  %v4737_v50 = vpop.f32.mrb[22].mxu1 }
 0xa85   :  { %6697 = vtanh.f32 %v5985_v44  ;;  %v4738_v17 = vpop.f32.mrb[23].mxu1 }
 0xa86   :  { %6699 = vtanh.f32 %v5986_v20 }
 0xa8f   :  { %v6698_v34 = vpop.eup %6697 }
 0xa90   :  { %v6700_v16 = vpop.eup %6699  ;;  %v4742_v24 = vpack.c.bf16 %v6698_v34, %v6698_v34 }
 0xa91   :  { %v4743_v7 = vpack.c.bf16 %v6700_v16, %v6700_v16 }
 0xa93   :  { %4911 = vmatprep.mubr.bf16.mxu0 %v4743_v7 }
 0xa94   :  { %4912 = vmatmul.mubr.bf16.vlgmr.msra.gmra.mrb[64].mxu0 %v4742_v24 }
 0xb67   :  { %v5567_v26 = vpop.f32.mrb[64].mxu0 }
 0xb68   :  { %v5568_v58 = vpop.f32.mrb[65].mxu0 }
 0xb69   :  { %v5569_v33 = vadd.f32 %v5568_v58, %v5567_v26  ;;  %v5570_v5 = vpop.f32.mrb[66].mxu0 }
 0xb6a   :  { %v5571_v23 = vpop.f32.mrb[67].mxu0 }
 0xb6b   :  { %v4914_v15 = vadd.f32 %v5569_v33, %v5346_v47 }
 0xb6d   :  { %4920 = vst.msk [vmem:[#allocation13] sm:$0x3] %vm4919_vm15, %v4914_v15 }
 0xb6e   :  { %6844 = shalt.err (!%p6841_p10)
}
 0xb6f   :  { %s6845_s19 = scalar_lea.hbm %s8961_s20, 32 }
 0xb70   :  { %p6846_p11 = scmp.ne.s32.totalorder %s8961_s20, %s6845_s19  ;;  %p6849_p12 = scmp.lt.u32.totalorder %s6845_s19, %s8961_s20 }
 0xb72   :  { %p6851_p13 = pnand %p6849_p12, %p6846_p11 }
 0xb74   :  { %6854 = shalt.err (!%p6851_p13)
}
 0xb75   :  { %4930 = dma.vmem_to_hbm [thread:$0]  %s4928_s25, 32, %s8961_s20, [#allocation4]  }
 0xb76   :  { %6863 = dma.done.wait [#allocation4], 32  }
 0xb77   :  { %6864 = vsyncadd [#allocation4], 4294967264 }
 0xb78   :  { %4934 = vsyncpa [#allocation3], 1 }
 0xb79   :  { %4935 = vsyncpa [#allocation6], 1 }
 0xb7a   :  { %4936 = vsyncpa [#allocation9], 1 }
 0xb7b   :  { %4937 = vsyncpa [#allocation12], 1 }
 0xb7c   :  { %4938 = vsyncpa [#allocation4], 1 }

</bundles_post_ra>
